<compile_context>
chip_gen: v7x
topology: tpu7x:2x2x1
jax: 0.10.0
libtpu: 0.0.40
codegen_flags: <defaults>
</compile_context>

<pallas_src>
import functools

import jax
import jax.numpy as jnp
import numpy as np
from jax.experimental import pallas as pl
from jax.experimental.pallas import tpu as pltpu

F32 = jnp.float32
BF16 = jnp.bfloat16
LOG_2PI = float(np.log(2.0 * np.pi))
VMEM_LIMIT = 32 * 1024 * 1024  # safe on v5e/v6e/v7x


# ---------------------------------------------------------------------------
# BlockSpec helpers (grid = (batch,); one image per grid step)
# ---------------------------------------------------------------------------
def _const_spec(shape):
    nd = len(shape)
    return pl.BlockSpec(shape, lambda b, _nd=nd: (0,) * _nd)


def _batch_spec(hw, c):
    return pl.BlockSpec((1, hw, c), lambda b: (b, 0, 0))


def _scalar_out_spec():
    return pl.BlockSpec((1, 1, 1), lambda b: (b, 0, 0))


def _compiler_params():
    return pltpu.CompilerParams(
        dimension_semantics=("parallel",), vmem_limit_bytes=VMEM_LIMIT
    )


def _dj_masks(H, W):
    # Masks for horizontal taps on the flattened (H*W) pixel axis:
    # index 0: dj=-1 valid (j>=1), 1: dj=0 (all ones), 2: dj=+1 valid (j<=W-2).
    j = jnp.arange(H * W, dtype=jnp.int32) % W
    m = jnp.stack([j >= 1, jnp.ones((H * W,), bool), j <= W - 2], axis=0)
    return m.astype(F32).reshape(3, H * W, 1)


# ---------------------------------------------------------------------------
# In-kernel 3x3 conv (zero padding) as 9 accumulating MXU matmuls.
# x_f32: (H*W, Cin) value; w_ref: (9, Cin, Cout) bf16 ref; mask_ref: (3, H*W, 1)
# ---------------------------------------------------------------------------
def _conv3x3_taps(x_f32, mask_ref, w_ref, H, W, cout):
    HW = H * W
    cin = x_f32.shape[-1]
    zpad = jnp.zeros((W + 1, cin), jnp.float32)
    xp = jnp.concatenate([zpad, x_f32, zpad], axis=0)  # (HW + 2W + 2, Cin), in VMEM
    acc = jnp.zeros((HW, cout), jnp.float32)
    for di in (-1, 0, 1):
        for dj in (-1, 0, 1):
            off = (W + 1) + di * W + dj               # static slice offset
            win = xp[off:off + HW, :]
            if dj != 0:
                win = win * mask_ref[dj + 1]          # zero the j-boundary rows
            acc = acc + jnp.dot(
                win.astype(BF16),
                w_ref[(di + 1) * 3 + (dj + 1)],
                preferred_element_type=jnp.float32,
            )
    return acc


# ---------------------------------------------------------------------------
# Fused FlowStep kernel: actnorm+1x1 matmul, coupling net, affine coupling,
# in-kernel logdet reduction.  One grid step == one image.
# ---------------------------------------------------------------------------
def _make_flowstep_kernel(H, W, C, FS):
    HW, Ch = H * W, C // 2

    def kernel(z_ref, mask_ref, wf_ref, bf_ref, w1_ref, b1_ref,
               w2_ref, b2_ref, w3_ref, b3_ref, zout_ref, ld_ref):
        # ---- fused ActNorm + invertible 1x1 conv (f32, single MXU matmul) ----
        x = z_ref[0]                                                  # (HW, C)
        zf = jnp.dot(x, wf_ref[...], preferred_element_type=jnp.float32)
        zf = zf + bf_ref[...]
        z1 = zf[:, :Ch]
        z2 = zf[:, Ch:]

        # ---- coupling net: conv3x3 -> ReLU -> conv1x1 -> ReLU -> conv3x3 ----
        h = _conv3x3_taps(z1, mask_ref, w1_ref, H, W, FS)
        h = jnp.maximum(h + b1_ref[...], 0.0)
        h = jnp.dot(h.astype(BF16), w2_ref[...], preferred_element_type=jnp.float32)
        h = jnp.maximum(h + b2_ref[...], 0.0)
        h = _conv3x3_taps(h, mask_ref, w3_ref, H, W, C) + b3_ref[...]

        # w3/b3 output columns pre-permuted in the wrapper so that the "cross"
        # split (h[..., 0::2] / h[..., 1::2]) becomes two contiguous halves.
        shift = h[:, :Ch]
        u = h[:, Ch:] + 2.0
        # log(sigmoid(u)) computed stably; scale = exp(log_s)
        log_s = jnp.minimum(u, 0.0) - jnp.log(1.0 + jnp.exp(-jnp.abs(u)))
        s = jnp.exp(log_s)
        y2 = (z2 + shift) * s

        zout_ref[0] = jnp.concatenate([z1, y2], axis=-1)  # one wide lane store
        ld_ref[0] = jnp.sum(log_s, keepdims=True)         # per-image logdet term

    return kernel


def flowstep_fwd(z, p, logdet):
    B, H, W, C = z.shape
    HW, Ch = H * W, C // 2
    FS = p["b1"].shape[0]

    # Fold ActNorm (y = (x + bias) * exp(logs)) into the 1x1 conv matmul:
    #   y' = x @ Wf + bf,  Wf = diag(exp(logs)) @ W^T,  bf = (bias*exp(logs)) @ W^T
    scale = jnp.exp(p["actnorm_logs"])
    w_inv_t = p["invconv_w"].T
    wf = (scale[:, None] * w_inv_t).astype(F32)                    # (C, C)
    bf = ((p["actnorm_bias"] * scale) @ w_inv_t).reshape(1, C).astype(F32)

    # Coupling-net weights: PyTorch (Cout, Cin, kh, kw) -> (tap, Cin, Cout), bf16.
    # Last conv's output columns permuted so shift / raw-scale are contiguous.
    perm = jnp.concatenate([jnp.arange(0, C, 2), jnp.arange(1, C, 2)])
    w1 = jnp.transpose(p["w1"], (2, 3, 1, 0)).reshape(9, Ch, FS).astype(BF16)
    b1 = p["b1"].reshape(1, FS).astype(F32)
    w2 = p["w2"].reshape(FS, FS).T.astype(BF16)
    b2 = p["b2"].reshape(1, FS).astype(F32)
    w3 = jnp.transpose(p["w3"], (2, 3, 1, 0)).reshape(9, FS, C)[:, :, perm].astype(BF16)
    b3 = p["b3"][perm].reshape(1, C).astype(F32)
    masks = _dj_masks(H, W)

    # TODO(synk): per-image blocks assume one image's activations fit in VMEM;
    # very large spatial sizes would need halo-tiled spatial blocking.
    zout, ld = pl.pallas_call(
        _make_flowstep_kernel(H, W, C, FS),
        grid=(B,),
        in_specs=[_batch_spec(HW, C), _const_spec((3, HW, 1)),
                  _const_spec((C, C)), _const_spec((1, C)),
                  _const_spec((9, Ch, FS)), _const_spec((1, FS)),
                  _const_spec((FS, FS)), _const_spec((1, FS)),
                  _const_spec((9, FS, C)), _const_spec((1, C))],
        out_specs=[_batch_spec(HW, C), _scalar_out_spec()],
        out_shape=[jax.ShapeDtypeStruct((B, HW, C), F32),
                   jax.ShapeDtypeStruct((B, 1, 1), F32)],
        compiler_params=_compiler_params(),
    )(z.reshape(B, HW, C), masks, wf, bf, w1, b1, w2, b2, w3, b3)

    _, logabsdet = jnp.linalg.slogdet(p["invconv_w"])   # tiny CxC, plain JAX
    logdet = logdet + ld[:, 0, 0] + H * W * (jnp.sum(p["actnorm_logs"]) + logabsdet)
    return zout.reshape(B, H, W, C), logdet


# ---------------------------------------------------------------------------
# Split layer: prior conv3x3 on z1 + Gaussian log-prob of z2, reduced in-kernel.
# ---------------------------------------------------------------------------
def _make_split_kernel(H, W, C):
    HW, Ch = H * W, C // 2

    def kernel(z_ref, mask_ref, wq_ref, bq_ref, lp_ref):
        z = z_ref[0]                                   # (HW, C) f32
        z1 = z[:, :Ch]
        z2 = z[:, Ch:]
        h = _conv3x3_taps(z1, mask_ref, wq_ref, H, W, C) + bq_ref[...]
        mean = h[:, :Ch]                               # columns pre-permuted
        logs = h[:, Ch:]
        d = z2 - mean
        lp = -0.5 * (LOG_2PI + 2.0 * logs + d * d * jnp.exp(-2.0 * logs))
        lp_ref[0] = jnp.sum(lp, keepdims=True)

    return kernel


def split_fwd(z, p, logdet, logpz):
    B, H, W, C = z.shape
    HW, Ch = H * W, C // 2
    perm = jnp.concatenate([jnp.arange(0, C, 2), jnp.arange(1, C, 2)])
    wq = jnp.transpose(p["w"], (2, 3, 1, 0)).reshape(9, Ch, C)[:, :, perm].astype(BF16)
    bq = p["b"][perm].reshape(1, C).astype(F32)
    masks = _dj_masks(H, W)

    lp = pl.pallas_call(
        _make_split_kernel(H, W, C),
        grid=(B,),
        in_specs=[_batch_spec(HW, C), _const_spec((3, HW, 1)),
                  _const_spec((9, Ch, C)), _const_spec((1, C))],
        out_specs=_scalar_out_spec(),
        out_shape=jax.ShapeDtypeStruct((B, 1, 1), F32),
        compiler_params=_compiler_params(),
    )(z.reshape(B, HW, C), masks, wq, bq)

    return z[..., :Ch], logdet, logpz + lp[:, 0, 0]     # forward keeps z1


# ---------------------------------------------------------------------------
# Gaussian prior: standard-normal log-prob (zero-init learned top), in-kernel sum.
# ---------------------------------------------------------------------------
def _prior_kernel(z_ref, lp_ref):
    x = z_ref[0]
    lp = -0.5 * (LOG_2PI + x * x)
    lp_ref[0] = jnp.sum(lp, keepdims=True)


def prior_fwd(z, logdet, logpz):
    B, H, W, C = z.shape
    HW = H * W
    lp = pl.pallas_call(
        _prior_kernel,
        grid=(B,),
        in_specs=[_batch_spec(HW, C)],
        out_specs=_scalar_out_spec(),
        out_shape=jax.ShapeDtypeStruct((B, 1, 1), F32),
        compiler_params=_compiler_params(),
    )(z.reshape(B, HW, C))
    return z, logdet, logpz + lp[:, 0, 0]


# ---------------------------------------------------------------------------
# Squeeze (pure layout work, plain JAX)
# ---------------------------------------------------------------------------
def squeeze_fwd(x):
    # NHWC equivalent of Glow's NCHW squeeze: new channel = 4*c + 2*dh + dw
    B, H, W, C = x.shape
    x = x.reshape(B, H // 2, 2, W // 2, 2, C)
    x = jnp.transpose(x, (0, 1, 3, 5, 2, 4))
    return x.reshape(B, H // 2, W // 2, C * 4)


# ---------------------------------------------------------------------------
# Parameter init (deterministic, synthetic) + full forward
# ---------------------------------------------------------------------------
def init_params(key, C, H, W, filter_size, L, K):
    layers = []
    for i in range(L):
        C, H, W = C * 4, H // 2, W // 2
        layers.append(("squeeze", None))
        for _ in range(K):
            key, *ks = jax.random.split(key, 7)
            Ch, fs = C // 2, filter_size
            # TODO(synk): PyTorch ActNorm is data-dependent-initialized on the first
            # batch; here we use deterministic synthetic bias/logs instead.
            p = {
                "actnorm_bias": 0.10 * jax.random.normal(ks[0], (C,), F32),
                "actnorm_logs": 0.05 * jax.random.normal(ks[1], (C,), F32),
                "invconv_w": jnp.linalg.qr(jax.random.normal(ks[2], (C, C), F32))[0],
                "w1": 0.05 * jax.random.normal(ks[3], (fs, Ch, 3, 3), F32),
                "b1": jnp.zeros((fs,), F32),
                "w2": 0.05 * jax.random.normal(ks[4], (fs, fs, 1, 1), F32),
                "b2": jnp.zeros((fs,), F32),
                # Glow zero-inits the last conv; small deterministic values keep
                # the kernel compute non-trivial.
                "w3": 0.01 * jax.random.normal(ks[5], (C, fs, 3, 3), F32),
                "b3": jnp.zeros((C,), F32),
            }
            layers.append(("flowstep", p))
        if i < L - 1:
            key, k1 = jax.random.split(key)
            layers.append(
                ("split", {"w": 0.01 * jax.random.normal(k1, (C, C // 2, 3, 3), F32),
                           "b": jnp.zeros((C,), F32)})
            )
            C = C // 2
    layers.append(("prior", None))
    return layers


def normflownet_forward(layers, z_nchw):
    B = z_nchw.shape[0]
    z = jnp.transpose(z_nchw, (0, 2, 3, 1)).astype(F32)  # NCHW -> NHWC
    logdet = jnp.zeros((B,), F32)                        # torch.zeros_like(z[:,0,0,0])
    logpz = jnp.zeros((B,), F32)
    for kind, p in layers:
        if kind == "squeeze":
            z = squeeze_fwd(z)
        elif kind == "flowstep":
            z, logdet = flowstep_fwd(z, p, logdet)
        elif kind == "split":
            z, logdet, logpz = split_fwd(z, p, logdet, logpz)
        elif kind == "prior":
            z, logdet, logpz = prior_fwd(z, logdet, logpz)
    return jnp.transpose(z, (0, 3, 1, 2)), logdet, logpz  # back to NCHW


if __name__ == "__main__":
    key = jax.random.PRNGKey(0)
    kx, kp = jax.random.split(key)
    B, C, H, W = 2, 4, 16, 16
    filter_size, L, K = 32, 2, 2

    x = jax.random.normal(kx, (B, C, H, W), F32)
    layers = init_params(kp, C, H, W, filter_size, L, K)

    fwd = jax.jit(functools.partial(normflownet_forward, layers))
    z, logdet, logpz = fwd(x)
    jax.block_until_ready((z, logdet, logpz))

    assert z.shape == (B, 32, 4, 4), z.shape          # (B, C*4*4/2, H/4, W/4)
    assert logdet.shape == (B,) and logpz.shape == (B,)
    assert bool(jnp.all(jnp.isfinite(z)))
    assert bool(jnp.all(jnp.isfinite(logdet))) and bool(jnp.all(jnp.isfinite(logpz)))
    print("KERNEL_OK")
</pallas_src>

<mosaic_0001>
module attributes {stable_mosaic.version = 11 : i64} {
  func.func @kernel(%arg0: i32, %arg1: memref<1x64x16xf32, #tpu.memory_space<vmem>>, %arg2: memref<3x64x1xf32, #tpu.memory_space<vmem>>, %arg3: memref<16x16xf32, #tpu.memory_space<vmem>>, %arg4: memref<1x16xf32, #tpu.memory_space<vmem>>, %arg5: memref<9x8x32xbf16, #tpu.memory_space<vmem>>, %arg6: memref<1x32xf32, #tpu.memory_space<vmem>>, %arg7: memref<32x32xbf16, #tpu.memory_space<vmem>>, %arg8: memref<1x32xf32, #tpu.memory_space<vmem>>, %arg9: memref<9x32x16xbf16, #tpu.memory_space<vmem>>, %arg10: memref<1x16xf32, #tpu.memory_space<vmem>>, %arg11: memref<1x64x16xf32, #tpu.memory_space<vmem>>, %arg12: memref<1x1x1xf32, #tpu.memory_space<vmem>>) attributes {dimension_semantics = [#tpu.dimension_semantics<parallel>], iteration_bounds = array<i64: 2>, scalar_prefetch = 0 : i64, scratch_operands = 0 : i64, tpu.core_type = #tpu.core_type<tc>, window_params = [{transform_indices = @transform_0, window_bounds = array<i64: 1, 64, 16>}, {pipeline_mode = #tpu.pipeline_mode<synchronous>, transform_indices = @transform_1, window_bounds = array<i64: 3, 64, 1>}, {pipeline_mode = #tpu.pipeline_mode<synchronous>, transform_indices = @transform_2, window_bounds = array<i64: 16, 16>}, {pipeline_mode = #tpu.pipeline_mode<synchronous>, transform_indices = @transform_3, window_bounds = array<i64: 1, 16>}, {pipeline_mode = #tpu.pipeline_mode<synchronous>, transform_indices = @transform_4, window_bounds = array<i64: 9, 8, 32>}, {pipeline_mode = #tpu.pipeline_mode<synchronous>, transform_indices = @transform_5, window_bounds = array<i64: 1, 32>}, {pipeline_mode = #tpu.pipeline_mode<synchronous>, transform_indices = @transform_6, window_bounds = array<i64: 32, 32>}, {pipeline_mode = #tpu.pipeline_mode<synchronous>, transform_indices = @transform_7, window_bounds = array<i64: 1, 32>}, {pipeline_mode = #tpu.pipeline_mode<synchronous>, transform_indices = @transform_8, window_bounds = array<i64: 9, 32, 16>}, {pipeline_mode = #tpu.pipeline_mode<synchronous>, transform_indices = @transform_9, window_bounds = array<i64: 1, 16>}, {transform_indices = @transform_10, window_bounds = array<i64: 1, 64, 16>}, {transform_indices = @transform_11, window_bounds = array<i64: 1, 1, 1>}]} {
    %c0 = arith.constant 0 : index
    %c0_0 = arith.constant 0 : index
    %c0_1 = arith.constant 0 : index
    %0 = vector.load %arg1[%c0, %c0_0, %c0_1] : memref<1x64x16xf32, #tpu.memory_space<vmem>>, vector<1x64x16xf32>
    %1 = vector.shape_cast %0 : vector<1x64x16xf32> to vector<64x16xf32>
    %c0_2 = arith.constant 0 : index
    %c0_3 = arith.constant 0 : index
    %2 = vector.load %arg3[%c0_2, %c0_3] : memref<16x16xf32, #tpu.memory_space<vmem>>, vector<16x16xf32>
    %cst = arith.constant dense<0.000000e+00> : vector<64x16xf32>
    %3 = tpu.matmul %1, %2, %cst {dimension_numbers = #tpu.dot_dimension_numbers<[1], [0], [0], [1], [0, 0, 1, 1], [], []>} : vector<64x16xf32>, vector<16x16xf32>, vector<64x16xf32> -> vector<64x16xf32>
    %c0_4 = arith.constant 0 : index
    %c0_5 = arith.constant 0 : index
    %4 = vector.load %arg4[%c0_4, %c0_5] : memref<1x16xf32, #tpu.memory_space<vmem>>, vector<1x16xf32>
    %5 = vector.broadcast %4 : vector<1x16xf32> to vector<64x16xf32>
    %6 = arith.addf %3, %5 : vector<64x16xf32>
    %7 = vector.extract_strided_slice %6 {offsets = [0, 0], sizes = [64, 8], strides = [1, 1]} : vector<64x16xf32> to vector<64x8xf32>
    %8 = vector.extract_strided_slice %6 {offsets = [0, 8], sizes = [64, 8], strides = [1, 1]} : vector<64x16xf32> to vector<64x8xf32>
    %cst_6 = arith.constant 0.000000e+00 : f32
    %9 = vector.broadcast %cst_6 : f32 to vector<9x8xf32>
    %10 = tpu.concatenate %9, %7, %9 in 0 : vector<9x8xf32>, vector<64x8xf32>, vector<9x8xf32> -> vector<82x8xf32>
    %cst_7 = arith.constant 0.000000e+00 : f32
    %11 = vector.broadcast %cst_7 : f32 to vector<64x32xf32>
    %12 = vector.extract_strided_slice %10 {offsets = [0, 0], sizes = [64, 8], strides = [1, 1]} : vector<82x8xf32> to vector<64x8xf32>
    %c0_8 = arith.constant 0 : index
    %c0_9 = arith.constant 0 : index
    %c0_10 = arith.constant 0 : index
    %13 = vector.load %arg2[%c0_8, %c0_9, %c0_10] : memref<3x64x1xf32, #tpu.memory_space<vmem>>, vector<1x64x1xf32>
    %14 = vector.shape_cast %13 : vector<1x64x1xf32> to vector<64x1xf32>
    %15 = vector.broadcast %14 : vector<64x1xf32> to vector<64x8xf32>
    %16 = arith.mulf %12, %15 : vector<64x8xf32>
    %17 = arith.truncf %16 : vector<64x8xf32> to vector<64x8xbf16>
    %c0_11 = arith.constant 0 : index
    %c0_12 = arith.constant 0 : index
    %c0_13 = arith.constant 0 : index
    %18 = vector.load %arg5[%c0_11, %c0_12, %c0_13] : memref<9x8x32xbf16, #tpu.memory_space<vmem>>, vector<1x8x32xbf16>
    %19 = vector.shape_cast %18 : vector<1x8x32xbf16> to vector<8x32xbf16>
    %cst_14 = arith.constant dense<0.000000e+00> : vector<64x32xf32>
    %20 = tpu.matmul %17, %19, %cst_14 {dimension_numbers = #tpu.dot_dimension_numbers<[1], [0], [0], [1], [0, 0, 1, 1], [], []>} : vector<64x8xbf16>, vector<8x32xbf16>, vector<64x32xf32> -> vector<64x32xf32>
    %21 = arith.addf %11, %20 : vector<64x32xf32>
    %22 = vector.extract_strided_slice %10 {offsets = [1, 0], sizes = [64, 8], strides = [1, 1]} : vector<82x8xf32> to vector<64x8xf32>
    %23 = arith.truncf %22 : vector<64x8xf32> to vector<64x8xbf16>
    %c1 = arith.constant 1 : index
    %c0_15 = arith.constant 0 : index
    %c0_16 = arith.constant 0 : index
    %24 = vector.load %arg5[%c1, %c0_15, %c0_16] : memref<9x8x32xbf16, #tpu.memory_space<vmem>>, vector<1x8x32xbf16>
    %25 = vector.shape_cast %24 : vector<1x8x32xbf16> to vector<8x32xbf16>
    %cst_17 = arith.constant dense<0.000000e+00> : vector<64x32xf32>
    %26 = tpu.matmul %23, %25, %cst_17 {dimension_numbers = #tpu.dot_dimension_numbers<[1], [0], [0], [1], [0, 0, 1, 1], [], []>} : vector<64x8xbf16>, vector<8x32xbf16>, vector<64x32xf32> -> vector<64x32xf32>
    %27 = arith.addf %21, %26 : vector<64x32xf32>
    %28 = vector.extract_strided_slice %10 {offsets = [2, 0], sizes = [64, 8], strides = [1, 1]} : vector<82x8xf32> to vector<64x8xf32>
    %c2 = arith.constant 2 : index
    %c0_18 = arith.constant 0 : index
    %c0_19 = arith.constant 0 : index
    %29 = vector.load %arg2[%c2, %c0_18, %c0_19] : memref<3x64x1xf32, #tpu.memory_space<vmem>>, vector<1x64x1xf32>
    %30 = vector.shape_cast %29 : vector<1x64x1xf32> to vector<64x1xf32>
    %31 = vector.broadcast %30 : vector<64x1xf32> to vector<64x8xf32>
    %32 = arith.mulf %28, %31 : vector<64x8xf32>
    %33 = arith.truncf %32 : vector<64x8xf32> to vector<64x8xbf16>
    %c2_20 = arith.constant 2 : index
    %c0_21 = arith.constant 0 : index
    %c0_22 = arith.constant 0 : index
    %34 = vector.load %arg5[%c2_20, %c0_21, %c0_22] : memref<9x8x32xbf16, #tpu.memory_space<vmem>>, vector<1x8x32xbf16>
    %35 = vector.shape_cast %34 : vector<1x8x32xbf16> to vector<8x32xbf16>
    %cst_23 = arith.constant dense<0.000000e+00> : vector<64x32xf32>
    %36 = tpu.matmul %33, %35, %cst_23 {dimension_numbers = #tpu.dot_dimension_numbers<[1], [0], [0], [1], [0, 0, 1, 1], [], []>} : vector<64x8xbf16>, vector<8x32xbf16>, vector<64x32xf32> -> vector<64x32xf32>
    %37 = arith.addf %27, %36 : vector<64x32xf32>
    %38 = vector.extract_strided_slice %10 {offsets = [8, 0], sizes = [64, 8], strides = [1, 1]} : vector<82x8xf32> to vector<64x8xf32>
    %c0_24 = arith.constant 0 : index
    %c0_25 = arith.constant 0 : index
    %c0_26 = arith.constant 0 : index
    %39 = vector.load %arg2[%c0_24, %c0_25, %c0_26] : memref<3x64x1xf32, #tpu.memory_space<vmem>>, vector<1x64x1xf32>
    %40 = vector.shape_cast %39 : vector<1x64x1xf32> to vector<64x1xf32>
    %41 = vector.broadcast %40 : vector<64x1xf32> to vector<64x8xf32>
    %42 = arith.mulf %38, %41 : vector<64x8xf32>
    %43 = arith.truncf %42 : vector<64x8xf32> to vector<64x8xbf16>
    %c3 = arith.constant 3 : index
    %c0_27 = arith.constant 0 : index
    %c0_28 = arith.constant 0 : index
    %44 = vector.load %arg5[%c3, %c0_27, %c0_28] : memref<9x8x32xbf16, #tpu.memory_space<vmem>>, vector<1x8x32xbf16>
    %45 = vector.shape_cast %44 : vector<1x8x32xbf16> to vector<8x32xbf16>
    %cst_29 = arith.constant dense<0.000000e+00> : vector<64x32xf32>
    %46 = tpu.matmul %43, %45, %cst_29 {dimension_numbers = #tpu.dot_dimension_numbers<[1], [0], [0], [1], [0, 0, 1, 1], [], []>} : vector<64x8xbf16>, vector<8x32xbf16>, vector<64x32xf32> -> vector<64x32xf32>
    %47 = arith.addf %37, %46 : vector<64x32xf32>
    %48 = vector.extract_strided_slice %10 {offsets = [9, 0], sizes = [64, 8], strides = [1, 1]} : vector<82x8xf32> to vector<64x8xf32>
    %49 = arith.truncf %48 : vector<64x8xf32> to vector<64x8xbf16>
    %c4 = arith.constant 4 : index
    %c0_30 = arith.constant 0 : index
    %c0_31 = arith.constant 0 : index
    %50 = vector.load %arg5[%c4, %c0_30, %c0_31] : memref<9x8x32xbf16, #tpu.memory_space<vmem>>, vector<1x8x32xbf16>
    %51 = vector.shape_cast %50 : vector<1x8x32xbf16> to vector<8x32xbf16>
    %cst_32 = arith.constant dense<0.000000e+00> : vector<64x32xf32>
    %52 = tpu.matmul %49, %51, %cst_32 {dimension_numbers = #tpu.dot_dimension_numbers<[1], [0], [0], [1], [0, 0, 1, 1], [], []>} : vector<64x8xbf16>, vector<8x32xbf16>, vector<64x32xf32> -> vector<64x32xf32>
    %53 = arith.addf %47, %52 : vector<64x32xf32>
    %54 = vector.extract_strided_slice %10 {offsets = [10, 0], sizes = [64, 8], strides = [1, 1]} : vector<82x8xf32> to vector<64x8xf32>
    %c2_33 = arith.constant 2 : index
    %c0_34 = arith.constant 0 : index
    %c0_35 = arith.constant 0 : index
    %55 = vector.load %arg2[%c2_33, %c0_34, %c0_35] : memref<3x64x1xf32, #tpu.memory_space<vmem>>, vector<1x64x1xf32>
    %56 = vector.shape_cast %55 : vector<1x64x1xf32> to vector<64x1xf32>
    %57 = vector.broadcast %56 : vector<64x1xf32> to vector<64x8xf32>
    %58 = arith.mulf %54, %57 : vector<64x8xf32>
    %59 = arith.truncf %58 : vector<64x8xf32> to vector<64x8xbf16>
    %c5 = arith.constant 5 : index
    %c0_36 = arith.constant 0 : index
    %c0_37 = arith.constant 0 : index
    %60 = vector.load %arg5[%c5, %c0_36, %c0_37] : memref<9x8x32xbf16, #tpu.memory_space<vmem>>, vector<1x8x32xbf16>
    %61 = vector.shape_cast %60 : vector<1x8x32xbf16> to vector<8x32xbf16>
    %cst_38 = arith.constant dense<0.000000e+00> : vector<64x32xf32>
    %62 = tpu.matmul %59, %61, %cst_38 {dimension_numbers = #tpu.dot_dimension_numbers<[1], [0], [0], [1], [0, 0, 1, 1], [], []>} : vector<64x8xbf16>, vector<8x32xbf16>, vector<64x32xf32> -> vector<64x32xf32>
    %63 = arith.addf %53, %62 : vector<64x32xf32>
    %64 = vector.extract_strided_slice %10 {offsets = [16, 0], sizes = [64, 8], strides = [1, 1]} : vector<82x8xf32> to vector<64x8xf32>
    %c0_39 = arith.constant 0 : index
    %c0_40 = arith.constant 0 : index
    %c0_41 = arith.constant 0 : index
    %65 = vector.load %arg2[%c0_39, %c0_40, %c0_41] : memref<3x64x1xf32, #tpu.memory_space<vmem>>, vector<1x64x1xf32>
    %66 = vector.shape_cast %65 : vector<1x64x1xf32> to vector<64x1xf32>
    %67 = vector.broadcast %66 : vector<64x1xf32> to vector<64x8xf32>
    %68 = arith.mulf %64, %67 : vector<64x8xf32>
    %69 = arith.truncf %68 : vector<64x8xf32> to vector<64x8xbf16>
    %c6 = arith.constant 6 : index
    %c0_42 = arith.constant 0 : index
    %c0_43 = arith.constant 0 : index
    %70 = vector.load %arg5[%c6, %c0_42, %c0_43] : memref<9x8x32xbf16, #tpu.memory_space<vmem>>, vector<1x8x32xbf16>
    %71 = vector.shape_cast %70 : vector<1x8x32xbf16> to vector<8x32xbf16>
    %cst_44 = arith.constant dense<0.000000e+00> : vector<64x32xf32>
    %72 = tpu.matmul %69, %71, %cst_44 {dimension_numbers = #tpu.dot_dimension_numbers<[1], [0], [0], [1], [0, 0, 1, 1], [], []>} : vector<64x8xbf16>, vector<8x32xbf16>, vector<64x32xf32> -> vector<64x32xf32>
    %73 = arith.addf %63, %72 : vector<64x32xf32>
    %74 = vector.extract_strided_slice %10 {offsets = [17, 0], sizes = [64, 8], strides = [1, 1]} : vector<82x8xf32> to vector<64x8xf32>
    %75 = arith.truncf %74 : vector<64x8xf32> to vector<64x8xbf16>
    %c7 = arith.constant 7 : index
    %c0_45 = arith.constant 0 : index
    %c0_46 = arith.constant 0 : index
    %76 = vector.load %arg5[%c7, %c0_45, %c0_46] : memref<9x8x32xbf16, #tpu.memory_space<vmem>>, vector<1x8x32xbf16>
    %77 = vector.shape_cast %76 : vector<1x8x32xbf16> to vector<8x32xbf16>
    %cst_47 = arith.constant dense<0.000000e+00> : vector<64x32xf32>
    %78 = tpu.matmul %75, %77, %cst_47 {dimension_numbers = #tpu.dot_dimension_numbers<[1], [0], [0], [1], [0, 0, 1, 1], [], []>} : vector<64x8xbf16>, vector<8x32xbf16>, vector<64x32xf32> -> vector<64x32xf32>
    %79 = arith.addf %73, %78 : vector<64x32xf32>
    %80 = vector.extract_strided_slice %10 {offsets = [18, 0], sizes = [64, 8], strides = [1, 1]} : vector<82x8xf32> to vector<64x8xf32>
    %c2_48 = arith.constant 2 : index
    %c0_49 = arith.constant 0 : index
    %c0_50 = arith.constant 0 : index
    %81 = vector.load %arg2[%c2_48, %c0_49, %c0_50] : memref<3x64x1xf32, #tpu.memory_space<vmem>>, vector<1x64x1xf32>
    %82 = vector.shape_cast %81 : vector<1x64x1xf32> to vector<64x1xf32>
    %83 = vector.broadcast %82 : vector<64x1xf32> to vector<64x8xf32>
    %84 = arith.mulf %80, %83 : vector<64x8xf32>
    %85 = arith.truncf %84 : vector<64x8xf32> to vector<64x8xbf16>
    %c8 = arith.constant 8 : index
    %c0_51 = arith.constant 0 : index
    %c0_52 = arith.constant 0 : index
    %86 = vector.load %arg5[%c8, %c0_51, %c0_52] : memref<9x8x32xbf16, #tpu.memory_space<vmem>>, vector<1x8x32xbf16>
    %87 = vector.shape_cast %86 : vector<1x8x32xbf16> to vector<8x32xbf16>
    %cst_53 = arith.constant dense<0.000000e+00> : vector<64x32xf32>
    %88 = tpu.matmul %85, %87, %cst_53 {dimension_numbers = #tpu.dot_dimension_numbers<[1], [0], [0], [1], [0, 0, 1, 1], [], []>} : vector<64x8xbf16>, vector<8x32xbf16>, vector<64x32xf32> -> vector<64x32xf32>
    %89 = arith.addf %79, %88 : vector<64x32xf32>
    %c0_54 = arith.constant 0 : index
    %c0_55 = arith.constant 0 : index
    %90 = vector.load %arg6[%c0_54, %c0_55] : memref<1x32xf32, #tpu.memory_space<vmem>>, vector<1x32xf32>
    %91 = vector.broadcast %90 : vector<1x32xf32> to vector<64x32xf32>
    %92 = arith.addf %89, %91 : vector<64x32xf32>
    %cst_56 = arith.constant 0.000000e+00 : f32
    %93 = vector.broadcast %cst_56 : f32 to vector<64x32xf32>
    %94 = arith.maximumf %92, %93 : vector<64x32xf32>
    %95 = arith.truncf %94 : vector<64x32xf32> to vector<64x32xbf16>
    %c0_57 = arith.constant 0 : index
    %c0_58 = arith.constant 0 : index
    %96 = vector.load %arg7[%c0_57, %c0_58] : memref<32x32xbf16, #tpu.memory_space<vmem>>, vector<32x32xbf16>
    %cst_59 = arith.constant dense<0.000000e+00> : vector<64x32xf32>
    %97 = tpu.matmul %95, %96, %cst_59 {dimension_numbers = #tpu.dot_dimension_numbers<[1], [0], [0], [1], [0, 0, 1, 1], [], []>} : vector<64x32xbf16>, vector<32x32xbf16>, vector<64x32xf32> -> vector<64x32xf32>
    %c0_60 = arith.constant 0 : index
    %c0_61 = arith.constant 0 : index
    %98 = vector.load %arg8[%c0_60, %c0_61] : memref<1x32xf32, #tpu.memory_space<vmem>>, vector<1x32xf32>
    %99 = vector.broadcast %98 : vector<1x32xf32> to vector<64x32xf32>
    %100 = arith.addf %97, %99 : vector<64x32xf32>
    %cst_62 = arith.constant 0.000000e+00 : f32
    %101 = vector.broadcast %cst_62 : f32 to vector<64x32xf32>
    %102 = arith.maximumf %100, %101 : vector<64x32xf32>
    %cst_63 = arith.constant 0.000000e+00 : f32
    %103 = vector.broadcast %cst_63 : f32 to vector<9x32xf32>
    %104 = tpu.concatenate %103, %102, %103 in 0 : vector<9x32xf32>, vector<64x32xf32>, vector<9x32xf32> -> vector<82x32xf32>
    %cst_64 = arith.constant 0.000000e+00 : f32
    %105 = vector.broadcast %cst_64 : f32 to vector<64x16xf32>
    %106 = vector.extract_strided_slice %104 {offsets = [0, 0], sizes = [64, 32], strides = [1, 1]} : vector<82x32xf32> to vector<64x32xf32>
    %c0_65 = arith.constant 0 : index
    %c0_66 = arith.constant 0 : index
    %c0_67 = arith.constant 0 : index
    %107 = vector.load %arg2[%c0_65, %c0_66, %c0_67] : memref<3x64x1xf32, #tpu.memory_space<vmem>>, vector<1x64x1xf32>
    %108 = vector.shape_cast %107 : vector<1x64x1xf32> to vector<64x1xf32>
    %109 = vector.broadcast %108 : vector<64x1xf32> to vector<64x32xf32>
    %110 = arith.mulf %106, %109 : vector<64x32xf32>
    %111 = arith.truncf %110 : vector<64x32xf32> to vector<64x32xbf16>
    %c0_68 = arith.constant 0 : index
    %c0_69 = arith.constant 0 : index
    %c0_70 = arith.constant 0 : index
    %112 = vector.load %arg9[%c0_68, %c0_69, %c0_70] : memref<9x32x16xbf16, #tpu.memory_space<vmem>>, vector<1x32x16xbf16>
    %113 = vector.shape_cast %112 : vector<1x32x16xbf16> to vector<32x16xbf16>
    %cst_71 = arith.constant dense<0.000000e+00> : vector<64x16xf32>
    %114 = tpu.matmul %111, %113, %cst_71 {dimension_numbers = #tpu.dot_dimension_numbers<[1], [0], [0], [1], [0, 0, 1, 1], [], []>} : vector<64x32xbf16>, vector<32x16xbf16>, vector<64x16xf32> -> vector<64x16xf32>
    %115 = arith.addf %105, %114 : vector<64x16xf32>
    %116 = vector.extract_strided_slice %104 {offsets = [1, 0], sizes = [64, 32], strides = [1, 1]} : vector<82x32xf32> to vector<64x32xf32>
    %117 = arith.truncf %116 : vector<64x32xf32> to vector<64x32xbf16>
    %c1_72 = arith.constant 1 : index
    %c0_73 = arith.constant 0 : index
    %c0_74 = arith.constant 0 : index
    %118 = vector.load %arg9[%c1_72, %c0_73, %c0_74] : memref<9x32x16xbf16, #tpu.memory_space<vmem>>, vector<1x32x16xbf16>
    %119 = vector.shape_cast %118 : vector<1x32x16xbf16> to vector<32x16xbf16>
    %cst_75 = arith.constant dense<0.000000e+00> : vector<64x16xf32>
    %120 = tpu.matmul %117, %119, %cst_75 {dimension_numbers = #tpu.dot_dimension_numbers<[1], [0], [0], [1], [0, 0, 1, 1], [], []>} : vector<64x32xbf16>, vector<32x16xbf16>, vector<64x16xf32> -> vector<64x16xf32>
    %121 = arith.addf %115, %120 : vector<64x16xf32>
    %122 = vector.extract_strided_slice %104 {offsets = [2, 0], sizes = [64, 32], strides = [1, 1]} : vector<82x32xf32> to vector<64x32xf32>
    %c2_76 = arith.constant 2 : index
    %c0_77 = arith.constant 0 : index
    %c0_78 = arith.constant 0 : index
    %123 = vector.load %arg2[%c2_76, %c0_77, %c0_78] : memref<3x64x1xf32, #tpu.memory_space<vmem>>, vector<1x64x1xf32>
    %124 = vector.shape_cast %123 : vector<1x64x1xf32> to vector<64x1xf32>
    %125 = vector.broadcast %124 : vector<64x1xf32> to vector<64x32xf32>
    %126 = arith.mulf %122, %125 : vector<64x32xf32>
    %127 = arith.truncf %126 : vector<64x32xf32> to vector<64x32xbf16>
    %c2_79 = arith.constant 2 : index
    %c0_80 = arith.constant 0 : index
    %c0_81 = arith.constant 0 : index
    %128 = vector.load %arg9[%c2_79, %c0_80, %c0_81] : memref<9x32x16xbf16, #tpu.memory_space<vmem>>, vector<1x32x16xbf16>
    %129 = vector.shape_cast %128 : vector<1x32x16xbf16> to vector<32x16xbf16>
    %cst_82 = arith.constant dense<0.000000e+00> : vector<64x16xf32>
    %130 = tpu.matmul %127, %129, %cst_82 {dimension_numbers = #tpu.dot_dimension_numbers<[1], [0], [0], [1], [0, 0, 1, 1], [], []>} : vector<64x32xbf16>, vector<32x16xbf16>, vector<64x16xf32> -> vector<64x16xf32>
    %131 = arith.addf %121, %130 : vector<64x16xf32>
    %132 = vector.extract_strided_slice %104 {offsets = [8, 0], sizes = [64, 32], strides = [1, 1]} : vector<82x32xf32> to vector<64x32xf32>
    %c0_83 = arith.constant 0 : index
    %c0_84 = arith.constant 0 : index
    %c0_85 = arith.constant 0 : index
    %133 = vector.load %arg2[%c0_83, %c0_84, %c0_85] : memref<3x64x1xf32, #tpu.memory_space<vmem>>, vector<1x64x1xf32>
    %134 = vector.shape_cast %133 : vector<1x64x1xf32> to vector<64x1xf32>
    %135 = vector.broadcast %134 : vector<64x1xf32> to vector<64x32xf32>
    %136 = arith.mulf %132, %135 : vector<64x32xf32>
    %137 = arith.truncf %136 : vector<64x32xf32> to vector<64x32xbf16>
    %c3_86 = arith.constant 3 : index
    %c0_87 = arith.constant 0 : index
    %c0_88 = arith.constant 0 : index
    %138 = vector.load %arg9[%c3_86, %c0_87, %c0_88] : memref<9x32x16xbf16, #tpu.memory_space<vmem>>, vector<1x32x16xbf16>
    %139 = vector.shape_cast %138 : vector<1x32x16xbf16> to vector<32x16xbf16>
    %cst_89 = arith.constant dense<0.000000e+00> : vector<64x16xf32>
    %140 = tpu.matmul %137, %139, %cst_89 {dimension_numbers = #tpu.dot_dimension_numbers<[1], [0], [0], [1], [0, 0, 1, 1], [], []>} : vector<64x32xbf16>, vector<32x16xbf16>, vector<64x16xf32> -> vector<64x16xf32>
    %141 = arith.addf %131, %140 : vector<64x16xf32>
    %142 = vector.extract_strided_slice %104 {offsets = [9, 0], sizes = [64, 32], strides = [1, 1]} : vector<82x32xf32> to vector<64x32xf32>
    %143 = arith.truncf %142 : vector<64x32xf32> to vector<64x32xbf16>
    %c4_90 = arith.constant 4 : index
    %c0_91 = arith.constant 0 : index
    %c0_92 = arith.constant 0 : index
    %144 = vector.load %arg9[%c4_90, %c0_91, %c0_92] : memref<9x32x16xbf16, #tpu.memory_space<vmem>>, vector<1x32x16xbf16>
    %145 = vector.shape_cast %144 : vector<1x32x16xbf16> to vector<32x16xbf16>
    %cst_93 = arith.constant dense<0.000000e+00> : vector<64x16xf32>
    %146 = tpu.matmul %143, %145, %cst_93 {dimension_numbers = #tpu.dot_dimension_numbers<[1], [0], [0], [1], [0, 0, 1, 1], [], []>} : vector<64x32xbf16>, vector<32x16xbf16>, vector<64x16xf32> -> vector<64x16xf32>
    %147 = arith.addf %141, %146 : vector<64x16xf32>
    %148 = vector.extract_strided_slice %104 {offsets = [10, 0], sizes = [64, 32], strides = [1, 1]} : vector<82x32xf32> to vector<64x32xf32>
    %c2_94 = arith.constant 2 : index
    %c0_95 = arith.constant 0 : index
    %c0_96 = arith.constant 0 : index
    %149 = vector.load %arg2[%c2_94, %c0_95, %c0_96] : memref<3x64x1xf32, #tpu.memory_space<vmem>>, vector<1x64x1xf32>
    %150 = vector.shape_cast %149 : vector<1x64x1xf32> to vector<64x1xf32>
    %151 = vector.broadcast %150 : vector<64x1xf32> to vector<64x32xf32>
    %152 = arith.mulf %148, %151 : vector<64x32xf32>
    %153 = arith.truncf %152 : vector<64x32xf32> to vector<64x32xbf16>
    %c5_97 = arith.constant 5 : index
    %c0_98 = arith.constant 0 : index
    %c0_99 = arith.constant 0 : index
    %154 = vector.load %arg9[%c5_97, %c0_98, %c0_99] : memref<9x32x16xbf16, #tpu.memory_space<vmem>>, vector<1x32x16xbf16>
    %155 = vector.shape_cast %154 : vector<1x32x16xbf16> to vector<32x16xbf16>
    %cst_100 = arith.constant dense<0.000000e+00> : vector<64x16xf32>
    %156 = tpu.matmul %153, %155, %cst_100 {dimension_numbers = #tpu.dot_dimension_numbers<[1], [0], [0], [1], [0, 0, 1, 1], [], []>} : vector<64x32xbf16>, vector<32x16xbf16>, vector<64x16xf32> -> vector<64x16xf32>
    %157 = arith.addf %147, %156 : vector<64x16xf32>
    %158 = vector.extract_strided_slice %104 {offsets = [16, 0], sizes = [64, 32], strides = [1, 1]} : vector<82x32xf32> to vector<64x32xf32>
    %c0_101 = arith.constant 0 : index
    %c0_102 = arith.constant 0 : index
    %c0_103 = arith.constant 0 : index
    %159 = vector.load %arg2[%c0_101, %c0_102, %c0_103] : memref<3x64x1xf32, #tpu.memory_space<vmem>>, vector<1x64x1xf32>
    %160 = vector.shape_cast %159 : vector<1x64x1xf32> to vector<64x1xf32>
    %161 = vector.broadcast %160 : vector<64x1xf32> to vector<64x32xf32>
    %162 = arith.mulf %158, %161 : vector<64x32xf32>
    %163 = arith.truncf %162 : vector<64x32xf32> to vector<64x32xbf16>
    %c6_104 = arith.constant 6 : index
    %c0_105 = arith.constant 0 : index
    %c0_106 = arith.constant 0 : index
    %164 = vector.load %arg9[%c6_104, %c0_105, %c0_106] : memref<9x32x16xbf16, #tpu.memory_space<vmem>>, vector<1x32x16xbf16>
    %165 = vector.shape_cast %164 : vector<1x32x16xbf16> to vector<32x16xbf16>
    %cst_107 = arith.constant dense<0.000000e+00> : vector<64x16xf32>
    %166 = tpu.matmul %163, %165, %cst_107 {dimension_numbers = #tpu.dot_dimension_numbers<[1], [0], [0], [1], [0, 0, 1, 1], [], []>} : vector<64x32xbf16>, vector<32x16xbf16>, vector<64x16xf32> -> vector<64x16xf32>
    %167 = arith.addf %157, %166 : vector<64x16xf32>
    %168 = vector.extract_strided_slice %104 {offsets = [17, 0], sizes = [64, 32], strides = [1, 1]} : vector<82x32xf32> to vector<64x32xf32>
    %169 = arith.truncf %168 : vector<64x32xf32> to vector<64x32xbf16>
    %c7_108 = arith.constant 7 : index
    %c0_109 = arith.constant 0 : index
    %c0_110 = arith.constant 0 : index
    %170 = vector.load %arg9[%c7_108, %c0_109, %c0_110] : memref<9x32x16xbf16, #tpu.memory_space<vmem>>, vector<1x32x16xbf16>
    %171 = vector.shape_cast %170 : vector<1x32x16xbf16> to vector<32x16xbf16>
    %cst_111 = arith.constant dense<0.000000e+00> : vector<64x16xf32>
    %172 = tpu.matmul %169, %171, %cst_111 {dimension_numbers = #tpu.dot_dimension_numbers<[1], [0], [0], [1], [0, 0, 1, 1], [], []>} : vector<64x32xbf16>, vector<32x16xbf16>, vector<64x16xf32> -> vector<64x16xf32>
    %173 = arith.addf %167, %172 : vector<64x16xf32>
    %174 = vector.extract_strided_slice %104 {offsets = [18, 0], sizes = [64, 32], strides = [1, 1]} : vector<82x32xf32> to vector<64x32xf32>
    %c2_112 = arith.constant 2 : index
    %c0_113 = arith.constant 0 : index
    %c0_114 = arith.constant 0 : index
    %175 = vector.load %arg2[%c2_112, %c0_113, %c0_114] : memref<3x64x1xf32, #tpu.memory_space<vmem>>, vector<1x64x1xf32>
    %176 = vector.shape_cast %175 : vector<1x64x1xf32> to vector<64x1xf32>
    %177 = vector.broadcast %176 : vector<64x1xf32> to vector<64x32xf32>
    %178 = arith.mulf %174, %177 : vector<64x32xf32>
    %179 = arith.truncf %178 : vector<64x32xf32> to vector<64x32xbf16>
    %c8_115 = arith.constant 8 : index
    %c0_116 = arith.constant 0 : index
    %c0_117 = arith.constant 0 : index
    %180 = vector.load %arg9[%c8_115, %c0_116, %c0_117] : memref<9x32x16xbf16, #tpu.memory_space<vmem>>, vector<1x32x16xbf16>
    %181 = vector.shape_cast %180 : vector<1x32x16xbf16> to vector<32x16xbf16>
    %cst_118 = arith.constant dense<0.000000e+00> : vector<64x16xf32>
    %182 = tpu.matmul %179, %181, %cst_118 {dimension_numbers = #tpu.dot_dimension_numbers<[1], [0], [0], [1], [0, 0, 1, 1], [], []>} : vector<64x32xbf16>, vector<32x16xbf16>, vector<64x16xf32> -> vector<64x16xf32>
    %183 = arith.addf %173, %182 : vector<64x16xf32>
    %c0_119 = arith.constant 0 : index
    %c0_120 = arith.constant 0 : index
    %184 = vector.load %arg10[%c0_119, %c0_120] : memref<1x16xf32, #tpu.memory_space<vmem>>, vector<1x16xf32>
    %185 = vector.broadcast %184 : vector<1x16xf32> to vector<64x16xf32>
    %186 = arith.addf %183, %185 : vector<64x16xf32>
    %187 = vector.extract_strided_slice %186 {offsets = [0, 0], sizes = [64, 8], strides = [1, 1]} : vector<64x16xf32> to vector<64x8xf32>
    %188 = vector.extract_strided_slice %186 {offsets = [0, 8], sizes = [64, 8], strides = [1, 1]} : vector<64x16xf32> to vector<64x8xf32>
    %cst_121 = arith.constant 2.000000e+00 : f32
    %189 = vector.broadcast %cst_121 : f32 to vector<64x8xf32>
    %190 = arith.addf %188, %189 : vector<64x8xf32>
    %cst_122 = arith.constant 0.000000e+00 : f32
    %191 = vector.broadcast %cst_122 : f32 to vector<64x8xf32>
    %192 = arith.minimumf %190, %191 : vector<64x8xf32>
    %193 = math.absf %190 : vector<64x8xf32>
    %cst_123 = arith.constant 0.000000e+00 : f32
    %194 = vector.broadcast %cst_123 : f32 to vector<64x8xf32>
    %195 = arith.subf %194, %193 : vector<64x8xf32>
    %196 = math.exp %195 : vector<64x8xf32>
    %cst_124 = arith.constant 1.000000e+00 : f32
    %197 = vector.broadcast %cst_124 : f32 to vector<64x8xf32>
    %198 = arith.addf %197, %196 : vector<64x8xf32>
    %199 = math.log %198 : vector<64x8xf32>
    %200 = arith.subf %192, %199 : vector<64x8xf32>
    %201 = math.exp %200 : vector<64x8xf32>
    %202 = arith.addf %8, %187 : vector<64x8xf32>
    %203 = arith.mulf %202, %201 : vector<64x8xf32>
    %204 = tpu.concatenate %7, %203 in 1 : vector<64x8xf32>, vector<64x8xf32> -> vector<64x16xf32>
    %c0_125 = arith.constant 0 : index
    %c0_126 = arith.constant 0 : index
    %c0_127 = arith.constant 0 : index
    %205 = vector.load %arg11[%c0_125, %c0_126, %c0_127] : memref<1x64x16xf32, #tpu.memory_space<vmem>>, vector<1x64x16xf32>
    %206 = vector.shape_cast %205 : vector<1x64x16xf32> to vector<64x16xf32>
    %207 = vector.shape_cast %204 : vector<64x16xf32> to vector<1x64x16xf32>
    tpu.vector_store %arg11[%c0_125, %c0_126, %c0_127], %207 {strides = array<i32>} : memref<1x64x16xf32, #tpu.memory_space<vmem>>, vector<1x64x16xf32>,
    %208 = vector.shape_cast %200 : vector<64x8xf32> to vector<1x64x8xf32>
    %cst_128 = arith.constant dense<0.000000e+00> : vector<1xf32>
    %209 = vector.multi_reduction <add>, %208, %cst_128 [1, 2] : vector<1x64x8xf32> to vector<1xf32>
    %210 = vector.shape_cast %209 : vector<1xf32> to vector<1x1x1xf32>
    %211 = vector.extract %210[0, 0, 0] : f32 from vector<1x1x1xf32>
    %212 = vector.broadcast %211 : f32 to vector<1x1xf32>
    %c0_129 = arith.constant 0 : index
    %c0_130 = arith.constant 0 : index
    %c0_131 = arith.constant 0 : index
    %213 = vector.load %arg12[%c0_129, %c0_130, %c0_131] : memref<1x1x1xf32, #tpu.memory_space<vmem>>, vector<1x1x1xf32>
    %214 = vector.shape_cast %213 : vector<1x1x1xf32> to vector<1x1xf32>
    %215 = vector.shape_cast %212 : vector<1x1xf32> to vector<1x1x1xf32>
    tpu.vector_store %arg12[%c0_129, %c0_130, %c0_131], %215 {strides = array<i32>} : memref<1x1x1xf32, #tpu.memory_space<vmem>>, vector<1x1x1xf32>,
    return
  }
  func.func @transform_0(%arg0: i32) -> (i32, i32, i32) {
    %c0_i32 = arith.constant 0 : i32
    %c0_i32_0 = arith.constant 0 : i32
    %c0_i32_1 = arith.constant 0 : i32
    return %arg0, %c0_i32, %c0_i32_0 : i32, i32, i32
  }
  func.func @transform_1(%arg0: i32) -> (i32, i32, i32) {
    %c0_i32 = arith.constant 0 : i32
    %c0_i32_0 = arith.constant 0 : i32
    %c0_i32_1 = arith.constant 0 : i32
    %c0_i32_2 = arith.constant 0 : i32
    return %c0_i32, %c0_i32_0, %c0_i32_1 : i32, i32, i32
  }
  func.func @transform_2(%arg0: i32) -> (i32, i32) {
    %c0_i32 = arith.constant 0 : i32
    %c0_i32_0 = arith.constant 0 : i32
    %c0_i32_1 = arith.constant 0 : i32
    return %c0_i32, %c0_i32_0 : i32, i32
  }
  func.func @transform_3(%arg0: i32) -> (i32, i32) {
    %c0_i32 = arith.constant 0 : i32
    %c0_i32_0 = arith.constant 0 : i32
    %c0_i32_1 = arith.constant 0 : i32
    return %c0_i32, %c0_i32_0 : i32, i32
  }
  func.func @transform_4(%arg0: i32) -> (i32, i32, i32) {
    %c0_i32 = arith.constant 0 : i32
    %c0_i32_0 = arith.constant 0 : i32
    %c0_i32_1 = arith.constant 0 : i32
    %c0_i32_2 = arith.constant 0 : i32
    return %c0_i32, %c0_i32_0, %c0_i32_1 : i32, i32, i32
  }
  func.func @transform_5(%arg0: i32) -> (i32, i32) {
    %c0_i32 = arith.constant 0 : i32
    %c0_i32_0 = arith.constant 0 : i32
    %c0_i32_1 = arith.constant 0 : i32
    return %c0_i32, %c0_i32_0 : i32, i32
  }
  func.func @transform_6(%arg0: i32) -> (i32, i32) {
    %c0_i32 = arith.constant 0 : i32
    %c0_i32_0 = arith.constant 0 : i32
    %c0_i32_1 = arith.constant 0 : i32
    return %c0_i32, %c0_i32_0 : i32, i32
  }
  func.func @transform_7(%arg0: i32) -> (i32, i32) {
    %c0_i32 = arith.constant 0 : i32
    %c0_i32_0 = arith.constant 0 : i32
    %c0_i32_1 = arith.constant 0 : i32
    return %c0_i32, %c0_i32_0 : i32, i32
  }
  func.func @transform_8(%arg0: i32) -> (i32, i32, i32) {
    %c0_i32 = arith.constant 0 : i32
    %c0_i32_0 = arith.constant 0 : i32
    %c0_i32_1 = arith.constant 0 : i32
    %c0_i32_2 = arith.constant 0 : i32
    return %c0_i32, %c0_i32_0, %c0_i32_1 : i32, i32, i32
  }
  func.func @transform_9(%arg0: i32) -> (i32, i32) {
    %c0_i32 = arith.constant 0 : i32
    %c0_i32_0 = arith.constant 0 : i32
    %c0_i32_1 = arith.constant 0 : i32
    return %c0_i32, %c0_i32_0 : i32, i32
  }
  func.func @transform_10(%arg0: i32) -> (i32, i32, i32) {
    %c0_i32 = arith.constant 0 : i32
    %c0_i32_0 = arith.constant 0 : i32
    %c0_i32_1 = arith.constant 0 : i32
    return %arg0, %c0_i32, %c0_i32_0 : i32, i32, i32
  }
  func.func @transform_11(%arg0: i32) -> (i32, i32, i32) {
    %c0_i32 = arith.constant 0 : i32
    %c0_i32_0 = arith.constant 0 : i32
    %c0_i32_1 = arith.constant 0 : i32
    return %arg0, %c0_i32, %c0_i32_0 : i32, i32, i32
  }
}

module attributes {stable_mosaic.version = 11 : i64} {
  func.func @kernel(%arg0: i32, %arg1: memref<1x16x32xf32, #tpu.memory_space<vmem>>, %arg2: memref<3x16x1xf32, #tpu.memory_space<vmem>>, %arg3: memref<32x32xf32, #tpu.memory_space<vmem>>, %arg4: memref<1x32xf32, #tpu.memory_space<vmem>>, %arg5: memref<9x16x32xbf16, #tpu.memory_space<vmem>>, %arg6: memref<1x32xf32, #tpu.memory_space<vmem>>, %arg7: memref<32x32xbf16, #tpu.memory_space<vmem>>, %arg8: memref<1x32xf32, #tpu.memory_space<vmem>>, %arg9: memref<9x32x32xbf16, #tpu.memory_space<vmem>>, %arg10: memref<1x32xf32, #tpu.memory_space<vmem>>, %arg11: memref<1x16x32xf32, #tpu.memory_space<vmem>>, %arg12: memref<1x1x1xf32, #tpu.memory_space<vmem>>) attributes {dimension_semantics = [#tpu.dimension_semantics<parallel>], iteration_bounds = array<i64: 2>, scalar_prefetch = 0 : i64, scratch_operands = 0 : i64, tpu.core_type = #tpu.core_type<tc>, window_params = [{transform_indices = @transform_0, window_bounds = array<i64: 1, 16, 32>}, {pipeline_mode = #tpu.pipeline_mode<synchronous>, transform_indices = @transform_1, window_bounds = array<i64: 3, 16, 1>}, {pipeline_mode = #tpu.pipeline_mode<synchronous>, transform_indices = @transform_2, window_bounds = array<i64: 32, 32>}, {pipeline_mode = #tpu.pipeline_mode<synchronous>, transform_indices = @transform_3, window_bounds = array<i64: 1, 32>}, {pipeline_mode = #tpu.pipeline_mode<synchronous>, transform_indices = @transform_4, window_bounds = array<i64: 9, 16, 32>}, {pipeline_mode = #tpu.pipeline_mode<synchronous>, transform_indices = @transform_5, window_bounds = array<i64: 1, 32>}, {pipeline_mode = #tpu.pipeline_mode<synchronous>, transform_indices = @transform_6, window_bounds = array<i64: 32, 32>}, {pipeline_mode = #tpu.pipeline_mode<synchronous>, transform_indices = @transform_7, window_bounds = array<i64: 1, 32>}, {pipeline_mode = #tpu.pipeline_mode<synchronous>, transform_indices = @transform_8, window_bounds = array<i64: 9, 32, 32>}, {pipeline_mode = #tpu.pipeline_mode<synchronous>, transform_indices = @transform_9, window_bounds = array<i64: 1, 32>}, {transform_indices = @transform_10, window_bounds = array<i64: 1, 16, 32>}, {transform_indices = @transform_11, window_bounds = array<i64: 1, 1, 1>}]} {
    %c0 = arith.constant 0 : index
    %c0_0 = arith.constant 0 : index
    %c0_1 = arith.constant 0 : index
    %0 = vector.load %arg1[%c0, %c0_0, %c0_1] : memref<1x16x32xf32, #tpu.memory_space<vmem>>, vector<1x16x32xf32>
    %1 = vector.shape_cast %0 : vector<1x16x32xf32> to vector<16x32xf32>
    %c0_2 = arith.constant 0 : index
    %c0_3 = arith.constant 0 : index
    %2 = vector.load %arg3[%c0_2, %c0_3] : memref<32x32xf32, #tpu.memory_space<vmem>>, vector<32x32xf32>
    %cst = arith.constant dense<0.000000e+00> : vector<16x32xf32>
    %3 = tpu.matmul %1, %2, %cst {dimension_numbers = #tpu.dot_dimension_numbers<[1], [0], [0], [1], [0, 0, 1, 1], [], []>} : vector<16x32xf32>, vector<32x32xf32>, vector<16x32xf32> -> vector<16x32xf32>
    %c0_4 = arith.constant 0 : index
    %c0_5 = arith.constant 0 : index
    %4 = vector.load %arg4[%c0_4, %c0_5] : memref<1x32xf32, #tpu.memory_space<vmem>>, vector<1x32xf32>
    %5 = vector.broadcast %4 : vector<1x32xf32> to vector<16x32xf32>
    %6 = arith.addf %3, %5 : vector<16x32xf32>
    %7 = vector.extract_strided_slice %6 {offsets = [0, 0], sizes = [16, 16], strides = [1, 1]} : vector<16x32xf32> to vector<16x16xf32>
    %8 = vector.extract_strided_slice %6 {offsets = [0, 16], sizes = [16, 16], strides = [1, 1]} : vector<16x32xf32> to vector<16x16xf32>
    %cst_6 = arith.constant 0.000000e+00 : f32
    %9 = vector.broadcast %cst_6 : f32 to vector<5x16xf32>
    %10 = tpu.concatenate %9, %7, %9 in 0 : vector<5x16xf32>, vector<16x16xf32>, vector<5x16xf32> -> vector<26x16xf32>
    %cst_7 = arith.constant 0.000000e+00 : f32
    %11 = vector.broadcast %cst_7 : f32 to vector<16x32xf32>
    %12 = vector.extract_strided_slice %10 {offsets = [0, 0], sizes = [16, 16], strides = [1, 1]} : vector<26x16xf32> to vector<16x16xf32>
    %c0_8 = arith.constant 0 : index
    %c0_9 = arith.constant 0 : index
    %c0_10 = arith.constant 0 : index
    %13 = vector.load %arg2[%c0_8, %c0_9, %c0_10] : memref<3x16x1xf32, #tpu.memory_space<vmem>>, vector<1x16x1xf32>
    %14 = vector.shape_cast %13 : vector<1x16x1xf32> to vector<16x1xf32>
    %15 = vector.broadcast %14 : vector<16x1xf32> to vector<16x16xf32>
    %16 = arith.mulf %12, %15 : vector<16x16xf32>
    %17 = arith.truncf %16 : vector<16x16xf32> to vector<16x16xbf16>
    %c0_11 = arith.constant 0 : index
    %c0_12 = arith.constant 0 : index
    %c0_13 = arith.constant 0 : index
    %18 = vector.load %arg5[%c0_11, %c0_12, %c0_13] : memref<9x16x32xbf16, #tpu.memory_space<vmem>>, vector<1x16x32xbf16>
    %19 = vector.shape_cast %18 : vector<1x16x32xbf16> to vector<16x32xbf16>
    %cst_14 = arith.constant dense<0.000000e+00> : vector<16x32xf32>
    %20 = tpu.matmul %17, %19, %cst_14 {dimension_numbers = #tpu.dot_dimension_numbers<[1], [0], [0], [1], [0, 0, 1, 1], [], []>} : vector<16x16xbf16>, vector<16x32xbf16>, vector<16x32xf32> -> vector<16x32xf32>
    %21 = arith.addf %11, %20 : vector<16x32xf32>
    %22 = vector.extract_strided_slice %10 {offsets = [1, 0], sizes = [16, 16], strides = [1, 1]} : vector<26x16xf32> to vector<16x16xf32>
    %23 = arith.truncf %22 : vector<16x16xf32> to vector<16x16xbf16>
    %c1 = arith.constant 1 : index
    %c0_15 = arith.constant 0 : index
    %c0_16 = arith.constant 0 : index
    %24 = vector.load %arg5[%c1, %c0_15, %c0_16] : memref<9x16x32xbf16, #tpu.memory_space<vmem>>, vector<1x16x32xbf16>
    %25 = vector.shape_cast %24 : vector<1x16x32xbf16> to vector<16x32xbf16>
    %cst_17 = arith.constant dense<0.000000e+00> : vector<16x32xf32>
    %26 = tpu.matmul %23, %25, %cst_17 {dimension_numbers = #tpu.dot_dimension_numbers<[1], [0], [0], [1], [0, 0, 1, 1], [], []>} : vector<16x16xbf16>, vector<16x32xbf16>, vector<16x32xf32> -> vector<16x32xf32>
    %27 = arith.addf %21, %26 : vector<16x32xf32>
    %28 = vector.extract_strided_slice %10 {offsets = [2, 0], sizes = [16, 16], strides = [1, 1]} : vector<26x16xf32> to vector<16x16xf32>
    %c2 = arith.constant 2 : index
    %c0_18 = arith.constant 0 : index
    %c0_19 = arith.constant 0 : index
    %29 = vector.load %arg2[%c2, %c0_18, %c0_19] : memref<3x16x1xf32, #tpu.memory_space<vmem>>, vector<1x16x1xf32>
    %30 = vector.shape_cast %29 : vector<1x16x1xf32> to vector<16x1xf32>
    %31 = vector.broadcast %30 : vector<16x1xf32> to vector<16x16xf32>
    %32 = arith.mulf %28, %31 : vector<16x16xf32>
    %33 = arith.truncf %32 : vector<16x16xf32> to vector<16x16xbf16>
    %c2_20 = arith.constant 2 : index
    %c0_21 = arith.constant 0 : index
    %c0_22 = arith.constant 0 : index
    %34 = vector.load %arg5[%c2_20, %c0_21, %c0_22] : memref<9x16x32xbf16, #tpu.memory_space<vmem>>, vector<1x16x32xbf16>
    %35 = vector.shape_cast %34 : vector<1x16x32xbf16> to vector<16x32xbf16>
    %cst_23 = arith.constant dense<0.000000e+00> : vector<16x32xf32>
    %36 = tpu.matmul %33, %35, %cst_23 {dimension_numbers = #tpu.dot_dimension_numbers<[1], [0], [0], [1], [0, 0, 1, 1], [], []>} : vector<16x16xbf16>, vector<16x32xbf16>, vector<16x32xf32> -> vector<16x32xf32>
    %37 = arith.addf %27, %36 : vector<16x32xf32>
    %38 = vector.extract_strided_slice %10 {offsets = [4, 0], sizes = [16, 16], strides = [1, 1]} : vector<26x16xf32> to vector<16x16xf32>
    %c0_24 = arith.constant 0 : index
    %c0_25 = arith.constant 0 : index
    %c0_26 = arith.constant 0 : index
    %39 = vector.load %arg2[%c0_24, %c0_25, %c0_26] : memref<3x16x1xf32, #tpu.memory_space<vmem>>, vector<1x16x1xf32>
    %40 = vector.shape_cast %39 : vector<1x16x1xf32> to vector<16x1xf32>
    %41 = vector.broadcast %40 : vector<16x1xf32> to vector<16x16xf32>
    %42 = arith.mulf %38, %41 : vector<16x16xf32>
    %43 = arith.truncf %42 : vector<16x16xf32> to vector<16x16xbf16>
    %c3 = arith.constant 3 : index
    %c0_27 = arith.constant 0 : index
    %c0_28 = arith.constant 0 : index
    %44 = vector.load %arg5[%c3, %c0_27, %c0_28] : memref<9x16x32xbf16, #tpu.memory_space<vmem>>, vector<1x16x32xbf16>
    %45 = vector.shape_cast %44 : vector<1x16x32xbf16> to vector<16x32xbf16>
    %cst_29 = arith.constant dense<0.000000e+00> : vector<16x32xf32>
    %46 = tpu.matmul %43, %45, %cst_29 {dimension_numbers = #tpu.dot_dimension_numbers<[1], [0], [0], [1], [0, 0, 1, 1], [], []>} : vector<16x16xbf16>, vector<16x32xbf16>, vector<16x32xf32> -> vector<16x32xf32>
    %47 = arith.addf %37, %46 : vector<16x32xf32>
    %48 = vector.extract_strided_slice %10 {offsets = [5, 0], sizes = [16, 16], strides = [1, 1]} : vector<26x16xf32> to vector<16x16xf32>
    %49 = arith.truncf %48 : vector<16x16xf32> to vector<16x16xbf16>
    %c4 = arith.constant 4 : index
    %c0_30 = arith.constant 0 : index
    %c0_31 = arith.constant 0 : index
    %50 = vector.load %arg5[%c4, %c0_30, %c0_31] : memref<9x16x32xbf16, #tpu.memory_space<vmem>>, vector<1x16x32xbf16>
    %51 = vector.shape_cast %50 : vector<1x16x32xbf16> to vector<16x32xbf16>
    %cst_32 = arith.constant dense<0.000000e+00> : vector<16x32xf32>
    %52 = tpu.matmul %49, %51, %cst_32 {dimension_numbers = #tpu.dot_dimension_numbers<[1], [0], [0], [1], [0, 0, 1, 1], [], []>} : vector<16x16xbf16>, vector<16x32xbf16>, vector<16x32xf32> -> vector<16x32xf32>
    %53 = arith.addf %47, %52 : vector<16x32xf32>
    %54 = vector.extract_strided_slice %10 {offsets = [6, 0], sizes = [16, 16], strides = [1, 1]} : vector<26x16xf32> to vector<16x16xf32>
    %c2_33 = arith.constant 2 : index
    %c0_34 = arith.constant 0 : index
    %c0_35 = arith.constant 0 : index
    %55 = vector.load %arg2[%c2_33, %c0_34, %c0_35] : memref<3x16x1xf32, #tpu.memory_space<vmem>>, vector<1x16x1xf32>
    %56 = vector.shape_cast %55 : vector<1x16x1xf32> to vector<16x1xf32>
    %57 = vector.broadcast %56 : vector<16x1xf32> to vector<16x16xf32>
    %58 = arith.mulf %54, %57 : vector<16x16xf32>
    %59 = arith.truncf %58 : vector<16x16xf32> to vector<16x16xbf16>
    %c5 = arith.constant 5 : index
    %c0_36 = arith.constant 0 : index
    %c0_37 = arith.constant 0 : index
    %60 = vector.load %arg5[%c5, %c0_36, %c0_37] : memref<9x16x32xbf16, #tpu.memory_space<vmem>>, vector<1x16x32xbf16>
    %61 = vector.shape_cast %60 : vector<1x16x32xbf16> to vector<16x32xbf16>
    %cst_38 = arith.constant dense<0.000000e+00> : vector<16x32xf32>
    %62 = tpu.matmul %59, %61, %cst_38 {dimension_numbers = #tpu.dot_dimension_numbers<[1], [0], [0], [1], [0, 0, 1, 1], [], []>} : vector<16x16xbf16>, vector<16x32xbf16>, vector<16x32xf32> -> vector<16x32xf32>
    %63 = arith.addf %53, %62 : vector<16x32xf32>
    %64 = vector.extract_strided_slice %10 {offsets = [8, 0], sizes = [16, 16], strides = [1, 1]} : vector<26x16xf32> to vector<16x16xf32>
    %c0_39 = arith.constant 0 : index
    %c0_40 = arith.constant 0 : index
    %c0_41 = arith.constant 0 : index
    %65 = vector.load %arg2[%c0_39, %c0_40, %c0_41] : memref<3x16x1xf32, #tpu.memory_space<vmem>>, vector<1x16x1xf32>
    %66 = vector.shape_cast %65 : vector<1x16x1xf32> to vector<16x1xf32>
    %67 = vector.broadcast %66 : vector<16x1xf32> to vector<16x16xf32>
    %68 = arith.mulf %64, %67 : vector<16x16xf32>
    %69 = arith.truncf %68 : vector<16x16xf32> to vector<16x16xbf16>
    %c6 = arith.constant 6 : index
    %c0_42 = arith.constant 0 : index
    %c0_43 = arith.constant 0 : index
    %70 = vector.load %arg5[%c6, %c0_42, %c0_43] : memref<9x16x32xbf16, #tpu.memory_space<vmem>>, vector<1x16x32xbf16>
    %71 = vector.shape_cast %70 : vector<1x16x32xbf16> to vector<16x32xbf16>
    %cst_44 = arith.constant dense<0.000000e+00> : vector<16x32xf32>
    %72 = tpu.matmul %69, %71, %cst_44 {dimension_numbers = #tpu.dot_dimension_numbers<[1], [0], [0], [1], [0, 0, 1, 1], [], []>} : vector<16x16xbf16>, vector<16x32xbf16>, vector<16x32xf32> -> vector<16x32xf32>
    %73 = arith.addf %63, %72 : vector<16x32xf32>
    %74 = vector.extract_strided_slice %10 {offsets = [9, 0], sizes = [16, 16], strides = [1, 1]} : vector<26x16xf32> to vector<16x16xf32>
    %75 = arith.truncf %74 : vector<16x16xf32> to vector<16x16xbf16>
    %c7 = arith.constant 7 : index
    %c0_45 = arith.constant 0 : index
    %c0_46 = arith.constant 0 : index
    %76 = vector.load %arg5[%c7, %c0_45, %c0_46] : memref<9x16x32xbf16, #tpu.memory_space<vmem>>, vector<1x16x32xbf16>
    %77 = vector.shape_cast %76 : vector<1x16x32xbf16> to vector<16x32xbf16>
    %cst_47 = arith.constant dense<0.000000e+00> : vector<16x32xf32>
    %78 = tpu.matmul %75, %77, %cst_47 {dimension_numbers = #tpu.dot_dimension_numbers<[1], [0], [0], [1], [0, 0, 1, 1], [], []>} : vector<16x16xbf16>, vector<16x32xbf16>, vector<16x32xf32> -> vector<16x32xf32>
    %79 = arith.addf %73, %78 : vector<16x32xf32>
    %80 = vector.extract_strided_slice %10 {offsets = [10, 0], sizes = [16, 16], strides = [1, 1]} : vector<26x16xf32> to vector<16x16xf32>
    %c2_48 = arith.constant 2 : index
    %c0_49 = arith.constant 0 : index
    %c0_50 = arith.constant 0 : index
    %81 = vector.load %arg2[%c2_48, %c0_49, %c0_50] : memref<3x16x1xf32, #tpu.memory_space<vmem>>, vector<1x16x1xf32>
    %82 = vector.shape_cast %81 : vector<1x16x1xf32> to vector<16x1xf32>
    %83 = vector.broadcast %82 : vector<16x1xf32> to vector<16x16xf32>
    %84 = arith.mulf %80, %83 : vector<16x16xf32>
    %85 = arith.truncf %84 : vector<16x16xf32> to vector<16x16xbf16>
    %c8 = arith.constant 8 : index
    %c0_51 = arith.constant 0 : index
    %c0_52 = arith.constant 0 : index
    %86 = vector.load %arg5[%c8, %c0_51, %c0_52] : memref<9x16x32xbf16, #tpu.memory_space<vmem>>, vector<1x16x32xbf16>
    %87 = vector.shape_cast %86 : vector<1x16x32xbf16> to vector<16x32xbf16>
    %cst_53 = arith.constant dense<0.000000e+00> : vector<16x32xf32>
    %88 = tpu.matmul %85, %87, %cst_53 {dimension_numbers = #tpu.dot_dimension_numbers<[1], [0], [0], [1], [0, 0, 1, 1], [], []>} : vector<16x16xbf16>, vector<16x32xbf16>, vector<16x32xf32> -> vector<16x32xf32>
    %89 = arith.addf %79, %88 : vector<16x32xf32>
    %c0_54 = arith.constant 0 : index
    %c0_55 = arith.constant 0 : index
    %90 = vector.load %arg6[%c0_54, %c0_55] : memref<1x32xf32, #tpu.memory_space<vmem>>, vector<1x32xf32>
    %91 = vector.broadcast %90 : vector<1x32xf32> to vector<16x32xf32>
    %92 = arith.addf %89, %91 : vector<16x32xf32>
    %cst_56 = arith.constant 0.000000e+00 : f32
    %93 = vector.broadcast %cst_56 : f32 to vector<16x32xf32>
    %94 = arith.maximumf %92, %93 : vector<16x32xf32>
    %95 = arith.truncf %94 : vector<16x32xf32> to vector<16x32xbf16>
    %c0_57 = arith.constant 0 : index
    %c0_58 = arith.constant 0 : index
    %96 = vector.load %arg7[%c0_57, %c0_58] : memref<32x32xbf16, #tpu.memory_space<vmem>>, vector<32x32xbf16>
    %cst_59 = arith.constant dense<0.000000e+00> : vector<16x32xf32>
    %97 = tpu.matmul %95, %96, %cst_59 {dimension_numbers = #tpu.dot_dimension_numbers<[1], [0], [0], [1], [0, 0, 1, 1], [], []>} : vector<16x32xbf16>, vector<32x32xbf16>, vector<16x32xf32> -> vector<16x32xf32>
    %c0_60 = arith.constant 0 : index
    %c0_61 = arith.constant 0 : index
    %98 = vector.load %arg8[%c0_60, %c0_61] : memref<1x32xf32, #tpu.memory_space<vmem>>, vector<1x32xf32>
    %99 = vector.broadcast %98 : vector<1x32xf32> to vector<16x32xf32>
    %100 = arith.addf %97, %99 : vector<16x32xf32>
    %cst_62 = arith.constant 0.000000e+00 : f32
    %101 = vector.broadcast %cst_62 : f32 to vector<16x32xf32>
    %102 = arith.maximumf %100, %101 : vector<16x32xf32>
    %cst_63 = arith.constant 0.000000e+00 : f32
    %103 = vector.broadcast %cst_63 : f32 to vector<5x32xf32>
    %104 = tpu.concatenate %103, %102, %103 in 0 : vector<5x32xf32>, vector<16x32xf32>, vector<5x32xf32> -> vector<26x32xf32>
    %cst_64 = arith.constant 0.000000e+00 : f32
    %105 = vector.broadcast %cst_64 : f32 to vector<16x32xf32>
    %106 = vector.extract_strided_slice %104 {offsets = [0, 0], sizes = [16, 32], strides = [1, 1]} : vector<26x32xf32> to vector<16x32xf32>
    %c0_65 = arith.constant 0 : index
    %c0_66 = arith.constant 0 : index
    %c0_67 = arith.constant 0 : index
    %107 = vector.load %arg2[%c0_65, %c0_66, %c0_67] : memref<3x16x1xf32, #tpu.memory_space<vmem>>, vector<1x16x1xf32>
    %108 = vector.shape_cast %107 : vector<1x16x1xf32> to vector<16x1xf32>
    %109 = vector.broadcast %108 : vector<16x1xf32> to vector<16x32xf32>
    %110 = arith.mulf %106, %109 : vector<16x32xf32>
    %111 = arith.truncf %110 : vector<16x32xf32> to vector<16x32xbf16>
    %c0_68 = arith.constant 0 : index
    %c0_69 = arith.constant 0 : index
    %c0_70 = arith.constant 0 : index
    %112 = vector.load %arg9[%c0_68, %c0_69, %c0_70] : memref<9x32x32xbf16, #tpu.memory_space<vmem>>, vector<1x32x32xbf16>
    %113 = vector.shape_cast %112 : vector<1x32x32xbf16> to vector<32x32xbf16>
    %cst_71 = arith.constant dense<0.000000e+00> : vector<16x32xf32>
    %114 = tpu.matmul %111, %113, %cst_71 {dimension_numbers = #tpu.dot_dimension_numbers<[1], [0], [0], [1], [0, 0, 1, 1], [], []>} : vector<16x32xbf16>, vector<32x32xbf16>, vector<16x32xf32> -> vector<16x32xf32>
    %115 = arith.addf %105, %114 : vector<16x32xf32>
    %116 = vector.extract_strided_slice %104 {offsets = [1, 0], sizes = [16, 32], strides = [1, 1]} : vector<26x32xf32> to vector<16x32xf32>
    %117 = arith.truncf %116 : vector<16x32xf32> to vector<16x32xbf16>
    %c1_72 = arith.constant 1 : index
    %c0_73 = arith.constant 0 : index
    %c0_74 = arith.constant 0 : index
    %118 = vector.load %arg9[%c1_72, %c0_73, %c0_74] : memref<9x32x32xbf16, #tpu.memory_space<vmem>>, vector<1x32x32xbf16>
    %119 = vector.shape_cast %118 : vector<1x32x32xbf16> to vector<32x32xbf16>
    %cst_75 = arith.constant dense<0.000000e+00> : vector<16x32xf32>
    %120 = tpu.matmul %117, %119, %cst_75 {dimension_numbers = #tpu.dot_dimension_numbers<[1], [0], [0], [1], [0, 0, 1, 1], [], []>} : vector<16x32xbf16>, vector<32x32xbf16>, vector<16x32xf32> -> vector<16x32xf32>
    %121 = arith.addf %115, %120 : vector<16x32xf32>
    %122 = vector.extract_strided_slice %104 {offsets = [2, 0], sizes = [16, 32], strides = [1, 1]} : vector<26x32xf32> to vector<16x32xf32>
    %c2_76 = arith.constant 2 : index
    %c0_77 = arith.constant 0 : index
    %c0_78 = arith.constant 0 : index
    %123 = vector.load %arg2[%c2_76, %c0_77, %c0_78] : memref<3x16x1xf32, #tpu.memory_space<vmem>>, vector<1x16x1xf32>
    %124 = vector.shape_cast %123 : vector<1x16x1xf32> to vector<16x1xf32>
    %125 = vector.broadcast %124 : vector<16x1xf32> to vector<16x32xf32>
    %126 = arith.mulf %122, %125 : vector<16x32xf32>
    %127 = arith.truncf %126 : vector<16x32xf32> to vector<16x32xbf16>
    %c2_79 = arith.constant 2 : index
    %c0_80 = arith.constant 0 : index
    %c0_81 = arith.constant 0 : index
    %128 = vector.load %arg9[%c2_79, %c0_80, %c0_81] : memref<9x32x32xbf16, #tpu.memory_space<vmem>>, vector<1x32x32xbf16>
    %129 = vector.shape_cast %128 : vector<1x32x32xbf16> to vector<32x32xbf16>
    %cst_82 = arith.constant dense<0.000000e+00> : vector<16x32xf32>
    %130 = tpu.matmul %127, %129, %cst_82 {dimension_numbers = #tpu.dot_dimension_numbers<[1], [0], [0], [1], [0, 0, 1, 1], [], []>} : vector<16x32xbf16>, vector<32x32xbf16>, vector<16x32xf32> -> vector<16x32xf32>
    %131 = arith.addf %121, %130 : vector<16x32xf32>
    %132 = vector.extract_strided_slice %104 {offsets = [4, 0], sizes = [16, 32], strides = [1, 1]} : vector<26x32xf32> to vector<16x32xf32>
    %c0_83 = arith.constant 0 : index
    %c0_84 = arith.constant 0 : index
    %c0_85 = arith.constant 0 : index
    %133 = vector.load %arg2[%c0_83, %c0_84, %c0_85] : memref<3x16x1xf32, #tpu.memory_space<vmem>>, vector<1x16x1xf32>
    %134 = vector.shape_cast %133 : vector<1x16x1xf32> to vector<16x1xf32>
    %135 = vector.broadcast %134 : vector<16x1xf32> to vector<16x32xf32>
    %136 = arith.mulf %132, %135 : vector<16x32xf32>
    %137 = arith.truncf %136 : vector<16x32xf32> to vector<16x32xbf16>
    %c3_86 = arith.constant 3 : index
    %c0_87 = arith.constant 0 : index
    %c0_88 = arith.constant 0 : index
    %138 = vector.load %arg9[%c3_86, %c0_87, %c0_88] : memref<9x32x32xbf16, #tpu.memory_space<vmem>>, vector<1x32x32xbf16>
    %139 = vector.shape_cast %138 : vector<1x32x32xbf16> to vector<32x32xbf16>
    %cst_89 = arith.constant dense<0.000000e+00> : vector<16x32xf32>
    %140 = tpu.matmul %137, %139, %cst_89 {dimension_numbers = #tpu.dot_dimension_numbers<[1], [0], [0], [1], [0, 0, 1, 1], [], []>} : vector<16x32xbf16>, vector<32x32xbf16>, vector<16x32xf32> -> vector<16x32xf32>
    %141 = arith.addf %131, %140 : vector<16x32xf32>
    %142 = vector.extract_strided_slice %104 {offsets = [5, 0], sizes = [16, 32], strides = [1, 1]} : vector<26x32xf32> to vector<16x32xf32>
    %143 = arith.truncf %142 : vector<16x32xf32> to vector<16x32xbf16>
    %c4_90 = arith.constant 4 : index
    %c0_91 = arith.constant 0 : index
    %c0_92 = arith.constant 0 : index
    %144 = vector.load %arg9[%c4_90, %c0_91, %c0_92] : memref<9x32x32xbf16, #tpu.memory_space<vmem>>, vector<1x32x32xbf16>
    %145 = vector.shape_cast %144 : vector<1x32x32xbf16> to vector<32x32xbf16>
    %cst_93 = arith.constant dense<0.000000e+00> : vector<16x32xf32>
    %146 = tpu.matmul %143, %145, %cst_93 {dimension_numbers = #tpu.dot_dimension_numbers<[1], [0], [0], [1], [0, 0, 1, 1], [], []>} : vector<16x32xbf16>, vector<32x32xbf16>, vector<16x32xf32> -> vector<16x32xf32>
    %147 = arith.addf %141, %146 : vector<16x32xf32>
    %148 = vector.extract_strided_slice %104 {offsets = [6, 0], sizes = [16, 32], strides = [1, 1]} : vector<26x32xf32> to vector<16x32xf32>
    %c2_94 = arith.constant 2 : index
    %c0_95 = arith.constant 0 : index
    %c0_96 = arith.constant 0 : index
    %149 = vector.load %arg2[%c2_94, %c0_95, %c0_96] : memref<3x16x1xf32, #tpu.memory_space<vmem>>, vector<1x16x1xf32>
    %150 = vector.shape_cast %149 : vector<1x16x1xf32> to vector<16x1xf32>
    %151 = vector.broadcast %150 : vector<16x1xf32> to vector<16x32xf32>
    %152 = arith.mulf %148, %151 : vector<16x32xf32>
    %153 = arith.truncf %152 : vector<16x32xf32> to vector<16x32xbf16>
    %c5_97 = arith.constant 5 : index
    %c0_98 = arith.constant 0 : index
    %c0_99 = arith.constant 0 : index
    %154 = vector.load %arg9[%c5_97, %c0_98, %c0_99] : memref<9x32x32xbf16, #tpu.memory_space<vmem>>, vector<1x32x32xbf16>
    %155 = vector.shape_cast %154 : vector<1x32x32xbf16> to vector<32x32xbf16>
    %cst_100 = arith.constant dense<0.000000e+00> : vector<16x32xf32>
    %156 = tpu.matmul %153, %155, %cst_100 {dimension_numbers = #tpu.dot_dimension_numbers<[1], [0], [0], [1], [0, 0, 1, 1], [], []>} : vector<16x32xbf16>, vector<32x32xbf16>, vector<16x32xf32> -> vector<16x32xf32>
    %157 = arith.addf %147, %156 : vector<16x32xf32>
    %158 = vector.extract_strided_slice %104 {offsets = [8, 0], sizes = [16, 32], strides = [1, 1]} : vector<26x32xf32> to vector<16x32xf32>
    %c0_101 = arith.constant 0 : index
    %c0_102 = arith.constant 0 : index
    %c0_103 = arith.constant 0 : index
    %159 = vector.load %arg2[%c0_101, %c0_102, %c0_103] : memref<3x16x1xf32, #tpu.memory_space<vmem>>, vector<1x16x1xf32>
    %160 = vector.shape_cast %159 : vector<1x16x1xf32> to vector<16x1xf32>
    %161 = vector.broadcast %160 : vector<16x1xf32> to vector<16x32xf32>
    %162 = arith.mulf %158, %161 : vector<16x32xf32>
    %163 = arith.truncf %162 : vector<16x32xf32> to vector<16x32xbf16>
    %c6_104 = arith.constant 6 : index
    %c0_105 = arith.constant 0 : index
    %c0_106 = arith.constant 0 : index
    %164 = vector.load %arg9[%c6_104, %c0_105, %c0_106] : memref<9x32x32xbf16, #tpu.memory_space<vmem>>, vector<1x32x32xbf16>
    %165 = vector.shape_cast %164 : vector<1x32x32xbf16> to vector<32x32xbf16>
    %cst_107 = arith.constant dense<0.000000e+00> : vector<16x32xf32>
    %166 = tpu.matmul %163, %165, %cst_107 {dimension_numbers = #tpu.dot_dimension_numbers<[1], [0], [0], [1], [0, 0, 1, 1], [], []>} : vector<16x32xbf16>, vector<32x32xbf16>, vector<16x32xf32> -> vector<16x32xf32>
    %167 = arith.addf %157, %166 : vector<16x32xf32>
    %168 = vector.extract_strided_slice %104 {offsets = [9, 0], sizes = [16, 32], strides = [1, 1]} : vector<26x32xf32> to vector<16x32xf32>
    %169 = arith.truncf %168 : vector<16x32xf32> to vector<16x32xbf16>
    %c7_108 = arith.constant 7 : index
    %c0_109 = arith.constant 0 : index
    %c0_110 = arith.constant 0 : index
    %170 = vector.load %arg9[%c7_108, %c0_109, %c0_110] : memref<9x32x32xbf16, #tpu.memory_space<vmem>>, vector<1x32x32xbf16>
    %171 = vector.shape_cast %170 : vector<1x32x32xbf16> to vector<32x32xbf16>
    %cst_111 = arith.constant dense<0.000000e+00> : vector<16x32xf32>
    %172 = tpu.matmul %169, %171, %cst_111 {dimension_numbers = #tpu.dot_dimension_numbers<[1], [0], [0], [1], [0, 0, 1, 1], [], []>} : vector<16x32xbf16>, vector<32x32xbf16>, vector<16x32xf32> -> vector<16x32xf32>
    %173 = arith.addf %167, %172 : vector<16x32xf32>
    %174 = vector.extract_strided_slice %104 {offsets = [10, 0], sizes = [16, 32], strides = [1, 1]} : vector<26x32xf32> to vector<16x32xf32>
    %c2_112 = arith.constant 2 : index
    %c0_113 = arith.constant 0 : index
    %c0_114 = arith.constant 0 : index
    %175 = vector.load %arg2[%c2_112, %c0_113, %c0_114] : memref<3x16x1xf32, #tpu.memory_space<vmem>>, vector<1x16x1xf32>
    %176 = vector.shape_cast %175 : vector<1x16x1xf32> to vector<16x1xf32>
    %177 = vector.broadcast %176 : vector<16x1xf32> to vector<16x32xf32>
    %178 = arith.mulf %174, %177 : vector<16x32xf32>
    %179 = arith.truncf %178 : vector<16x32xf32> to vector<16x32xbf16>
    %c8_115 = arith.constant 8 : index
    %c0_116 = arith.constant 0 : index
    %c0_117 = arith.constant 0 : index
    %180 = vector.load %arg9[%c8_115, %c0_116, %c0_117] : memref<9x32x32xbf16, #tpu.memory_space<vmem>>, vector<1x32x32xbf16>
    %181 = vector.shape_cast %180 : vector<1x32x32xbf16> to vector<32x32xbf16>
    %cst_118 = arith.constant dense<0.000000e+00> : vector<16x32xf32>
    %182 = tpu.matmul %179, %181, %cst_118 {dimension_numbers = #tpu.dot_dimension_numbers<[1], [0], [0], [1], [0, 0, 1, 1], [], []>} : vector<16x32xbf16>, vector<32x32xbf16>, vector<16x32xf32> -> vector<16x32xf32>
    %183 = arith.addf %173, %182 : vector<16x32xf32>
    %c0_119 = arith.constant 0 : index
    %c0_120 = arith.constant 0 : index
    %184 = vector.load %arg10[%c0_119, %c0_120] : memref<1x32xf32, #tpu.memory_space<vmem>>, vector<1x32xf32>
    %185 = vector.broadcast %184 : vector<1x32xf32> to vector<16x32xf32>
    %186 = arith.addf %183, %185 : vector<16x32xf32>
    %187 = vector.extract_strided_slice %186 {offsets = [0, 0], sizes = [16, 16], strides = [1, 1]} : vector<16x32xf32> to vector<16x16xf32>
    %188 = vector.extract_strided_slice %186 {offsets = [0, 16], sizes = [16, 16], strides = [1, 1]} : vector<16x32xf32> to vector<16x16xf32>
    %cst_121 = arith.constant 2.000000e+00 : f32
    %189 = vector.broadcast %cst_121 : f32 to vector<16x16xf32>
    %190 = arith.addf %188, %189 : vector<16x16xf32>
    %cst_122 = arith.constant 0.000000e+00 : f32
    %191 = vector.broadcast %cst_122 : f32 to vector<16x16xf32>
    %192 = arith.minimumf %190, %191 : vector<16x16xf32>
    %193 = math.absf %190 : vector<16x16xf32>
    %cst_123 = arith.constant 0.000000e+00 : f32
    %194 = vector.broadcast %cst_123 : f32 to vector<16x16xf32>
    %195 = arith.subf %194, %193 : vector<16x16xf32>
    %196 = math.exp %195 : vector<16x16xf32>
    %cst_124 = arith.constant 1.000000e+00 : f32
    %197 = vector.broadcast %cst_124 : f32 to vector<16x16xf32>
    %198 = arith.addf %197, %196 : vector<16x16xf32>
    %199 = math.log %198 : vector<16x16xf32>
    %200 = arith.subf %192, %199 : vector<16x16xf32>
    %201 = math.exp %200 : vector<16x16xf32>
    %202 = arith.addf %8, %187 : vector<16x16xf32>
    %203 = arith.mulf %202, %201 : vector<16x16xf32>
    %204 = tpu.concatenate %7, %203 in 1 : vector<16x16xf32>, vector<16x16xf32> -> vector<16x32xf32>
    %c0_125 = arith.constant 0 : index
    %c0_126 = arith.constant 0 : index
    %c0_127 = arith.constant 0 : index
    %205 = vector.load %arg11[%c0_125, %c0_126, %c0_127] : memref<1x16x32xf32, #tpu.memory_space<vmem>>, vector<1x16x32xf32>
    %206 = vector.shape_cast %205 : vector<1x16x32xf32> to vector<16x32xf32>
    %207 = vector.shape_cast %204 : vector<16x32xf32> to vector<1x16x32xf32>
    tpu.vector_store %arg11[%c0_125, %c0_126, %c0_127], %207 {strides = array<i32>} : memref<1x16x32xf32, #tpu.memory_space<vmem>>, vector<1x16x32xf32>,
    %208 = vector.shape_cast %200 : vector<16x16xf32> to vector<1x16x16xf32>
    %cst_128 = arith.constant dense<0.000000e+00> : vector<1xf32>
    %209 = vector.multi_reduction <add>, %208, %cst_128 [1, 2] : vector<1x16x16xf32> to vector<1xf32>
    %210 = vector.shape_cast %209 : vector<1xf32> to vector<1x1x1xf32>
    %211 = vector.extract %210[0, 0, 0] : f32 from vector<1x1x1xf32>
    %212 = vector.broadcast %211 : f32 to vector<1x1xf32>
    %c0_129 = arith.constant 0 : index
    %c0_130 = arith.constant 0 : index
    %c0_131 = arith.constant 0 : index
    %213 = vector.load %arg12[%c0_129, %c0_130, %c0_131] : memref<1x1x1xf32, #tpu.memory_space<vmem>>, vector<1x1x1xf32>
    %214 = vector.shape_cast %213 : vector<1x1x1xf32> to vector<1x1xf32>
    %215 = vector.shape_cast %212 : vector<1x1xf32> to vector<1x1x1xf32>
    tpu.vector_store %arg12[%c0_129, %c0_130, %c0_131], %215 {strides = array<i32>} : memref<1x1x1xf32, #tpu.memory_space<vmem>>, vector<1x1x1xf32>,
    return
  }
  func.func @transform_0(%arg0: i32) -> (i32, i32, i32) {
    %c0_i32 = arith.constant 0 : i32
    %c0_i32_0 = arith.constant 0 : i32
    %c0_i32_1 = arith.constant 0 : i32
    return %arg0, %c0_i32, %c0_i32_0 : i32, i32, i32
  }
  func.func @transform_1(%arg0: i32) -> (i32, i32, i32) {
    %c0_i32 = arith.constant 0 : i32
    %c0_i32_0 = arith.constant 0 : i32
    %c0_i32_1 = arith.constant 0 : i32
    %c0_i32_2 = arith.constant 0 : i32
    return %c0_i32, %c0_i32_0, %c0_i32_1 : i32, i32, i32
  }
  func.func @transform_2(%arg0: i32) -> (i32, i32) {
    %c0_i32 = arith.constant 0 : i32
    %c0_i32_0 = arith.constant 0 : i32
    %c0_i32_1 = arith.constant 0 : i32
    return %c0_i32, %c0_i32_0 : i32, i32
  }
  func.func @transform_3(%arg0: i32) -> (i32, i32) {
    %c0_i32 = arith.constant 0 : i32
    %c0_i32_0 = arith.constant 0 : i32
    %c0_i32_1 = arith.constant 0 : i32
    return %c0_i32, %c0_i32_0 : i32, i32
  }
  func.func @transform_4(%arg0: i32) -> (i32, i32, i32) {
    %c0_i32 = arith.constant 0 : i32
    %c0_i32_0 = arith.constant 0 : i32
    %c0_i32_1 = arith.constant 0 : i32
    %c0_i32_2 = arith.constant 0 : i32
    return %c0_i32, %c0_i32_0, %c0_i32_1 : i32, i32, i32
  }
  func.func @transform_5(%arg0: i32) -> (i32, i32) {
    %c0_i32 = arith.constant 0 : i32
    %c0_i32_0 = arith.constant 0 : i32
    %c0_i32_1 = arith.constant 0 : i32
    return %c0_i32, %c0_i32_0 : i32, i32
  }
  func.func @transform_6(%arg0: i32) -> (i32, i32) {
    %c0_i32 = arith.constant 0 : i32
    %c0_i32_0 = arith.constant 0 : i32
    %c0_i32_1 = arith.constant 0 : i32
    return %c0_i32, %c0_i32_0 : i32, i32
  }
  func.func @transform_7(%arg0: i32) -> (i32, i32) {
    %c0_i32 = arith.constant 0 : i32
    %c0_i32_0 = arith.constant 0 : i32
    %c0_i32_1 = arith.constant 0 : i32
    return %c0_i32, %c0_i32_0 : i32, i32
  }
  func.func @transform_8(%arg0: i32) -> (i32, i32, i32) {
    %c0_i32 = arith.constant 0 : i32
    %c0_i32_0 = arith.constant 0 : i32
    %c0_i32_1 = arith.constant 0 : i32
    %c0_i32_2 = arith.constant 0 : i32
    return %c0_i32, %c0_i32_0, %c0_i32_1 : i32, i32, i32
  }
  func.func @transform_9(%arg0: i32) -> (i32, i32) {
    %c0_i32 = arith.constant 0 : i32
    %c0_i32_0 = arith.constant 0 : i32
    %c0_i32_1 = arith.constant 0 : i32
    return %c0_i32, %c0_i32_0 : i32, i32
  }
  func.func @transform_10(%arg0: i32) -> (i32, i32, i32) {
    %c0_i32 = arith.constant 0 : i32
    %c0_i32_0 = arith.constant 0 : i32
    %c0_i32_1 = arith.constant 0 : i32
    return %arg0, %c0_i32, %c0_i32_0 : i32, i32, i32
  }
  func.func @transform_11(%arg0: i32) -> (i32, i32, i32) {
    %c0_i32 = arith.constant 0 : i32
    %c0_i32_0 = arith.constant 0 : i32
    %c0_i32_1 = arith.constant 0 : i32
    return %arg0, %c0_i32, %c0_i32_0 : i32, i32, i32
  }
}

module attributes {stable_mosaic.version = 11 : i64} {
  func.func @_prior_kernel(%arg0: i32, %arg1: memref<1x16x32xf32, #tpu.memory_space<vmem>>, %arg2: memref<1x1x1xf32, #tpu.memory_space<vmem>>) attributes {dimension_semantics = [#tpu.dimension_semantics<parallel>], iteration_bounds = array<i64: 2>, scalar_prefetch = 0 : i64, scratch_operands = 0 : i64, tpu.core_type = #tpu.core_type<tc>, window_params = [{transform_indices = @transform_0, window_bounds = array<i64: 1, 16, 32>}, {transform_indices = @transform_1, window_bounds = array<i64: 1, 1, 1>}]} {
    %c0 = arith.constant 0 : index
    %c0_0 = arith.constant 0 : index
    %c0_1 = arith.constant 0 : index
    %0 = vector.load %arg1[%c0, %c0_0, %c0_1] : memref<1x16x32xf32, #tpu.memory_space<vmem>>, vector<1x16x32xf32>
    %1 = vector.shape_cast %0 : vector<1x16x32xf32> to vector<16x32xf32>
    %2 = arith.mulf %1, %1 : vector<16x32xf32>
    %cst = arith.constant 1.83787704 : f32
    %3 = vector.broadcast %cst : f32 to vector<16x32xf32>
    %4 = arith.addf %3, %2 : vector<16x32xf32>
    %cst_2 = arith.constant -5.000000e-01 : f32
    %5 = vector.broadcast %cst_2 : f32 to vector<16x32xf32>
    %6 = arith.mulf %5, %4 : vector<16x32xf32>
    %7 = vector.shape_cast %6 : vector<16x32xf32> to vector<1x16x32xf32>
    %cst_3 = arith.constant dense<0.000000e+00> : vector<1xf32>
    %8 = vector.multi_reduction <add>, %7, %cst_3 [1, 2] : vector<1x16x32xf32> to vector<1xf32>
    %9 = vector.shape_cast %8 : vector<1xf32> to vector<1x1x1xf32>
    %10 = vector.extract %9[0, 0, 0] : f32 from vector<1x1x1xf32>
    %11 = vector.broadcast %10 : f32 to vector<1x1xf32>
    %c0_4 = arith.constant 0 : index
    %c0_5 = arith.constant 0 : index
    %c0_6 = arith.constant 0 : index
    %12 = vector.load %arg2[%c0_4, %c0_5, %c0_6] : memref<1x1x1xf32, #tpu.memory_space<vmem>>, vector<1x1x1xf32>
    %13 = vector.shape_cast %12 : vector<1x1x1xf32> to vector<1x1xf32>
    %14 = vector.shape_cast %11 : vector<1x1xf32> to vector<1x1x1xf32>
    tpu.vector_store %arg2[%c0_4, %c0_5, %c0_6], %14 {strides = array<i32>} : memref<1x1x1xf32, #tpu.memory_space<vmem>>, vector<1x1x1xf32>,
    return
  }
  func.func @transform_0(%arg0: i32) -> (i32, i32, i32) {
    %c0_i32 = arith.constant 0 : i32
    %c0_i32_0 = arith.constant 0 : i32
    %c0_i32_1 = arith.constant 0 : i32
    return %arg0, %c0_i32, %c0_i32_0 : i32, i32, i32
  }
  func.func @transform_1(%arg0: i32) -> (i32, i32, i32) {
    %c0_i32 = arith.constant 0 : i32
    %c0_i32_0 = arith.constant 0 : i32
    %c0_i32_1 = arith.constant 0 : i32
    return %arg0, %c0_i32, %c0_i32_0 : i32, i32, i32
  }
}

module attributes {stable_mosaic.version = 11 : i64} {
  func.func @kernel(%arg0: i32, %arg1: memref<1x64x16xf32, #tpu.memory_space<vmem>>, %arg2: memref<3x64x1xf32, #tpu.memory_space<vmem>>, %arg3: memref<9x8x16xbf16, #tpu.memory_space<vmem>>, %arg4: memref<1x16xf32, #tpu.memory_space<vmem>>, %arg5: memref<1x1x1xf32, #tpu.memory_space<vmem>>) attributes {dimension_semantics = [#tpu.dimension_semantics<parallel>], iteration_bounds = array<i64: 2>, scalar_prefetch = 0 : i64, scratch_operands = 0 : i64, tpu.core_type = #tpu.core_type<tc>, window_params = [{transform_indices = @transform_0, window_bounds = array<i64: 1, 64, 16>}, {pipeline_mode = #tpu.pipeline_mode<synchronous>, transform_indices = @transform_1, window_bounds = array<i64: 3, 64, 1>}, {pipeline_mode = #tpu.pipeline_mode<synchronous>, transform_indices = @transform_2, window_bounds = array<i64: 9, 8, 16>}, {pipeline_mode = #tpu.pipeline_mode<synchronous>, transform_indices = @transform_3, window_bounds = array<i64: 1, 16>}, {transform_indices = @transform_4, window_bounds = array<i64: 1, 1, 1>}]} {
    %c0 = arith.constant 0 : index
    %c0_0 = arith.constant 0 : index
    %c0_1 = arith.constant 0 : index
    %0 = vector.load %arg1[%c0, %c0_0, %c0_1] : memref<1x64x16xf32, #tpu.memory_space<vmem>>, vector<1x64x16xf32>
    %1 = vector.shape_cast %0 : vector<1x64x16xf32> to vector<64x16xf32>
    %2 = vector.extract_strided_slice %1 {offsets = [0, 0], sizes = [64, 8], strides = [1, 1]} : vector<64x16xf32> to vector<64x8xf32>
    %3 = vector.extract_strided_slice %1 {offsets = [0, 8], sizes = [64, 8], strides = [1, 1]} : vector<64x16xf32> to vector<64x8xf32>
    %cst = arith.constant 0.000000e+00 : f32
    %4 = vector.broadcast %cst : f32 to vector<9x8xf32>
    %5 = tpu.concatenate %4, %2, %4 in 0 : vector<9x8xf32>, vector<64x8xf32>, vector<9x8xf32> -> vector<82x8xf32>
    %cst_2 = arith.constant 0.000000e+00 : f32
    %6 = vector.broadcast %cst_2 : f32 to vector<64x16xf32>
    %7 = vector.extract_strided_slice %5 {offsets = [0, 0], sizes = [64, 8], strides = [1, 1]} : vector<82x8xf32> to vector<64x8xf32>
    %c0_3 = arith.constant 0 : index
    %c0_4 = arith.constant 0 : index
    %c0_5 = arith.constant 0 : index
    %8 = vector.load %arg2[%c0_3, %c0_4, %c0_5] : memref<3x64x1xf32, #tpu.memory_space<vmem>>, vector<1x64x1xf32>
    %9 = vector.shape_cast %8 : vector<1x64x1xf32> to vector<64x1xf32>
    %10 = vector.broadcast %9 : vector<64x1xf32> to vector<64x8xf32>
    %11 = arith.mulf %7, %10 : vector<64x8xf32>
    %12 = arith.truncf %11 : vector<64x8xf32> to vector<64x8xbf16>
    %c0_6 = arith.constant 0 : index
    %c0_7 = arith.constant 0 : index
    %c0_8 = arith.constant 0 : index
    %13 = vector.load %arg3[%c0_6, %c0_7, %c0_8] : memref<9x8x16xbf16, #tpu.memory_space<vmem>>, vector<1x8x16xbf16>
    %14 = vector.shape_cast %13 : vector<1x8x16xbf16> to vector<8x16xbf16>
    %cst_9 = arith.constant dense<0.000000e+00> : vector<64x16xf32>
    %15 = tpu.matmul %12, %14, %cst_9 {dimension_numbers = #tpu.dot_dimension_numbers<[1], [0], [0], [1], [0, 0, 1, 1], [], []>} : vector<64x8xbf16>, vector<8x16xbf16>, vector<64x16xf32> -> vector<64x16xf32>
    %16 = arith.addf %6, %15 : vector<64x16xf32>
    %17 = vector.extract_strided_slice %5 {offsets = [1, 0], sizes = [64, 8], strides = [1, 1]} : vector<82x8xf32> to vector<64x8xf32>
    %18 = arith.truncf %17 : vector<64x8xf32> to vector<64x8xbf16>
    %c1 = arith.constant 1 : index
    %c0_10 = arith.constant 0 : index
    %c0_11 = arith.constant 0 : index
    %19 = vector.load %arg3[%c1, %c0_10, %c0_11] : memref<9x8x16xbf16, #tpu.memory_space<vmem>>, vector<1x8x16xbf16>
    %20 = vector.shape_cast %19 : vector<1x8x16xbf16> to vector<8x16xbf16>
    %cst_12 = arith.constant dense<0.000000e+00> : vector<64x16xf32>
    %21 = tpu.matmul %18, %20, %cst_12 {dimension_numbers = #tpu.dot_dimension_numbers<[1], [0], [0], [1], [0, 0, 1, 1], [], []>} : vector<64x8xbf16>, vector<8x16xbf16>, vector<64x16xf32> -> vector<64x16xf32>
    %22 = arith.addf %16, %21 : vector<64x16xf32>
    %23 = vector.extract_strided_slice %5 {offsets = [2, 0], sizes = [64, 8], strides = [1, 1]} : vector<82x8xf32> to vector<64x8xf32>
    %c2 = arith.constant 2 : index
    %c0_13 = arith.constant 0 : index
    %c0_14 = arith.constant 0 : index
    %24 = vector.load %arg2[%c2, %c0_13, %c0_14] : memref<3x64x1xf32, #tpu.memory_space<vmem>>, vector<1x64x1xf32>
    %25 = vector.shape_cast %24 : vector<1x64x1xf32> to vector<64x1xf32>
    %26 = vector.broadcast %25 : vector<64x1xf32> to vector<64x8xf32>
    %27 = arith.mulf %23, %26 : vector<64x8xf32>
    %28 = arith.truncf %27 : vector<64x8xf32> to vector<64x8xbf16>
    %c2_15 = arith.constant 2 : index
    %c0_16 = arith.constant 0 : index
    %c0_17 = arith.constant 0 : index
    %29 = vector.load %arg3[%c2_15, %c0_16, %c0_17] : memref<9x8x16xbf16, #tpu.memory_space<vmem>>, vector<1x8x16xbf16>
    %30 = vector.shape_cast %29 : vector<1x8x16xbf16> to vector<8x16xbf16>
    %cst_18 = arith.constant dense<0.000000e+00> : vector<64x16xf32>
    %31 = tpu.matmul %28, %30, %cst_18 {dimension_numbers = #tpu.dot_dimension_numbers<[1], [0], [0], [1], [0, 0, 1, 1], [], []>} : vector<64x8xbf16>, vector<8x16xbf16>, vector<64x16xf32> -> vector<64x16xf32>
    %32 = arith.addf %22, %31 : vector<64x16xf32>
    %33 = vector.extract_strided_slice %5 {offsets = [8, 0], sizes = [64, 8], strides = [1, 1]} : vector<82x8xf32> to vector<64x8xf32>
    %c0_19 = arith.constant 0 : index
    %c0_20 = arith.constant 0 : index
    %c0_21 = arith.constant 0 : index
    %34 = vector.load %arg2[%c0_19, %c0_20, %c0_21] : memref<3x64x1xf32, #tpu.memory_space<vmem>>, vector<1x64x1xf32>
    %35 = vector.shape_cast %34 : vector<1x64x1xf32> to vector<64x1xf32>
    %36 = vector.broadcast %35 : vector<64x1xf32> to vector<64x8xf32>
    %37 = arith.mulf %33, %36 : vector<64x8xf32>
    %38 = arith.truncf %37 : vector<64x8xf32> to vector<64x8xbf16>
    %c3 = arith.constant 3 : index
    %c0_22 = arith.constant 0 : index
    %c0_23 = arith.constant 0 : index
    %39 = vector.load %arg3[%c3, %c0_22, %c0_23] : memref<9x8x16xbf16, #tpu.memory_space<vmem>>, vector<1x8x16xbf16>
    %40 = vector.shape_cast %39 : vector<1x8x16xbf16> to vector<8x16xbf16>
    %cst_24 = arith.constant dense<0.000000e+00> : vector<64x16xf32>
    %41 = tpu.matmul %38, %40, %cst_24 {dimension_numbers = #tpu.dot_dimension_numbers<[1], [0], [0], [1], [0, 0, 1, 1], [], []>} : vector<64x8xbf16>, vector<8x16xbf16>, vector<64x16xf32> -> vector<64x16xf32>
    %42 = arith.addf %32, %41 : vector<64x16xf32>
    %43 = vector.extract_strided_slice %5 {offsets = [9, 0], sizes = [64, 8], strides = [1, 1]} : vector<82x8xf32> to vector<64x8xf32>
    %44 = arith.truncf %43 : vector<64x8xf32> to vector<64x8xbf16>
    %c4 = arith.constant 4 : index
    %c0_25 = arith.constant 0 : index
    %c0_26 = arith.constant 0 : index
    %45 = vector.load %arg3[%c4, %c0_25, %c0_26] : memref<9x8x16xbf16, #tpu.memory_space<vmem>>, vector<1x8x16xbf16>
    %46 = vector.shape_cast %45 : vector<1x8x16xbf16> to vector<8x16xbf16>
    %cst_27 = arith.constant dense<0.000000e+00> : vector<64x16xf32>
    %47 = tpu.matmul %44, %46, %cst_27 {dimension_numbers = #tpu.dot_dimension_numbers<[1], [0], [0], [1], [0, 0, 1, 1], [], []>} : vector<64x8xbf16>, vector<8x16xbf16>, vector<64x16xf32> -> vector<64x16xf32>
    %48 = arith.addf %42, %47 : vector<64x16xf32>
    %49 = vector.extract_strided_slice %5 {offsets = [10, 0], sizes = [64, 8], strides = [1, 1]} : vector<82x8xf32> to vector<64x8xf32>
    %c2_28 = arith.constant 2 : index
    %c0_29 = arith.constant 0 : index
    %c0_30 = arith.constant 0 : index
    %50 = vector.load %arg2[%c2_28, %c0_29, %c0_30] : memref<3x64x1xf32, #tpu.memory_space<vmem>>, vector<1x64x1xf32>
    %51 = vector.shape_cast %50 : vector<1x64x1xf32> to vector<64x1xf32>
    %52 = vector.broadcast %51 : vector<64x1xf32> to vector<64x8xf32>
    %53 = arith.mulf %49, %52 : vector<64x8xf32>
    %54 = arith.truncf %53 : vector<64x8xf32> to vector<64x8xbf16>
    %c5 = arith.constant 5 : index
    %c0_31 = arith.constant 0 : index
    %c0_32 = arith.constant 0 : index
    %55 = vector.load %arg3[%c5, %c0_31, %c0_32] : memref<9x8x16xbf16, #tpu.memory_space<vmem>>, vector<1x8x16xbf16>
    %56 = vector.shape_cast %55 : vector<1x8x16xbf16> to vector<8x16xbf16>
    %cst_33 = arith.constant dense<0.000000e+00> : vector<64x16xf32>
    %57 = tpu.matmul %54, %56, %cst_33 {dimension_numbers = #tpu.dot_dimension_numbers<[1], [0], [0], [1], [0, 0, 1, 1], [], []>} : vector<64x8xbf16>, vector<8x16xbf16>, vector<64x16xf32> -> vector<64x16xf32>
    %58 = arith.addf %48, %57 : vector<64x16xf32>
    %59 = vector.extract_strided_slice %5 {offsets = [16, 0], sizes = [64, 8], strides = [1, 1]} : vector<82x8xf32> to vector<64x8xf32>
    %c0_34 = arith.constant 0 : index
    %c0_35 = arith.constant 0 : index
    %c0_36 = arith.constant 0 : index
    %60 = vector.load %arg2[%c0_34, %c0_35, %c0_36] : memref<3x64x1xf32, #tpu.memory_space<vmem>>, vector<1x64x1xf32>
    %61 = vector.shape_cast %60 : vector<1x64x1xf32> to vector<64x1xf32>
    %62 = vector.broadcast %61 : vector<64x1xf32> to vector<64x8xf32>
    %63 = arith.mulf %59, %62 : vector<64x8xf32>
    %64 = arith.truncf %63 : vector<64x8xf32> to vector<64x8xbf16>
    %c6 = arith.constant 6 : index
    %c0_37 = arith.constant 0 : index
    %c0_38 = arith.constant 0 : index
    %65 = vector.load %arg3[%c6, %c0_37, %c0_38] : memref<9x8x16xbf16, #tpu.memory_space<vmem>>, vector<1x8x16xbf16>
    %66 = vector.shape_cast %65 : vector<1x8x16xbf16> to vector<8x16xbf16>
    %cst_39 = arith.constant dense<0.000000e+00> : vector<64x16xf32>
    %67 = tpu.matmul %64, %66, %cst_39 {dimension_numbers = #tpu.dot_dimension_numbers<[1], [0], [0], [1], [0, 0, 1, 1], [], []>} : vector<64x8xbf16>, vector<8x16xbf16>, vector<64x16xf32> -> vector<64x16xf32>
    %68 = arith.addf %58, %67 : vector<64x16xf32>
    %69 = vector.extract_strided_slice %5 {offsets = [17, 0], sizes = [64, 8], strides = [1, 1]} : vector<82x8xf32> to vector<64x8xf32>
    %70 = arith.truncf %69 : vector<64x8xf32> to vector<64x8xbf16>
    %c7 = arith.constant 7 : index
    %c0_40 = arith.constant 0 : index
    %c0_41 = arith.constant 0 : index
    %71 = vector.load %arg3[%c7, %c0_40, %c0_41] : memref<9x8x16xbf16, #tpu.memory_space<vmem>>, vector<1x8x16xbf16>
    %72 = vector.shape_cast %71 : vector<1x8x16xbf16> to vector<8x16xbf16>
    %cst_42 = arith.constant dense<0.000000e+00> : vector<64x16xf32>
    %73 = tpu.matmul %70, %72, %cst_42 {dimension_numbers = #tpu.dot_dimension_numbers<[1], [0], [0], [1], [0, 0, 1, 1], [], []>} : vector<64x8xbf16>, vector<8x16xbf16>, vector<64x16xf32> -> vector<64x16xf32>
    %74 = arith.addf %68, %73 : vector<64x16xf32>
    %75 = vector.extract_strided_slice %5 {offsets = [18, 0], sizes = [64, 8], strides = [1, 1]} : vector<82x8xf32> to vector<64x8xf32>
    %c2_43 = arith.constant 2 : index
    %c0_44 = arith.constant 0 : index
    %c0_45 = arith.constant 0 : index
    %76 = vector.load %arg2[%c2_43, %c0_44, %c0_45] : memref<3x64x1xf32, #tpu.memory_space<vmem>>, vector<1x64x1xf32>
    %77 = vector.shape_cast %76 : vector<1x64x1xf32> to vector<64x1xf32>
    %78 = vector.broadcast %77 : vector<64x1xf32> to vector<64x8xf32>
    %79 = arith.mulf %75, %78 : vector<64x8xf32>
    %80 = arith.truncf %79 : vector<64x8xf32> to vector<64x8xbf16>
    %c8 = arith.constant 8 : index
    %c0_46 = arith.constant 0 : index
    %c0_47 = arith.constant 0 : index
    %81 = vector.load %arg3[%c8, %c0_46, %c0_47] : memref<9x8x16xbf16, #tpu.memory_space<vmem>>, vector<1x8x16xbf16>
    %82 = vector.shape_cast %81 : vector<1x8x16xbf16> to vector<8x16xbf16>
    %cst_48 = arith.constant dense<0.000000e+00> : vector<64x16xf32>
    %83 = tpu.matmul %80, %82, %cst_48 {dimension_numbers = #tpu.dot_dimension_numbers<[1], [0], [0], [1], [0, 0, 1, 1], [], []>} : vector<64x8xbf16>, vector<8x16xbf16>, vector<64x16xf32> -> vector<64x16xf32>
    %84 = arith.addf %74, %83 : vector<64x16xf32>
    %c0_49 = arith.constant 0 : index
    %c0_50 = arith.constant 0 : index
    %85 = vector.load %arg4[%c0_49, %c0_50] : memref<1x16xf32, #tpu.memory_space<vmem>>, vector<1x16xf32>
    %86 = vector.broadcast %85 : vector<1x16xf32> to vector<64x16xf32>
    %87 = arith.addf %84, %86 : vector<64x16xf32>
    %88 = vector.extract_strided_slice %87 {offsets = [0, 0], sizes = [64, 8], strides = [1, 1]} : vector<64x16xf32> to vector<64x8xf32>
    %89 = vector.extract_strided_slice %87 {offsets = [0, 8], sizes = [64, 8], strides = [1, 1]} : vector<64x16xf32> to vector<64x8xf32>
    %90 = arith.subf %3, %88 : vector<64x8xf32>
    %cst_51 = arith.constant 2.000000e+00 : f32
    %91 = vector.broadcast %cst_51 : f32 to vector<64x8xf32>
    %92 = arith.mulf %91, %89 : vector<64x8xf32>
    %cst_52 = arith.constant 1.83787704 : f32
    %93 = vector.broadcast %cst_52 : f32 to vector<64x8xf32>
    %94 = arith.addf %93, %92 : vector<64x8xf32>
    %95 = arith.mulf %90, %90 : vector<64x8xf32>
    %cst_53 = arith.constant -2.000000e+00 : f32
    %96 = vector.broadcast %cst_53 : f32 to vector<64x8xf32>
    %97 = arith.mulf %96, %89 : vector<64x8xf32>
    %98 = math.exp %97 : vector<64x8xf32>
    %99 = arith.mulf %95, %98 : vector<64x8xf32>
    %100 = arith.addf %94, %99 : vector<64x8xf32>
    %cst_54 = arith.constant -5.000000e-01 : f32
    %101 = vector.broadcast %cst_54 : f32 to vector<64x8xf32>
    %102 = arith.mulf %101, %100 : vector<64x8xf32>
    %103 = vector.shape_cast %102 : vector<64x8xf32> to vector<1x64x8xf32>
    %cst_55 = arith.constant dense<0.000000e+00> : vector<1xf32>
    %104 = vector.multi_reduction <add>, %103, %cst_55 [1, 2] : vector<1x64x8xf32> to vector<1xf32>
    %105 = vector.shape_cast %104 : vector<1xf32> to vector<1x1x1xf32>
    %106 = vector.extract %105[0, 0, 0] : f32 from vector<1x1x1xf32>
    %107 = vector.broadcast %106 : f32 to vector<1x1xf32>
    %c0_56 = arith.constant 0 : index
    %c0_57 = arith.constant 0 : index
    %c0_58 = arith.constant 0 : index
    %108 = vector.load %arg5[%c0_56, %c0_57, %c0_58] : memref<1x1x1xf32, #tpu.memory_space<vmem>>, vector<1x1x1xf32>
    %109 = vector.shape_cast %108 : vector<1x1x1xf32> to vector<1x1xf32>
    %110 = vector.shape_cast %107 : vector<1x1xf32> to vector<1x1x1xf32>
    tpu.vector_store %arg5[%c0_56, %c0_57, %c0_58], %110 {strides = array<i32>} : memref<1x1x1xf32, #tpu.memory_space<vmem>>, vector<1x1x1xf32>,
    return
  }
  func.func @transform_0(%arg0: i32) -> (i32, i32, i32) {
    %c0_i32 = arith.constant 0 : i32
    %c0_i32_0 = arith.constant 0 : i32
    %c0_i32_1 = arith.constant 0 : i32
    return %arg0, %c0_i32, %c0_i32_0 : i32, i32, i32
  }
  func.func @transform_1(%arg0: i32) -> (i32, i32, i32) {
    %c0_i32 = arith.constant 0 : i32
    %c0_i32_0 = arith.constant 0 : i32
    %c0_i32_1 = arith.constant 0 : i32
    %c0_i32_2 = arith.constant 0 : i32
    return %c0_i32, %c0_i32_0, %c0_i32_1 : i32, i32, i32
  }
  func.func @transform_2(%arg0: i32) -> (i32, i32, i32) {
    %c0_i32 = arith.constant 0 : i32
    %c0_i32_0 = arith.constant 0 : i32
    %c0_i32_1 = arith.constant 0 : i32
    %c0_i32_2 = arith.constant 0 : i32
    return %c0_i32, %c0_i32_0, %c0_i32_1 : i32, i32, i32
  }
  func.func @transform_3(%arg0: i32) -> (i32, i32) {
    %c0_i32 = arith.constant 0 : i32
    %c0_i32_0 = arith.constant 0 : i32
    %c0_i32_1 = arith.constant 0 : i32
    return %c0_i32, %c0_i32_0 : i32, i32
  }
  func.func @transform_4(%arg0: i32) -> (i32, i32, i32) {
    %c0_i32 = arith.constant 0 : i32
    %c0_i32_0 = arith.constant 0 : i32
    %c0_i32_1 = arith.constant 0 : i32
    return %arg0, %c0_i32, %c0_i32_0 : i32, i32, i32
  }
}

</mosaic_0001>

<bundles_post_ra>
// kernel: custom-call.20
= control target key start
LH: loop header
LB: loop body
LE: loop exit
PB: predicated region body
PF: predicated region fallthrough
CT: control target
= control target key end

     0   :  { %5 = vsyncpa [#allocation1], 0  ;;  %s796_s0 = inlined_call_operand.hbm [shape: f32[32,32], index: 0, kind: input, shape index: {}]   ;;  %s797_s1 = inlined_call_operand.vmem [shape: f32[32,32], index: 1, kind: output, shape index: {0}]   ;;  %s798_s2 = inlined_call_operand.hbm [shape: s32[32], index: 2, kind: output, shape index: {1}]   ;;  %s799_s3 = inlined_call_operand.hbm [shape: s32[32], index: 3, kind: output, shape index: {2}]  }
   0x1   :  { %6 = vsyncpa [#allocation2], 0 }
   0x2   :  { %7 = vsyncpa [#allocation8], 0  ;;  %s642_s12 = smov [#allocation0]   ;;  %s518_s16 = scalar_lea.hbm %s796_s0, 512 }
   0x3   :  { %s11_s13 = sshll.u32 %s642_s12, 4  ;;  %p519_p0 = scmp.ne.s32.totalorder %s796_s0, %s518_s16  ;;  %s12_s13 = int_to_ptr.vmem [resolvable:$true] %s11_s13 }
   0x4   :  { %p522_p1 = scmp.lt.u32.totalorder %s518_s16, %s796_s0 }
   0x6   :  { %p524_p2 = pnand %p522_p1, %p519_p0 }
   0x8   :  { %527 = shalt.err (!%p524_p2)
}
   0x9   :  { %s528_s21 = scalar_lea.vmem %s12_s13, 512  ;;  %p533_p4 = scmp.lt.s32.totalorder %s12_s13, %s12_s13 }
   0xa   :  { %p529_p3 = scmp.ne.s32.totalorder %s12_s13, %s528_s21  ;;  %p534_p5 = scmp.lt.s32.totalorder %s528_s21, %s528_s21 }
   0xc   :  { %p535_p6 = por %p534_p5, %p533_p4 }
   0xe   :  { %p536_p7 = pnand %p535_p6, %p529_p3 }
  0x10   :  { %539 = shalt.err (!%p536_p7)
}
  0x11   :  { %14 = dma.hbm_to_vmem [thread:$0]  %s796_s0, 512, %s12_s13, [#allocation1]  }
  0x12   :  { %620 = dma.done.wait [#allocation1], 512  }
  0x13   :  { %621 = vsyncadd [#allocation1], 4294966784  ;;  %v31_v0 = vlaneseq  ;;  %v643_v1 = vmov 0   ;;  %v16_v3 = vld [vmem:[#allocation0] sm:$0xff]  ;;  %v20_v4 = vld [vmem:[#allocation0 + $0x8] sm:$0xff]  ;;  %s626_s24 = smov 0  }
  0x14   :  { %30 = vst [vmem:[#allocation4] sm:$0x1] %v643_v1  ;;  %v24_v5 = vld [vmem:[#allocation0 + $0x10] sm:$0xff]  ;;  %17 = vst [vmem:[#allocation3] sm:$0xff] %v16_v3  ;;  %v28_v6 = vld [vmem:[#allocation0 + $0x18] sm:$0xff] }
  0x15   :  { %v679_v2 = vshrl.u32 %v31_v0, 7  ;;  %21 = vst [vmem:[#allocation3 + $0x8] sm:$0xff] %v20_v4  ;;  %25 = vst [vmem:[#allocation3 + $0x10] sm:$0xff] %v24_v5 }
  0x16   :  { %29 = vst [vmem:[#allocation3 + $0x18] sm:$0xff] %v28_v6 }
  0x17 LB: > { %s424_s0 = sshll.u32 %s628_s24, 3  ;;  %s39_s24 = sadd.s32 1, %s628_s24   ;;  %s628_s24 = sphi %s626_s24, %s39_s24  }
  0x18   : > { %v43_v7 = vstv %s424_s0  ;;  %s41_s25 = scalar_lea.vmem [#allocation9], %s424_s0  ;;  %p36_p8 = scmp.ge.s32.totalorder %s39_s24, 4  }
  0x19   : > { %v44_v8 = vadd.s32 %v43_v7, %v679_v2  ;;  %s682_s26 = smov (%p36_p8), 0  }
  0x1a   :  { %38 = sbr.rel (!%p36_p8) target bundleno = 23 (0x17), region = 102 }
  0x1b   : > { %45 = vst [vmem:[%s41_s25] sm:$0xff] %v44_v8 }
  0x21 LB: > { %v56_v9 = vld [vmem:[#allocation3] sm:$0xff]  ;;  %v68_v10 = vld [vmem:[#allocation3 + $0x8] sm:$0xff]  ;;  %v688_v11 = vadd.s32 8, %v679_v2  ;;  %v691_v13 = vstv %s632_s26  ;;  %v80_v15 = vld [vmem:[#allocation3 + $0x10] sm:$0xff]  ;;  %v696_v16 = vadd.s32 16, %v679_v2  ;;  %v703_v21 = vadd.s32 24, %v679_v2  ;;  %s632_s26 = sphi %s682_s26, %s51_s26  }
  0x22   : > { %v57_v12 = vand.u32 2147483647, %v56_v9  ;;  %v69_v14 = vand.u32 2147483647, %v68_v10  ;;  %vm60_vm0 = vcmp.ge.s32.totalorder %v679_v2, %v691_v13  ;;  %v81_v19 = vand.u32 2147483647, %v80_v15 }
  0x23   : > { %vm72_vm3 = vcmp.ge.s32.totalorder %v688_v11, %v691_v13  ;;  %v92_v20 = vld [vmem:[#allocation3 + $0x18] sm:$0xff]  ;;  %vm84_vm6 = vcmp.ge.s32.totalorder %v696_v16, %v691_v13  ;;  %vm96_vm9 = vcmp.ge.s32.totalorder %v703_v21, %v691_v13  ;;  %s138_s27 = ssub.s32 128, %s632_s26  ;;  %v144_v57 = vand.u32 127, %v31_v0  ;;  %v147_v59 = vld [vmem:[#allocation4] ss:$0 sm:$0xff]  ;;  %s150_s28 = scalar_lea.vmem [#allocation3], %s632_s26 }
  0x24   : > { %vm426_vm1 = vcmp.gt.f32.partialorder %v57_v12, -inf  ;;  %v93_v24 = vand.u32 2147483647, %v92_v20  ;;  %v152_v60 = vld [vmem:[%s150_s28] ss:$0 sm:$0xff]  ;;  %s156_s30 = scalar_lea.vmem [#allocation9], %s632_s26 }
  0x25   : > { %vm64_vm2 = vmand %vm60_vm0, %vm426_vm1  ;;  %v158_v61 = vld [vmem:[%s156_s30] ss:$0 sm:$0xff]  ;;  %s51_s26 = sadd.s32 1, %s632_s26  }
  0x26   : > { %v65_v17 = vsel %vm64_vm2, %v679_v2, %v691_v13  ;;  %v66_v18 = vsel %vm64_vm2, %v57_v12, -inf  ;;  %p48_p9 = scmp.ge.s32.totalorder %s51_s26, 32  }
  0x27   : > { %vm75_vm4 = vcmp.lt.f32.partialorder %v66_v18, %v69_v14  ;;  %s634_s8 = smov (%p48_p9), %s797_s1   ;;  %s638_s9 = smov (%p48_p9), [#allocation3]  }
  0x28   : > { %vm76_vm5 = vmand %vm72_vm3, %vm75_vm4  ;;  %vm715_vm3 = vcmp.eq.s32.totalorder %v144_v57, %v691_v13 }
  0x29   : > { %v77_v22 = vsel %vm76_vm5, %v688_v11, %v65_v17  ;;  %v78_v23 = vsel %vm76_vm5, %v69_v14, %v66_v18  ;;  %vm191_vm5 = vcmp.gt.s32.totalorder %v688_v11, %v691_v13 }
  0x2a   : > { %vm87_vm7 = vcmp.lt.f32.partialorder %v78_v23, %v81_v19 }
  0x2b   : > { %vm88_vm8 = vmand %vm84_vm6, %vm87_vm7  ;;  %vm176_vm6 = vcmp.gt.s32.totalorder %v679_v2, %v691_v13  ;;  %vm206_vm7 = vcmp.gt.s32.totalorder %v696_v16, %v691_v13 }
  0x2c   : > { %v89_v25 = vsel %vm88_vm8, %v696_v16, %v77_v22  ;;  %v90_v26 = vsel %vm88_vm8, %v81_v19, %v78_v23 }
  0x2d   : > { %vm99_vm10 = vcmp.lt.f32.partialorder %v90_v26, %v93_v24 }
  0x2e   : > { %vm100_vm11 = vmand %vm96_vm9, %vm99_vm10  ;;  %vm221_vm9 = vcmp.gt.s32.totalorder %v703_v21, %v691_v13 }
  0x2f   : > { %v101_v27 = vsel %vm100_vm11, %v703_v21, %v89_v25  ;;  %v102_v28 = vsel %vm100_vm11, %v93_v24, %v90_v26  ;;  %vm195_vm10 = vmand %vm191_vm5, %vm715_vm3 }
  0x30   : > { %v103_v29 = vrot.slane %v102_v28, 1  ;;  %v104_v30 = vrot.slane %v101_v27, 1  ;;  %vm180_vm11 = vmand %vm176_vm6, %vm715_vm3 }
  0x32   : > { %vm105_vm12 = vcmp.ge.f32.partialorder %v103_v29, %v102_v28  ;;  %v108_v31 = vrot.slane %v103_v29, 1  ;;  %v109_v32 = vrot.slane %v104_v30, 1 }
  0x33   : > { %v106_v33 = vsel %vm105_vm12, %v103_v29, %v102_v28  ;;  %v107_v34 = vsel %vm105_vm12, %v104_v30, %v101_v27  ;;  %vm210_vm12 = vmand %vm206_vm7, %vm715_vm3 }
  0x34   : > { %vm110_vm13 = vcmp.ge.f32.partialorder %v108_v31, %v106_v33  ;;  %v113_v35 = vrot.slane %v108_v31, 1  ;;  %v114_v36 = vrot.slane %v109_v32, 1 }
  0x35   : > { %v111_v37 = vsel %vm110_vm13, %v108_v31, %v106_v33  ;;  %v112_v38 = vsel %vm110_vm13, %v109_v32, %v107_v34  ;;  %vm225_vm13 = vmand %vm221_vm9, %vm715_vm3 }
  0x36   : > { %vm115_vm14 = vcmp.ge.f32.partialorder %v113_v35, %v111_v37  ;;  %v118_v39 = vrot.slane %v113_v35, 1  ;;  %v119_v40 = vrot.slane %v114_v36, 1 }
  0x37   : > { %v116_v41 = vsel %vm115_vm14, %v113_v35, %v111_v37  ;;  %v117_v42 = vsel %vm115_vm14, %v114_v36, %v112_v38  ;;  %vm168_vm14 = vcmp.gt.s32.totalorder %v144_v57, %v691_v13 }
  0x38   : > { %vm120_vm15 = vcmp.ge.f32.partialorder %v118_v39, %v116_v41  ;;  %v123_v43 = vrot.slane %v118_v39, 1  ;;  %v124_v44 = vrot.slane %v119_v40, 1 }
  0x39   : > { %v121_v45 = vsel %vm120_vm15, %v118_v39, %v116_v41  ;;  %v122_v46 = vsel %vm120_vm15, %v119_v40, %v117_v42 }
  0x3a   : > { %vm125_vm0 = vcmp.ge.f32.partialorder %v123_v43, %v121_v45  ;;  %v128_v47 = vrot.slane %v123_v43, 1  ;;  %v129_v48 = vrot.slane %v124_v44, 1 }
  0x3b   : > { %v126_v49 = vsel %vm125_vm0, %v123_v43, %v121_v45  ;;  %v127_v50 = vsel %vm125_vm0, %v124_v44, %v122_v46 }
  0x3c   : > { %vm130_vm1 = vcmp.ge.f32.partialorder %v128_v47, %v126_v49  ;;  %v133_v51 = vrot.slane %v128_v47, 1  ;;  %v134_v52 = vrot.slane %v129_v48, 1 }
  0x3d   : > { %v131_v53 = vsel %vm130_vm1, %v128_v47, %v126_v49  ;;  %v132_v54 = vsel %vm130_vm1, %v129_v48, %v127_v50 }
  0x3e   : > { %vm135_vm2 = vcmp.ge.f32.partialorder %v133_v51, %v131_v53 }
  0x3f   : > { %v137_v55 = vsel %vm135_vm2, %v134_v52, %v132_v54 }
  0x40   : > { %139 = vrot.lane.b32.xlu0 %v137_v55, %s138_s27 }
  0xb2   : > { %v140_v56 = vpop.permute.xlu0 %139 }
  0xb3   : > { %431 = vpush %v140_v56 }
  0xe4   : > { %s432_s29 = spop %431 }
  0xe5   : > { %v146_v62 = vstv %s432_s29  ;;  %s151_s4 = scalar_lea.vmem [#allocation3], %s432_s29  ;;  %s157_s5 = scalar_lea.vmem [#allocation9], %s432_s29 }
  0xe6   : > { %v148_v63 = vsel %vm715_vm3, %v146_v62, %v147_v59  ;;  %v153_v1 = vld [vmem:[%s151_s4] ss:$0 sm:$0xff] }
  0xe7   : > { %v159_v3 = vld [vmem:[%s157_s5] ss:$0 sm:$0xff]  ;;  %149 = vst [vmem:[#allocation4] sm:$0x1] %v148_v63  ;;  %154 = vst [vmem:[%s151_s4] sm:$0x1] %v152_v60  ;;  %vm162_vm4 = vcmp.ne.f32.partialorder %v153_v1, 0.0 }
  0xe8   : > { %160 = vst [vmem:[%s157_s5] sm:$0x1] %v158_v61  ;;  %155 = vst [vmem:[%s150_s28] sm:$0x1] %v153_v1  ;;  %v169_v28 = vsel %vm168_vm14, %v153_v1, 0.0 }
  0xe9   : > { %161 = vst [vmem:[%s156_s30] sm:$0x1] %v159_v3  ;;  %vm163_vm8 = vmand %vm715_vm3, %vm162_vm4 }
  0xea   : > { %v164_v4 = vsel %vm163_vm8, %v153_v1, 1.0 }
  0xeb   : > { %v192_v5 = vsel %vm191_vm5, %v164_v4, 1.0  ;;  %v177_v6 = vsel %vm176_vm6, %v164_v4, 1.0  ;;  %v207_v7 = vsel %vm206_vm7, %v164_v4, 1.0  ;;  %v222_v8 = vsel %vm221_vm9, %v164_v4, 1.0 }
  0xec   : > { %510 = vrcp.f32 %v192_v5 }
  0xed   : > { %512 = vrcp.f32 %v177_v6 }
  0xee   : > { %514 = vrcp.f32 %v207_v7  ;;  %v287_v41 = vld [vmem:[#allocation4] sm:$0x1] (%p48_p9) }
  0xef   : > { %516 = vrcp.f32 %v222_v8  ;;  %v188_v10 = vld [vmem:[#allocation3 + $0x8] sm:$0xff]  ;;  %v173_v15 = vld [vmem:[#allocation3] sm:$0xff]  ;;  %v203_v19 = vld [vmem:[#allocation3 + $0x10] sm:$0xff]  ;;  %289 = vst [vmem:[#allocation5] sm:$0x1] (%p48_p9), %v287_v41 }
  0xf0   : > { %v218_v11 = vld [vmem:[#allocation3 + $0x18] sm:$0xff]  ;;  %v236_v40 = vld [vmem:[#allocation9 + $0x10] sm:$0xff] (%p48_p9)  ;;  %v238_v42 = vld [vmem:[#allocation9 + $0x18] sm:$0xff] (%p48_p9) }
  0xf1   :  { %v232_v13 = vld [vmem:[#allocation9] sm:$0xff] (%p48_p9)  ;;  %v234_v39 = vld [vmem:[#allocation9 + $0x8] sm:$0xff] (%p48_p9) }
  0xf6   : > { %v511_v9 = vpop.eup %510 }
  0xf7   : > { %v513_v12 = vpop.eup %512  ;;  %v194_v14 = vmul.f32 %v511_v9, %v188_v10 }
  0xf8   : > { %v515_v17 = vpop.eup %514  ;;  %v179_v18 = vmul.f32 %v513_v12, %v173_v15 }
  0xf9   : > { %v196_v20 = vsel %vm195_vm10, %v194_v14, 0.0  ;;  %v209_v22 = vmul.f32 %v515_v17, %v203_v19  ;;  %v517_v23 = vpop.eup %516 }
  0xfa   : > { %197 = vadd.xlane.f32.xlu1 %v196_v20  ;;  %v181_v24 = vsel %vm180_vm11, %v179_v18, 0.0  ;;  %v224_v26 = vmul.f32 %v517_v23, %v218_v11 }
  0xfb   : > { %182 = vadd.xlane.f32.xlu0 %v181_v24  ;;  %v211_v25 = vsel %vm210_vm12, %v209_v22, 0.0 }
  0xfc   : > { %v226_v27 = vsel %vm225_vm13, %v224_v26, 0.0 }
  0xfe   : > { %212 = vadd.xlane.f32.xlu1 %v211_v25 }
 0x102   : > { %227 = vadd.xlane.f32.xlu1 %v226_v27 }
 0x128   :  { %251 = vxpose.xlu0.b32.start [1/4] (short) (narrow) (%p48_p9), %v232_v13, 8 }
 0x12c   :  { %252 = vxpose.xlu0.b32.cont [2/4] (short) (narrow) (%p48_p9), %v234_v39, 8 }
 0x130   :  { %253 = vxpose.xlu0.b32.cont [3/4] (short) (narrow) (%p48_p9), %v236_v40, 8 }
 0x134   :  { %254 = vxpose.xlu0.b32.end [4/4] (short) (narrow) (%p48_p9), %v238_v42, 8 }
 0x187   : > { %v198_v29 = vpop.xlane.xlu1 %197 }
 0x188   : > { %v199_v30 = vmul.f32 %v198_v29, %v169_v28  ;;  %v183_v16 = vpop.xlane.xlu0 %182 }
 0x189   : > { %v184_v31 = vmul.f32 %v183_v16, %v169_v28 }
 0x18a   : > { %v200_v32 = vsub.f32 %v194_v14, %v199_v30 }
 0x18b   : > { %v185_v33 = vsub.f32 %v179_v18, %v184_v31  ;;  %v213_v34 = vpop.xlane.xlu1 %212 }
 0x18c   : > { %201 = vst [vmem:[#allocation3 + $0x8] sm:$0xff] %v200_v32  ;;  %v214_v35 = vmul.f32 %v213_v34, %v169_v28 }
 0x18d   : > { %186 = vst [vmem:[#allocation3] sm:$0xff] %v185_v33 }
 0x18e   : > { %v215_v36 = vsub.f32 %v209_v22, %v214_v35 }
 0x18f   : > { %v228_v37 = vpop.xlane.xlu1 %227 }
 0x190   : > { %216 = vst [vmem:[#allocation3 + $0x10] sm:$0xff] %v215_v36  ;;  %v229_v21 = vmul.f32 %v228_v37, %v169_v28 }
 0x192   : > { %v230_v38 = vsub.f32 %v224_v26, %v229_v21  ;;  %50 = sbr.rel (!%p48_p9) target bundleno = 33 (0x21), region = 113 }
 0x194   : > { %231 = vst [vmem:[#allocation3 + $0x18] sm:$0xff] %v230_v38 }
 0x1a8   :  { %v267_v43 = vpop.trf.xlu0 }
 0x1a9   :  { %283 = vst [vmem:[#allocation6] sm:$0x1] %v267_v43 }
 0x1b0   :  { %v293_v44 = vld [vmem:[#allocation6] sm:$0x1] }
 0x1b1   :  { %295 = vst [vmem:[#allocation7] sm:$0x1] %v293_v44 }
 0x1b2 LB: > { %v343_v0 = vld [vmem:[%s640_s9] sm:$0xff]  ;;  %s345_s9 = scalar_lea.vmem %s640_s9, 8   ;;  %s640_s9 = sphi %s638_s9, %s345_s9   ;;  %s636_s8 = sphi %s634_s8, %s346_s8  }
 0x1b3   : > { %344 = vst [vmem:[%s636_s8] sm:$0xff] %v343_v0  ;;  %s346_s8 = scalar_lea.vmem %s636_s8, 8   ;;  %p340_p10 = scmp.gt.s32.totalorder %s345_s9, [#allocation3 + $0x18] }
 0x1b4   :  { %s644_s10 = smov (%p340_p10), [#allocation5]   ;;  %s645_s12 = smov (%p340_p10), [#allocation7]  }
 0x1b5   :  { %342 = sbr.rel (!%p340_p10) target bundleno = 434 (0x1b2), region = 135  ;;  %s363_s11 = sshll.u32 (%p340_p10), %s644_s10, 4  ;;  %s364_s11 = int_to_ptr.vmem [resolvable:$true] %s363_s11 }
 0x1b6   :  { %s372_s13 = sshll.u32 (%p340_p10), %s645_s12, 4  ;;  %s540_s1 = scalar_lea.vmem (%p340_p10), %s364_s11, 16  ;;  %s373_s13 = int_to_ptr.vmem [resolvable:$true] %s372_s13 }
 0x1b7   :  { %p541_p11 = scmp.ne.s32.totalorder (%p340_p10), %s364_s11, %s540_s1  ;;  %s544_s14 = scalar_lea.vmem (%p340_p10), %s364_s11, 32 }
 0x1b8   :  { %p545_p12 = scmp.lt.s32.totalorder (%p340_p10), %s364_s11, %s364_s11  ;;  %p546_p13 = scmp.lt.s32.totalorder (%p340_p10), %s544_s14, %s540_s1 }
 0x1ba   :  { %p547_p0 = por (%p340_p10), %p546_p13, %p545_p12 }
 0x1bc   :  { %p548_p1 = pnand %p547_p0, %p541_p11 }
 0x1be   :  { %551 = shalt.err (!%p548_p1)
}
 0x1bf   :  { %s552_s17 = scalar_lea.hbm %s798_s2, 16 }
 0x1c0   :  { %p553_p2 = scmp.ne.s32.totalorder %s798_s2, %s552_s17  ;;  %p556_p3 = scmp.lt.u32.totalorder %s552_s17, %s798_s2 }
 0x1c2   :  { %p558_p4 = pnand %p556_p3, %p553_p2 }
 0x1c4   :  { %561 = shalt.err (!%p558_p4)
}
 0x1c5   :  { %366 = dma.vmem_to_hbm [thread:$0]  %s364_s11, 16, %s798_s2, [#allocation2]  }
 0x1c6   :  { %s562_s24 = scalar_lea.vmem %s373_s13, 16  ;;  %s566_s0 = scalar_lea.vmem %s373_s13, 32 }
 0x1c7   :  { %p563_p5 = scmp.ne.s32.totalorder %s373_s13, %s562_s24  ;;  %p567_p6 = scmp.lt.s32.totalorder %s373_s13, %s373_s13 }
 0x1c8   :  { %p568_p7 = scmp.lt.s32.totalorder %s566_s0, %s562_s24 }
 0x1ca   :  { %p569_p8 = por %p568_p7, %p567_p6 }
 0x1cc   :  { %p570_p9 = pnand %p569_p8, %p563_p5 }
 0x1ce   :  { %573 = shalt.err (!%p570_p9)
}
 0x1cf   :  { %s574_s27 = scalar_lea.hbm %s799_s3, 16 }
 0x1d0   :  { %p575_p10 = scmp.ne.s32.totalorder %s799_s3, %s574_s27  ;;  %p578_p11 = scmp.lt.u32.totalorder %s574_s27, %s799_s3 }
 0x1d2   :  { %p580_p12 = pnand %p578_p11, %p575_p10 }
 0x1d4   :  { %583 = shalt.err (!%p580_p12)
}
 0x1d5   :  { %375 = dma.vmem_to_hbm [thread:$0]  %s373_s13, 16, %s799_s3, [#allocation8]  }
 0x1d6   :  { %622 = dma.done.wait [#allocation2], 16  }
 0x1d7   :  { %623 = vsyncadd [#allocation2], 4294967280 }
 0x1d8   :  { %624 = dma.done.wait [#allocation8], 16  }
 0x1d9   :  { %625 = vsyncadd [#allocation8], 4294967280 }
 0x1da   :  { %382 = vsyncpa [#allocation1], 1 }
 0x1db   :  { %383 = vsyncpa [#allocation2], 1 }
 0x1dc   :  { %384 = vsyncpa [#allocation8], 1 }

// kernel: custom-call.16
= control target key start
LH: loop header
LB: loop body
LE: loop exit
PB: predicated region body
PF: predicated region fallthrough
CT: control target
= control target key end

     0   :  { %5 = vsyncpa [#allocation1], 0  ;;  %s694_s0 = inlined_call_operand.hbm [shape: f32[16,16], index: 0, kind: input, shape index: {}]   ;;  %s695_s1 = inlined_call_operand.vmem [shape: f32[16,16], index: 1, kind: output, shape index: {0}]   ;;  %s696_s2 = inlined_call_operand.hbm [shape: s32[16], index: 2, kind: output, shape index: {1}]   ;;  %s697_s3 = inlined_call_operand.hbm [shape: s32[16], index: 3, kind: output, shape index: {2}]  }
   0x1   :  { %6 = vsyncpa [#allocation2], 0 }
   0x2   :  { %7 = vsyncpa [#allocation8], 0  ;;  %s574_s12 = smov [#allocation0]   ;;  %s450_s16 = scalar_lea.hbm %s694_s0, 256 }
   0x3   :  { %s11_s13 = sshll.u32 %s574_s12, 4  ;;  %p451_p0 = scmp.ne.s32.totalorder %s694_s0, %s450_s16  ;;  %s12_s13 = int_to_ptr.vmem [resolvable:$true] %s11_s13 }
   0x4   :  { %p454_p1 = scmp.lt.u32.totalorder %s450_s16, %s694_s0 }
   0x6   :  { %p456_p2 = pnand %p454_p1, %p451_p0 }
   0x8   :  { %459 = shalt.err (!%p456_p2)
}
   0x9   :  { %s460_s21 = scalar_lea.vmem %s12_s13, 256  ;;  %p465_p4 = scmp.lt.s32.totalorder %s12_s13, %s12_s13 }
   0xa   :  { %p461_p3 = scmp.ne.s32.totalorder %s12_s13, %s460_s21  ;;  %p466_p5 = scmp.lt.s32.totalorder %s460_s21, %s460_s21 }
   0xc   :  { %p467_p6 = por %p466_p5, %p465_p4 }
   0xe   :  { %p468_p7 = pnand %p467_p6, %p461_p3 }
  0x10   :  { %471 = shalt.err (!%p468_p7)
}
  0x11   :  { %14 = dma.hbm_to_vmem [thread:$0]  %s694_s0, 256, %s12_s13, [#allocation1]  }
  0x12   :  { %552 = dma.done.wait [#allocation1], 256  }
  0x13   :  { %553 = vsyncadd [#allocation1], 4294967040  ;;  %v23_v0 = vlaneseq  ;;  %v575_v1 = vmov 0   ;;  %v16_v3 = vld [vmem:[#allocation0] sm:$0xff]  ;;  %v20_v4 = vld [vmem:[#allocation0 + $0x8] sm:$0xff]  ;;  %s558_s24 = smov 0  }
  0x14   :  { %22 = vst [vmem:[#allocation4] sm:$0x1] %v575_v1  ;;  %17 = vst [vmem:[#allocation3] sm:$0xff] %v16_v3 }
  0x15   :  { %v611_v2 = vshrl.u32 %v23_v0, 7  ;;  %21 = vst [vmem:[#allocation3 + $0x8] sm:$0xff] %v20_v4 }
  0x16 LB: > { %s360_s25 = sshll.u32 %s560_s24, 3  ;;  %s31_s24 = sadd.s32 1, %s560_s24   ;;  %s560_s24 = sphi %s558_s24, %s31_s24  }
  0x17   : > { %v35_v5 = vstv %s360_s25  ;;  %s33_s0 = scalar_lea.vmem [#allocation9], %s360_s25  ;;  %p28_p8 = scmp.ge.s32.totalorder %s31_s24, 2  }
  0x18   : > { %v36_v6 = vadd.s32 %v35_v5, %v611_v2  ;;  %s614_s26 = smov (%p28_p8), 0  }
  0x19   :  { %30 = sbr.rel (!%p28_p8) target bundleno = 22 (0x16), region = 94 }
  0x1a   : > { %37 = vst [vmem:[%s33_s0] sm:$0xff] %v36_v6 }
  0x20 LB: > { %v48_v7 = vld [vmem:[#allocation3] sm:$0xff]  ;;  %v60_v8 = vld [vmem:[#allocation3 + $0x8] sm:$0xff]  ;;  %v620_v9 = vadd.s32 8, %v611_v2  ;;  %v623_v11 = vstv %s564_s26  ;;  %s106_s27 = ssub.s32 128, %s564_s26  ;;  %v112_v44 = vand.u32 127, %v23_v0  ;;  %s118_s28 = scalar_lea.vmem [#allocation3], %s564_s26  ;;  %s564_s26 = sphi %s614_s26, %s43_s26  }
  0x21   : > { %v49_v10 = vand.u32 2147483647, %v48_v7  ;;  %v61_v12 = vand.u32 2147483647, %v60_v8  ;;  %vm52_vm0 = vcmp.ge.s32.totalorder %v611_v2, %v623_v11  ;;  %v115_v47 = vld [vmem:[#allocation4] ss:$0 sm:$0xff] }
  0x22   : > { %vm64_vm3 = vcmp.ge.s32.totalorder %v620_v9, %v623_v11  ;;  %vm136_vm13 = vcmp.gt.s32.totalorder %v112_v44, %v623_v11  ;;  %vm159_vm14 = vcmp.gt.s32.totalorder %v620_v9, %v623_v11  ;;  %vm113_vm15 = vcmp.eq.s32.totalorder %v112_v44, %v623_v11  ;;  %v120_v48 = vld [vmem:[%s118_s28] ss:$0 sm:$0xff]  ;;  %s124_s30 = scalar_lea.vmem [#allocation9], %s564_s26  ;;  %s43_s26 = sadd.s32 1, %s564_s26  }
  0x23   : > { %vm362_vm1 = vcmp.gt.f32.partialorder %v49_v10, -inf  ;;  %v126_v49 = vld [vmem:[%s124_s30] ss:$0 sm:$0xff]  ;;  %p40_p9 = scmp.ge.s32.totalorder %s43_s26, 16  }
  0x24   : > { %vm56_vm2 = vmand %vm52_vm0, %vm362_vm1  ;;  %s566_s8 = smov (%p40_p9), %s695_s1   ;;  %s570_s9 = smov (%p40_p9), [#allocation3]  }
  0x25   : > { %v57_v13 = vsel %vm56_vm2, %v611_v2, %v623_v11  ;;  %v58_v14 = vsel %vm56_vm2, %v49_v10, -inf  ;;  %vm643_vm0 = vmand %vm159_vm14, %vm113_vm15  ;;  %vm144_vm2 = vcmp.gt.s32.totalorder %v611_v2, %v623_v11 }
  0x26   : > { %vm67_vm4 = vcmp.lt.f32.partialorder %v58_v14, %v61_v12 }
  0x27   : > { %vm68_vm5 = vmand %vm64_vm3, %vm67_vm4 }
  0x28   : > { %v69_v15 = vsel %vm68_vm5, %v620_v9, %v57_v13  ;;  %v70_v16 = vsel %vm68_vm5, %v61_v12, %v58_v14  ;;  %vm148_vm4 = vmand %vm144_vm2, %vm113_vm15 }
  0x29   : > { %v71_v17 = vrot.slane %v70_v16, 1  ;;  %v72_v18 = vrot.slane %v69_v15, 1 }
  0x2b   : > { %vm73_vm6 = vcmp.ge.f32.partialorder %v71_v17, %v70_v16  ;;  %v76_v19 = vrot.slane %v71_v17, 1  ;;  %v77_v20 = vrot.slane %v72_v18, 1 }
  0x2c   : > { %v74_v21 = vsel %vm73_vm6, %v71_v17, %v70_v16  ;;  %v75_v22 = vsel %vm73_vm6, %v72_v18, %v69_v15 }
  0x2d   : > { %vm78_vm7 = vcmp.ge.f32.partialorder %v76_v19, %v74_v21  ;;  %v81_v23 = vrot.slane %v76_v19, 1  ;;  %v82_v24 = vrot.slane %v77_v20, 1 }
  0x2e   : > { %v79_v25 = vsel %vm78_vm7, %v76_v19, %v74_v21  ;;  %v80_v26 = vsel %vm78_vm7, %v77_v20, %v75_v22 }
  0x2f   : > { %vm83_vm8 = vcmp.ge.f32.partialorder %v81_v23, %v79_v25  ;;  %v86_v27 = vrot.slane %v81_v23, 1  ;;  %v87_v28 = vrot.slane %v82_v24, 1 }
  0x30   : > { %v84_v29 = vsel %vm83_vm8, %v81_v23, %v79_v25  ;;  %v85_v30 = vsel %vm83_vm8, %v82_v24, %v80_v26 }
  0x31   : > { %vm88_vm9 = vcmp.ge.f32.partialorder %v86_v27, %v84_v29  ;;  %v91_v31 = vrot.slane %v86_v27, 1  ;;  %v92_v32 = vrot.slane %v87_v28, 1 }
  0x32   : > { %v89_v33 = vsel %vm88_vm9, %v86_v27, %v84_v29  ;;  %v90_v34 = vsel %vm88_vm9, %v87_v28, %v85_v30 }
  0x33   : > { %vm93_vm10 = vcmp.ge.f32.partialorder %v91_v31, %v89_v33  ;;  %v96_v35 = vrot.slane %v91_v31, 1  ;;  %v97_v36 = vrot.slane %v92_v32, 1 }
  0x34   : > { %v94_v37 = vsel %vm93_vm10, %v91_v31, %v89_v33  ;;  %v95_v38 = vsel %vm93_vm10, %v92_v32, %v90_v34 }
  0x35   : > { %vm98_vm11 = vcmp.ge.f32.partialorder %v96_v35, %v94_v37  ;;  %v101_v39 = vrot.slane %v96_v35, 1  ;;  %v102_v40 = vrot.slane %v97_v36, 1 }
  0x36   : > { %v99_v41 = vsel %vm98_vm11, %v96_v35, %v94_v37  ;;  %v100_v42 = vsel %vm98_vm11, %v97_v36, %v95_v38 }
  0x37   : > { %vm103_vm12 = vcmp.ge.f32.partialorder %v101_v39, %v99_v41 }
  0x38   : > { %v105_v43 = vsel %vm103_vm12, %v102_v40, %v100_v42 }
  0x39   : > { %107 = vrot.lane.b32.xlu0 %v105_v43, %s106_s27 }
  0xab   : > { %v108_v46 = vpop.permute.xlu0 %107 }
  0xac   : > { %367 = vpush %v108_v46 }
  0xdd   : > { %s368_s29 = spop %367 }
  0xde   : > { %v114_v50 = vstv %s368_s29  ;;  %s119_s4 = scalar_lea.vmem [#allocation3], %s368_s29  ;;  %s125_s5 = scalar_lea.vmem [#allocation9], %s368_s29 }
  0xdf   : > { %v116_v51 = vsel %vm113_vm15, %v114_v50, %v115_v47  ;;  %v121_v52 = vld [vmem:[%s119_s4] ss:$0 sm:$0xff] }
  0xe0   : > { %v127_v53 = vld [vmem:[%s125_s5] ss:$0 sm:$0xff]  ;;  %117 = vst [vmem:[#allocation4] sm:$0x1] %v116_v51  ;;  %122 = vst [vmem:[%s119_s4] sm:$0x1] %v120_v48  ;;  %vm130_vm1 = vcmp.ne.f32.partialorder %v121_v52, 0.0 }
  0xe1   : > { %128 = vst [vmem:[%s125_s5] sm:$0x1] %v126_v49  ;;  %123 = vst [vmem:[%s118_s28] sm:$0x1] %v121_v52  ;;  %v137_v3 = vsel %vm136_vm13, %v121_v52, 0.0 }
  0xe2   : > { %129 = vst [vmem:[%s124_s30] sm:$0x1] %v127_v53  ;;  %vm131_vm3 = vmand %vm113_vm15, %vm130_vm1 }
  0xe3   : > { %v132_v54 = vsel %vm131_vm3, %v121_v52, 1.0 }
  0xe4   : > { %v160_v55 = vsel %vm159_vm14, %v132_v54, 1.0  ;;  %v145_v56 = vsel %vm144_vm2, %v132_v54, 1.0 }
  0xe5   : > { %446 = vrcp.f32 %v160_v55 }
  0xe6   : > { %448 = vrcp.f32 %v145_v56 }
  0xe7   :  { %v223_v11 = vld [vmem:[#allocation4] sm:$0x1] (%p40_p9) }
  0xe8   : > { %v156_v58 = vld [vmem:[#allocation3 + $0x8] sm:$0xff]  ;;  %v141_v61 = vld [vmem:[#allocation3] sm:$0xff]  ;;  %225 = vst [vmem:[#allocation5] sm:$0x1] (%p40_p9), %v223_v11 }
  0xe9   :  { %v170_v10 = vld [vmem:[#allocation9] sm:$0xff] (%p40_p9)  ;;  %v172_v12 = vld [vmem:[#allocation9 + $0x8] sm:$0xff] (%p40_p9) }
  0xef   : > { %v447_v57 = vpop.eup %446 }
  0xf0   : > { %v449_v59 = vpop.eup %448  ;;  %v162_v60 = vmul.f32 %v447_v57, %v156_v58 }
  0xf1   : > { %v147_v62 = vmul.f32 %v449_v59, %v141_v61 }
  0xf2   : > { %v164_v63 = vsel %vm643_vm0, %v162_v60, 0.0 }
  0xf3   : > { %165 = vadd.xlane.f32.xlu1 %v164_v63  ;;  %v149_v1 = vsel %vm148_vm4, %v147_v62, 0.0 }
  0xf4   : > { %150 = vadd.xlane.f32.xlu0 %v149_v1 }
 0x121   :  { %187 = vxpose.xlu0.b32.start [1/2] (short) (narrow) (%p40_p9), %v170_v10, 8 }
 0x125   :  { %188 = vxpose.xlu0.b32.end [2/2] (short) (narrow) (%p40_p9), %v172_v12, 8 }
 0x180   : > { %v166_v4 = vpop.xlane.xlu1 %165  ;;  %42 = sbr.rel (!%p40_p9) target bundleno = 32 (0x20), region = 105 }
 0x181   : > { %v167_v5 = vmul.f32 %v166_v4, %v137_v3  ;;  %v151_v6 = vpop.xlane.xlu0 %150 }
 0x182   : > { %v152_v7 = vmul.f32 %v151_v6, %v137_v3 }
 0x183   : > { %v168_v8 = vsub.f32 %v162_v60, %v167_v5 }
 0x184   : > { %v153_v9 = vsub.f32 %v147_v62, %v152_v7 }
 0x185   : > { %169 = vst [vmem:[#allocation3 + $0x8] sm:$0xff] %v168_v8 }
 0x186   : > { %154 = vst [vmem:[#allocation3] sm:$0xff] %v153_v9 }
 0x1a1   :  { %v203_v13 = vpop.trf.xlu0 }
 0x1a2   :  { %219 = vst [vmem:[#allocation6] sm:$0x1] %v203_v13 }
 0x1a9   :  { %v229_v14 = vld [vmem:[#allocation6] sm:$0x1] }
 0x1aa   :  { %231 = vst [vmem:[#allocation7] sm:$0x1] %v229_v14 }
 0x1ab LB: > { %v279_v15 = vld [vmem:[%s572_s9] sm:$0xff]  ;;  %s281_s9 = scalar_lea.vmem %s572_s9, 8   ;;  %s572_s9 = sphi %s570_s9, %s281_s9   ;;  %s568_s8 = sphi %s566_s8, %s282_s8  }
 0x1ac   : > { %280 = vst [vmem:[%s568_s8] sm:$0xff] %v279_v15  ;;  %s282_s8 = scalar_lea.vmem %s568_s8, 8   ;;  %p276_p10 = scmp.gt.s32.totalorder %s281_s9, [#allocation3 + $0x8] }
 0x1ad   :  { %s576_s10 = smov (%p276_p10), [#allocation5]   ;;  %s577_s12 = smov (%p276_p10), [#allocation7]  }
 0x1ae   :  { %278 = sbr.rel (!%p276_p10) target bundleno = 427 (0x1ab), region = 127  ;;  %s299_s11 = sshll.u32 (%p276_p10), %s576_s10, 4  ;;  %s300_s11 = int_to_ptr.vmem [resolvable:$true] %s299_s11 }
 0x1af   :  { %s308_s13 = sshll.u32 (%p276_p10), %s577_s12, 4  ;;  %s472_s1 = scalar_lea.vmem (%p276_p10), %s300_s11, 16  ;;  %s309_s13 = int_to_ptr.vmem [resolvable:$true] %s308_s13 }
 0x1b0   :  { %p473_p11 = scmp.ne.s32.totalorder (%p276_p10), %s300_s11, %s472_s1  ;;  %s476_s14 = scalar_lea.vmem (%p276_p10), %s300_s11, 32 }
 0x1b1   :  { %p477_p12 = scmp.lt.s32.totalorder (%p276_p10), %s300_s11, %s300_s11  ;;  %p478_p13 = scmp.lt.s32.totalorder (%p276_p10), %s476_s14, %s472_s1 }
 0x1b3   :  { %p479_p0 = por (%p276_p10), %p478_p13, %p477_p12 }
 0x1b5   :  { %p480_p1 = pnand %p479_p0, %p473_p11 }
 0x1b7   :  { %483 = shalt.err (!%p480_p1)
}
 0x1b8   :  { %s484_s17 = scalar_lea.hbm %s696_s2, 16 }
 0x1b9   :  { %p485_p2 = scmp.ne.s32.totalorder %s696_s2, %s484_s17  ;;  %p488_p3 = scmp.lt.u32.totalorder %s484_s17, %s696_s2 }
 0x1bb   :  { %p490_p4 = pnand %p488_p3, %p485_p2 }
 0x1bd   :  { %493 = shalt.err (!%p490_p4)
}
 0x1be   :  { %302 = dma.vmem_to_hbm [thread:$0]  %s300_s11, 16, %s696_s2, [#allocation2]  }
 0x1bf   :  { %s494_s24 = scalar_lea.vmem %s309_s13, 16  ;;  %s498_s25 = scalar_lea.vmem %s309_s13, 32 }
 0x1c0   :  { %p495_p5 = scmp.ne.s32.totalorder %s309_s13, %s494_s24  ;;  %p499_p6 = scmp.lt.s32.totalorder %s309_s13, %s309_s13 }
 0x1c1   :  { %p500_p7 = scmp.lt.s32.totalorder %s498_s25, %s494_s24 }
 0x1c3   :  { %p501_p8 = por %p500_p7, %p499_p6 }
 0x1c5   :  { %p502_p9 = pnand %p501_p8, %p495_p5 }
 0x1c7   :  { %505 = shalt.err (!%p502_p9)
}
 0x1c8   :  { %s506_s27 = scalar_lea.hbm %s697_s3, 16 }
 0x1c9   :  { %p507_p10 = scmp.ne.s32.totalorder %s697_s3, %s506_s27  ;;  %p510_p11 = scmp.lt.u32.totalorder %s506_s27, %s697_s3 }
 0x1cb   :  { %p512_p12 = pnand %p510_p11, %p507_p10 }
 0x1cd   :  { %515 = shalt.err (!%p512_p12)
}
 0x1ce   :  { %311 = dma.vmem_to_hbm [thread:$0]  %s309_s13, 16, %s697_s3, [#allocation8]  }
 0x1cf   :  { %554 = dma.done.wait [#allocation2], 16  }
 0x1d0   :  { %555 = vsyncadd [#allocation2], 4294967280 }
 0x1d1   :  { %556 = dma.done.wait [#allocation8], 16  }
 0x1d2   :  { %557 = vsyncadd [#allocation8], 4294967280 }
 0x1d3   :  { %318 = vsyncpa [#allocation1], 1 }
 0x1d4   :  { %319 = vsyncpa [#allocation2], 1 }
 0x1d5   :  { %320 = vsyncpa [#allocation8], 1 }

// kernel: normflownet_forward.9
= control target key start
LH: loop header
LB: loop body
LE: loop exit
PB: predicated region body
PF: predicated region fallthrough
CT: control target
= control target key end

     0   :  { %s2460_s17 = smov 0   ;;  %s2828_s0 = inlined_call_operand.vmem [shape: f32[2,16,32], index: 0, kind: input, shape index: {}]   ;;  %s2829_s1 = inlined_call_operand.vmem [shape: f32[3,16,1], index: 1, kind: input, shape index: {}]   ;;  %s2830_s2 = inlined_call_operand.vmem [shape: f32[32,32], index: 2, kind: input, shape index: {}]   ;;  %s2831_s3 = inlined_call_operand.vmem [shape: f32[1,32], index: 3, kind: input, shape index: {}]   ;;  %s2832_s4 = inlined_call_operand.vmem [shape: bf16[9,16,32], index: 4, kind: input, shape index: {}]   ;;  %s2833_s5 = inlined_call_operand.vmem [shape: f32[1,32], index: 5, kind: input, shape index: {}, may-alias: {5,7}]   ;;  %s2834_s6 = inlined_call_operand.vmem [shape: bf16[32,32], index: 6, kind: input, shape index: {}]   ;;  %s2835_s7 = inlined_call_operand.vmem [shape: f32[1,32], index: 7, kind: input, shape index: {}, may-alias: {5,7}]   ;;  %s2836_s8 = inlined_call_operand.vmem [shape: bf16[9,32,32], index: 8, kind: input, shape index: {}]   ;;  %s2837_s9 = inlined_call_operand.vmem [shape: f32[1,32], index: 9, kind: input, shape index: {}]   ;;  %s2838_s10 = inlined_call_operand.vmem [shape: f32[2,16,32], index: 10, kind: output, shape index: {0}]   ;;  %s2839_s11 = inlined_call_operand.vmem [shape: f32[2,1,1], index: 11, kind: output, shape index: {1}]  }
   0x1 LB: > { %s2005_s18 = sadd.s32 4294967295, %s2393_s17   ;;  %p2009_p0 = scmp.ge.s32.totalorder %s2393_s17, 1  ;;  %s2393_s17 = sphi %s2460_s17, %s22_s17  }
   0x2   : > { %p340_p1 = scmp.lt.s32.totalorder %s2393_s17, 3 }
   0x4   : > { %p341_p2 = pnand %p2009_p0, %p340_p1 }
   0x5   : > { %v399_v0 = vld [vmem:[%s2830_s2] sm:$0xff] (!%p341_p2)  ;;  %v400_v1 = vld [vmem:[%s2830_s2 + $0x8] sm:$0xff] (!%p341_p2)  ;;  %v401_v2 = vld [vmem:[%s2830_s2 + $0x10] sm:$0xff] (!%p341_p2)  ;;  %p383_p3 = scmp.lt.s32.totalorder (!%p341_p2), %s2005_s18, 1  ;;  %v2395_v5 = vmov (!%p341_p2), 0   ;;  %vm410_vm0 = vcmask (!%p341_p2), 261120  }
   0x6   : > { %344 = sbr.rel (%p341_p2) target bundleno = 1339 (0x53b), region = 60  ;;  %v2321_v3 = vpack.c.bf16 (!%p341_p2), %v400_v1, %v399_v0  ;;  %v402_v4 = vld [vmem:[%s2830_s2 + $0x18] sm:$0xff] (!%p341_p2)  ;;  %2344 = vset.pattern.permute.xlu0 (!%p341_p2), %v2395_v5  ;;  %2345 = vset.pattern.permute.xlu1 (!%p341_p2), %v2395_v5  ;;  %v2023_v6 = vld [vmem:[%s2829_s1 + $0x20] sm:$0xff] (!%p341_p2)  ;;  %v2024_v9 = vld [vmem:[%s2829_s1 + $0x28] sm:$0xff] (!%p341_p2)  ;;  %v2396_v14 = vmov (!%p341_p2), 0.0   ;;  %vm2397_vm1 = vmmov (!%p341_p2), 0  }
   0x7   : > { %v503_v7 = vld [vmem:[%s2829_s1] sm:$0xff] (!%p341_p2)  ;;  %v2325_v8 = vpack.c.bf16 (!%p341_p2), %v402_v4, %v401_v2  ;;  %644 = vperm.xlu0 (!%p341_p2), %2344, %v2023_v6   ;;  %v504_v10 = vld [vmem:[%s2829_s1 + $0x8] sm:$0xff] (!%p341_p2)  ;;  %2187 = vmatprep.subr.bf16.mxu1 (!%p341_p2), %v2396_v14  ;;  %vm494_vm2 = vcmask (!%p341_p2), 1044480   ;;  %vm723_vm3 = vcmask (!%p341_p2), 1043456   ;;  %vm650_vm4 = vcmask (!%p341_p2), 1041408   ;;  %v2349_v39 = vld [vmem:[%s2832_s4 + $0x18] sm:$0xff] (!%p341_p2)  }
   0x8   : > { %507 = vperm.xlu1 (!%p341_p2), %2345, %v503_v7   ;;  %2322 = vmatprep.subr.bf16.mxu0 (!%p341_p2), %v2321_v3  ;;  %v2346_v13 = vld [vmem:[%s2832_s4] sm:$0xff] (!%p341_p2)   ;;  %v2347_v15 = vld [vmem:[%s2832_s4 + $0x8] sm:$0xff] (!%p341_p2)   ;;  %vm740_vm5 = vcmask (!%p341_p2), 1045504   ;;  %vm544_vm6 = vcmask (!%p341_p2), 130048   ;;  %vm525_vm7 = vsmask.f32 (!%p341_p2), 7424 }
   0x9   : > { %2324 = vmatpush3.bf16.msra.mxu0 (!%p341_p2), %v2321_v3  ;;  %2189 = vmatprep.mubr.msk.bf16.mxu1 (!%p341_p2), %vm2397_vm1, %v2396_v14  ;;  %v2014_v18 = vld [vmem:[%s2831_s3] ss:$0 sm:$0xff] (!%p341_p2)  ;;  %v2348_v63 = vld [vmem:[%s2832_s4 + $0x10] sm:$0xff] (!%p341_p2)   ;;  %v2351_v4 = vld [vmem:[%s2832_s4 + $0x28] sm:$0xff] (!%p341_p2)   ;;  %vm667_vm8 = vcmask (!%p341_p2), 1046528   ;;  %s2398_s24 = smov (!%p341_p2), 112  }
   0xa   : > { %2326 = vmatprep.subr.bf16.mxu0 (!%p341_p2), %v2325_v8  ;;  %2188 = vmatpush3.bf16.msra.mxu1 (!%p341_p2), %v2347_v15  ;;  %vm799_vm9 = vsmask.f32 (!%p341_p2), 5376  ;;  %s2399_s25 = smov (!%p341_p2), 16   ;;  %vm1923_vm10 = vcmask (!%p341_p2), 0  }
   0xb   : > { %648 = vperm.xlu0 (!%p341_p2), %2344, %v2024_v9   ;;  %2199 = vmatprep.subr.bf16.mxu1 (!%p341_p2), %v2396_v14 }
   0xc   : > { %512 = vperm.xlu1 (!%p341_p2), %2345, %v504_v10  }
   0xd   : > { %s2841_s18 = smov (!%p383_p3, %s2005_s18), 1  ;;  %2328 = vmatpush3.bf16.msra.mxu0 %v2325_v8 }
   0xe   : > { %s2120_s16 = sshll.u32 %s2841_s18, 4  ;;  %2193 = vmatprep.subr.bf16.mxu0 %v2396_v14  ;;  %s395_s30 = scalar_lea.vmem %s2839_s11, %s2841_s18 }
   0xf   : > { %s387_s21 = scalar_lea.vmem %s2828_s0, %s2120_s16  ;;  %s392_s28 = scalar_lea.vmem %s2838_s10, %s2120_s16 }
  0x10   : > { %v397_v11 = vld [vmem:[%s387_s21] sm:$0xff]  ;;  %v398_v12 = vld [vmem:[%s387_s21 + $0x8] sm:$0xff] }
  0x11   : > { %2184 = vmatprep.mubr.msk.f32.mxu0 %vm410_vm0, %v397_v11 }
  0x12   : > { %2185 = vmatmul.mubr.msk.f32.vlgmr.msra.gmra.mrb[0].mxu0 %vm410_vm0, %v398_v12 }
  0x13   : > { %2194 = vmatpush3.bf16.msra.mxu0 %v2346_v13  ;;  %2195 = vmatprep.mubr.msk.bf16.mxu0 %vm2397_vm1, %v2396_v14 }
  0x14   : > { %2205 = vmatprep.subr.bf16.mxu0 %v2396_v14 }
  0x86   : > { %v645_v17 = vpop.permute.xlu0 %644 }
  0x87   : > { %v2518_v16 = vpop.permute.xlu1 %507  ;;  %v2537_v29 = vrot.slane %v645_v17, 6  ;;  %v2539_v30 = vrot.slane %v645_v17, 2 }
  0x88   : > { %v2530_v24 = vrot.slane %v2518_v16, 4 }
  0x8a   : > { %v649_v26 = vpop.permute.xlu0 %648 }
  0x8b   : > { %v2523_v20 = vpop.permute.xlu1 %512  ;;  %v2548_v34 = vrot.slane %v649_v26, 6  ;;  %v2550_v35 = vrot.slane %v649_v26, 2 }
  0x8c   : > { %v2534_v27 = vrot.slane %v2523_v20, 4 }
  0x8d   : > { %v2567_v43 = vsel %vm650_vm4, %v2537_v29, %v2548_v34  ;;  %v2577_v47 = vsel %vm740_vm5, %v2539_v30, %v2550_v35 }
  0x8e   : > { %v2557_v38 = vsel %vm723_vm3, %v2530_v24, %v2534_v27 }
  0xe5   : > { %v2186_v19 = vpop.f32.mrb[0].mxu0 }
  0xe6   : > { %v2525_v21 = vadd.f32 %v2186_v19, %v2014_v18  ;;  %v483_v22 = vpop.f32.mrb[1].mxu0 }
  0xe7   : > { %v2527_v23 = vadd.f32 %v2014_v18, %v483_v22  ;;  %v2350_v18 = vld [vmem:[%s2832_s4 + $0x20] sm:$0xff]  }
  0xe8   : > { %v496_v25 = vrot.slane %v2525_v21, 3 }
  0xe9   : > { %v495_v28 = vrot.slane %v2527_v23, 3 }
  0xea   : > { %v2542_v31 = vsel %vm494_vm2, %v496_v25, 0.0 }
  0xeb   : > { %v2545_v32 = vsel %vm494_vm2, %v495_v28, %v496_v25  ;;  %v501_v33 = vsel %vm494_vm2, 0.0, %v495_v28  ;;  %v521_v42 = vpack.c.bf16 %v2542_v31, %v2542_v31  ;;  %v659_v46 = vmul.f32 %v2548_v34, %v2542_v31 }
  0xec   : > { %v515_v36 = vmul.f32 %v2518_v16, %v501_v33  ;;  %v516_v37 = vmul.f32 %v2523_v20, %v2545_v32  ;;  %v520_v41 = vpack.c.bf16 %v2545_v32, %v501_v33  ;;  %v730_v44 = vmul.f32 %v2530_v24, %v501_v33 }
  0xed   : > { %v731_v45 = vmul.f32 %v2557_v38, %v2545_v32  ;;  %v534_v49 = vshll.u32 %v521_v42, 16  ;;  %v870_v50 = vmul.f32 %v2550_v35, %v2542_v31  ;;  %v732_v51 = vmul.f32 %v2534_v27, %v2542_v31 }
  0xee   : > { %v517_v40 = vpack.c.bf16 %v516_v37, %v515_v36  ;;  %v529_v48 = vshll.u32 %v520_v41, 16  ;;  %v868_v53 = vmul.f32 %v2539_v30, %v501_v33  ;;  %v527_v54 = vshrl.u32 %v520_v41, 16 }
  0xef   : > { %v733_v52 = vpack.c.bf16 %v731_v45, %v730_v44  ;;  %v657_v56 = vmul.f32 %v2537_v29, %v501_v33  ;;  %v869_v57 = vmul.f32 %v2577_v47, %v2545_v32  ;;  %v734_v58 = vpack.c.bf16 %v732_v51, %v732_v51  ;;  %v2353_v33 = vld [vmem:[%s2832_s4 + $0x38] sm:$0xff]   ;;  %v2352_v45 = vld [vmem:[%s2832_s4 + $0x30] sm:$0xff]  }
  0xf0   : > { %2196 = vmatmul.mubr.msk.bf16.vlgmr.msra.gmra.mrb[4].mxu0 %vm544_vm6, %v517_v40  ;;  %v531_v55 = vrot.slane %v529_v48, 1  ;;  %v658_v60 = vmul.f32 %v2567_v43, %v2545_v32  ;;  %v536_v62 = vrot.slane %v534_v49, 1  ;;  %v661_v1 = vpack.c.bf16 %v659_v46, %v659_v46 }
  0xf1   : > { %2206 = vmatpush3.bf16.msra.mxu0 %v2349_v39  ;;  %2207 = vmatprep.mubr.msk.bf16.mxu0 %vm2397_vm1, %v2396_v14  ;;  %v741_v59 = vrot.slane %v733_v52, 2  ;;  %v742_v0 = vrot.slane %v734_v58, 2  ;;  %v871_v6 = vpack.c.bf16 %v869_v57, %v868_v53  ;;  %v872_v7 = vpack.c.bf16 %v870_v50, %v870_v50  ;;  %v2354_v53 = vld [vmem:[%s2832_s4 + $0x40] sm:$0xff]  }
  0xf2   : > { %2217 = vmatprep.subr.bf16.mxu0 %v2396_v14  ;;  %v532_v61 = vor.u32 %v531_v55, %v527_v54  ;;  %v660_v3 = vpack.c.bf16 %v658_v60, %v657_v56  ;;  %v992_v9 = vpack.c.bf16 %v2542_v31, %v2545_v32  ;;  %v669_v11 = vrot.slane %v661_v1, 1  ;;  %v2355_v58 = vld [vmem:[%s2834_s6] sm:$0xff]  }
  0xf3   : > { %v743_v8 = vsel %vm740_vm5, %v741_v59, %v742_v0  ;;  %v803_v12 = vshrl.u32 %v521_v42, 16  ;;  %v879_v13 = vrot.slane %v871_v6, 3  ;;  %v880_v15 = vrot.slane %v872_v7, 3  ;;  %v2356_v59 = vld [vmem:[%s2834_s6 + $0x8] sm:$0xff]  }
  0xf4   : > { %v537_v2 = vsel %vm525_vm7, %v532_v61, %v536_v62  ;;  %v668_v10 = vrot.slane %v660_v3, 1  ;;  %v1000_v17 = vshll.u32 %v992_v9, 16  ;;  %v800_v19 = vrot.slane %v527_v54, 2 }
  0xf5   : > { %2190 = vmatmul.mubr.msk.bf16.vlgmr.msra.gmra.mrb[0].mxu1 %vm544_vm6, %v537_v2  ;;  %v806_v22 = vrot.slane %v534_v49, 3  ;;  %v801_v26 = vrot.slane %v529_v48, 3  ;;  %v805_v28 = vrot.slane %v803_v12, 2  ;;  %v881_v36 = vsel %vm494_vm2, %v879_v13, %v880_v15 }
  0xf6   : > { %2200 = vmatpush3.bf16.msra.mxu1 %v2348_v63  ;;  %2201 = vmatprep.mubr.msk.bf16.mxu1 %vm2397_vm1, %v2396_v14  ;;  %v670_v25 = vsel %vm667_vm8, %v668_v10, %v669_v11  ;;  %v1002_v37 = vrot.slane %v1000_v17, 1  ;;  %v998_v39 = vshrl.u32 %v992_v9, 16  ;;  %v2627_v42 = vrot.slane %v2395_v5, 1 }
  0xf7   : > { %2211 = vmatprep.subr.bf16.mxu1 %v2396_v14  ;;  %v802_v40 = vor.u32 %v801_v26, %v800_v19  ;;  %v807_v41 = vor.u32 %v806_v22, %v805_v28  ;;  %v934_v5 = vmul.f32 %v2518_v16, %v2545_v32  ;;  %v935_v49 = vmul.f32 %v2523_v20, %v2542_v31 }
  0xf8   : > { %2208 = vmatmul.mubr.msk.bf16.vlgmr.msra.gmra.mrb[8].mxu0 %vm544_vm6, %v743_v8  ;;  %v1003_v44 = vor.u32 %v1002_v37, %v998_v39  ;;  %v1063_v50 = vmul.f32 0.0, %v2548_v34  ;;  %v1061_v51 = vmul.f32 %v2537_v29, %v2545_v32  ;;  %v1062_v52 = vmul.f32 %v2567_v43, %v2542_v31 }
  0xf9   : > { %2218 = vmatpush3.bf16.msra.mxu0 %v2351_v4  ;;  %2219 = vmatprep.mubr.msk.bf16.mxu0 %vm2397_vm1, %v2396_v14  ;;  %v808_v46 = vsel %vm799_vm9, %v802_v40, %v807_v41  ;;  %v936_v54 = vpack.c.bf16 %v935_v49, %v934_v5 }
  0xfa   : > { %2229 = vmatprep.subr.bf16.mxu0 %v2396_v14  ;;  %v1008_v48 = vsel %vm525_vm7, %v1003_v44, %v2627_v42  ;;  %v1065_v55 = vpack.c.bf16 %v1063_v50, %v1063_v50  ;;  %v1064_v56 = vpack.c.bf16 %v1062_v52, %v1061_v51 }
  0xfc   : > { %v1071_v32 = vrot.slane %v1064_v56, 1  ;;  %v2659_v31 = vrot.slane %v1065_v55, 1 }
  0xfd   : > { %2202 = vmatmul.mubr.msk.bf16.vlgmr.msra.gmra.mrb[4].mxu1 %vm544_vm6, %v670_v25 }
  0xfe   : > { %2212 = vmatpush3.bf16.msra.mxu1 %v2350_v18  ;;  %2213 = vmatprep.mubr.msk.bf16.mxu1 %vm2397_vm1, %v2396_v14  ;;  %v1073_v57 = vsel %vm667_vm8, %v1071_v32, %v2659_v31 }
  0xff   : > { %2223 = vmatprep.subr.bf16.mxu1 %v2396_v14 }
 0x100   : > { %2220 = vmatmul.mubr.msk.bf16.vlgmr.msra.gmra.mrb[12].mxu0 %vm544_vm6, %v881_v36 }
 0x101   : > { %2230 = vmatpush3.bf16.msra.mxu0 %v2353_v33  ;;  %2231 = vmatprep.mubr.msk.bf16.mxu0 %vm2397_vm1, %v2396_v14 }
 0x102   : > { %2241 = vmatprep.subr.bf16.mxu0 %v2396_v14 }
 0x105   : > { %2214 = vmatmul.mubr.msk.bf16.vlgmr.msra.gmra.mrb[8].mxu1 %vm544_vm6, %v808_v46 }
 0x106   : > { %2224 = vmatpush3.bf16.msra.mxu1 %v2352_v45  ;;  %2225 = vmatprep.mubr.msk.bf16.mxu1 %vm2397_vm1, %v2396_v14 }
 0x107   : > { %2235 = vmatprep.subr.bf16.mxu1 %v2396_v14 }
 0x108   : > { %2232 = vmatmul.mubr.msk.bf16.vlgmr.msra.gmra.mrb[16].mxu0 %vm544_vm6, %v1008_v48 }
 0x109   : > { %2245 = vmatprep.mubr.msk.bf16.mxu0 %vm2397_vm1, %v2396_v14  ;;  %2242 = vmatpush3.bf16.msra.mxu0 %v2355_v58 }
 0x10a   : > { %2243 = vmatprep.subr.bf16.mxu0 %v2396_v14 }
 0x10d   : > { %2226 = vmatmul.mubr.msk.bf16.vlgmr.msra.gmra.mrb[12].mxu1 %vm544_vm6, %v936_v54  ;;  %2244 = vmatpush3.bf16.msra.mxu0 %v2356_v59  ;;  %v2053_v59 = vld [vmem:[%s2833_s5] ss:$0 sm:$0xff] }
 0x10e   : > { %2236 = vmatpush3.bf16.msra.mxu1 %v2354_v53  ;;  %2237 = vmatprep.mubr.msk.bf16.mxu1 %vm2397_vm1, %v2396_v14 }
 0x10f   : > { %2249 = vmatprep.subr.bf16.mxu1 %v2396_v14  ;;  %2257 = vmatprep.subr.bf16.mxu0 %v2396_v14 }
 0x115   : > { %2238 = vmatmul.mubr.msk.bf16.vlgmr.msra.gmra.mrb[16].mxu1 %vm544_vm6, %v1073_v57 }
 0x116   : > { %2253 = vmatprep.mubr.msk.bf16.mxu1 %vm2397_vm1, %v2396_v14 }
 0x1c3   : > { %v632_v60 = vpop.f32.mrb[4].mxu0 }
 0x1c4   : > { %v2197_v61 = vpop.f32.mrb[5].mxu0 }
 0x1c5   : > { %v635_v62 = vpop.f32.mrb[6].mxu0 }
 0x1c6   : > { %v2198_v63 = vpop.f32.mrb[7].mxu0 }
 0x1c8   : > { %v582_v0 = vpop.f32.mrb[0].mxu1 }
 0x1c9   : > { %v633_v1 = vadd.f32 %v632_v60, %v582_v0  ;;  %v2191_v2 = vpop.f32.mrb[1].mxu1 }
 0x1ca   : > { %v585_v4 = vpop.f32.mrb[2].mxu1 }
 0x1cb   : > { %v787_v3 = vpop.f32.mrb[8].mxu0  ;;  %v636_v7 = vadd.f32 %v635_v62, %v585_v4  ;;  %v2192_v8 = vpop.f32.mrb[3].mxu1 }
 0x1cc   : > { %v2209_v6 = vpop.f32.mrb[9].mxu0  ;;  %v2358_v8 = vld [vmem:[%s2836_s8 + $0x10] sm:$0xff]  }
 0x1cd   : > { %v790_v9 = vpop.f32.mrb[10].mxu0  ;;  %2250 = vmatpush3.bf16.msra.mxu1 %v2358_v8 }
 0x1ce   : > { %v2210_v10 = vpop.f32.mrb[11].mxu0  ;;  %2251 = vmatprep.subr.bf16.mxu1 %v2396_v14 }
 0x1cf   : > { %v2360_v10 = vld [vmem:[%s2836_s8 + $0x18] sm:$0xff]  }
 0x1d0   : > { %v714_v11 = vpop.f32.mrb[4].mxu1 }
 0x1d1   : > { %v721_v12 = vadd.f32 %v714_v11, %v633_v1  ;;  %v2203_v13 = vpop.f32.mrb[5].mxu1  ;;  %2252 = vmatpush3.bf16.msra.mxu1 %v2360_v10  ;;  %v2054_v11 = vld [vmem:[%s2835_s7] ss:$0 sm:$0xff] }
 0x1d2   : > { %v717_v17 = vpop.f32.mrb[6].mxu1  ;;  %2265 = vmatprep.subr.bf16.mxu1 %v2396_v14 }
 0x1d3   : > { %v925_v15 = vpop.f32.mrb[12].mxu0  ;;  %v722_v19 = vadd.f32 %v717_v17, %v636_v7  ;;  %v2204_v22 = vpop.f32.mrb[7].mxu1  ;;  %v794_v26 = vadd.f32 %v787_v3, %v721_v12  ;;  %v2357_v7 = vld [vmem:[%s2836_s8] sm:$0xff]  }
 0x1d4   : > { %v2221_v18 = vpop.f32.mrb[13].mxu0 }
 0x1d5   : > { %v928_v25 = vpop.f32.mrb[14].mxu0  ;;  %v795_v33 = vadd.f32 %v790_v9, %v722_v19  ;;  %v2359_v9 = vld [vmem:[%s2836_s8 + $0x8] sm:$0xff]  }
 0x1d6   : > { %v2222_v28 = vpop.f32.mrb[15].mxu0 }
 0x1d8   : > { %v852_v36 = vpop.f32.mrb[8].mxu1 }
 0x1d9   : > { %v859_v37 = vadd.f32 %v852_v36, %v794_v26  ;;  %v2215_v39 = vpop.f32.mrb[9].mxu1 }
 0x1da   : > { %v855_v41 = vpop.f32.mrb[10].mxu1 }
 0x1db   : > { %v1052_v40 = vpop.f32.mrb[16].mxu0  ;;  %v860_v45 = vadd.f32 %v855_v41, %v795_v33  ;;  %v2216_v46 = vpop.f32.mrb[11].mxu1  ;;  %v932_v5 = vadd.f32 %v925_v15, %v859_v37 }
 0x1dc   : > { %v2233_v44 = vpop.f32.mrb[17].mxu0 }
 0x1dd   : > { %v1055_v48 = vpop.f32.mrb[18].mxu0  ;;  %v933_v50 = vadd.f32 %v928_v25, %v860_v45 }
 0x1de   : > { %v2234_v49 = vpop.f32.mrb[19].mxu0 }
 0x1df   : > { %v2361_v49 = vld [vmem:[%s2836_s8 + $0x30] sm:$0xff]  }
 0x1e0   : > { %v983_v51 = vpop.f32.mrb[12].mxu1 }
 0x1e1   : > { %v990_v52 = vadd.f32 %v983_v51, %v932_v5  ;;  %v2227_v53 = vpop.f32.mrb[13].mxu1 }
 0x1e2   : > { %v986_v54 = vpop.f32.mrb[14].mxu1 }
 0x1e3   : > { %v991_v55 = vadd.f32 %v986_v54, %v933_v50  ;;  %v2228_v56 = vpop.f32.mrb[15].mxu1  ;;  %v1059_v32 = vadd.f32 %v1052_v40, %v990_v52 }
 0x1e5   : > { %v1060_v57 = vadd.f32 %v1055_v48, %v991_v55 }
 0x1e8   : > { %v1117_v58 = vpop.f32.mrb[16].mxu1 }
 0x1e9   : > { %v1124_v60 = vadd.f32 %v1117_v58, %v1059_v32  ;;  %v2239_v61 = vpop.f32.mrb[17].mxu1 }
 0x1ea   : > { %v1120_v62 = vpop.f32.mrb[18].mxu1 }
 0x1eb   : > { %v1133_v63 = vadd.f32 %v2053_v59, %v1124_v60  ;;  %v1125_v0 = vadd.f32 %v1120_v62, %v1060_v57  ;;  %v2240_v1 = vpop.f32.mrb[19].mxu1 }
 0x1ed   : > { %v1134_v2 = vadd.f32 %v2053_v59, %v1125_v0  ;;  %v1135_v3 = vmax.f32 %v1133_v63, 0.0 }
 0x1ef   : > { %v1136_v4 = vmax.f32 %v1134_v2, 0.0 }
 0x1f1   : > { %v1137_v6 = vpack.c.bf16 %v1136_v4, %v1135_v3 }
 0x1f3   : > { %2246 = vmatmul.mubr.msk.bf16.vlgmr.msra.gmra.mrb[20].mxu0 %vm410_vm0, %v1137_v6 }
 0x1f4   : > { %2261 = vmatprep.mubr.msk.bf16.mxu0 %vm2397_vm1, %v2396_v14  ;;  %2258 = vmatpush3.bf16.msra.mxu0 %v2357_v7 }
 0x1f5   : > { %2259 = vmatprep.subr.bf16.mxu0 %v2396_v14 }
 0x1f8   : > { %2260 = vmatpush3.bf16.msra.mxu0 %v2359_v9 }
 0x1f9   : > { %2273 = vmatprep.subr.bf16.mxu0 %v2396_v14 }
 0x2c6   : > { %v1198_v12 = vpop.f32.mrb[20].mxu0 }
 0x2c7   : > { %v1199_v13 = vadd.f32 %v2054_v11, %v1198_v12  ;;  %v2247_v15 = vpop.f32.mrb[21].mxu0 }
 0x2c8   : > { %v1201_v17 = vpop.f32.mrb[22].mxu0 }
 0x2c9   : > { %v1205_v18 = vmax.f32 %v1199_v13, 0.0  ;;  %v1202_v19 = vadd.f32 %v2054_v11, %v1201_v17  ;;  %v2248_v22 = vpop.f32.mrb[23].mxu0  ;;  %v2365_v13 = vld [vmem:[%s2836_s8 + $0x50] sm:$0xff]  }
 0x2ca   : > { %v2364_v22 = vld [vmem:[%s2836_s8 + $0x28] sm:$0xff]  }
 0x2cb   : > { %v1209_v25 = vrot.slane %v1205_v18, 3  ;;  %v1206_v26 = vmax.f32 %v1202_v19, 0.0 }
 0x2cd   : > { %v1215_v28 = vsel %vm494_vm2, 0.0, %v1209_v25  ;;  %v1210_v33 = vrot.slane %v1206_v26, 3 }
 0x2ce   : > { %v1217_v36 = vmul.f32 %v1215_v28, %v2518_v16  ;;  %v1355_v37 = vmul.f32 %v1215_v28, %v2537_v29  ;;  %v1428_v39 = vmul.f32 %v1215_v28, %v2530_v24  ;;  %v1573_v40 = vmul.f32 %v1215_v28, %v2539_v30 }
 0x2cf   : > { %v1211_v41 = vsel %vm494_vm2, %v1209_v25, %v1210_v33  ;;  %v1216_v44 = vsel %vm494_vm2, %v1210_v33, 0.0  ;;  %v2367_v33 = vld [vmem:[%s2836_s8 + $0x58] sm:$0xff]  }
 0x2d0   : > { %v1218_v45 = vmul.f32 %v1211_v41, %v2523_v20  ;;  %v1224_v46 = vpack.c.bf16 %v1211_v41, %v1215_v28  ;;  %v1225_v48 = vpack.c.bf16 %v1216_v44, %v1216_v44  ;;  %v1429_v5 = vmul.f32 %v1211_v41, %v2557_v38 }
 0x2d1   : > { %v1430_v50 = vmul.f32 %v1216_v44, %v2534_v27  ;;  %v1356_v24 = vmul.f32 %v1211_v41, %v2567_v43  ;;  %v1357_v30 = vmul.f32 %v1216_v44, %v2548_v34  ;;  %v1574_v51 = vmul.f32 %v1211_v41, %v2577_v47  ;;  %v2363_v34 = vld [vmem:[%s2836_s8 + $0x38] sm:$0xff]  }
 0x2d2   : > { %v1219_v52 = vpack.c.bf16 %v1218_v45, %v1217_v36  ;;  %v1232_v53 = vshrl.u32 %v1224_v46, 16  ;;  %v1234_v54 = vshll.u32 %v1224_v46, 16  ;;  %v1239_v55 = vshll.u32 %v1225_v48, 16  ;;  %v2370_v46 = vld [vmem:[%s2836_s8 + $0x60] sm:$0xff]  }
 0x2d3   : > { %v1431_v56 = vpack.c.bf16 %v1429_v5, %v1428_v39  ;;  %v1432_v32 = vpack.c.bf16 %v1430_v50, %v1430_v50  ;;  %v1358_v57 = vpack.c.bf16 %v1356_v24, %v1355_v37  ;;  %v1359_v38 = vpack.c.bf16 %v1357_v30, %v1357_v30  ;;  %v2369_v39 = vld [vmem:[%s2836_s8 + $0x70] sm:$0xff]   ;;  %v2372_v5 = vld [vmem:[%s2836_s8 + $0x68] sm:$0xff]   ;;  %v2373_v50 = vld [vmem:[%s2836_s8 + $0x80] sm:$0xff]  }
 0x2d4   : > { %2262 = vmatmul.mubr.msk.bf16.vlgmr.msra.gmra.mrb[24].mxu0 %vm410_vm0, %v1219_v52  ;;  %v1236_v58 = vrot.slane %v1234_v54, 1  ;;  %v1241_v59 = vrot.slane %v1239_v55, 1  ;;  %v1575_v27 = vmul.f32 %v1216_v44, %v2550_v35  ;;  %v1576_v60 = vpack.c.bf16 %v1574_v51, %v1573_v40  ;;  %v2362_v35 = vld [vmem:[%s2836_s8 + $0x20] sm:$0xff]   ;;  %v2368_v40 = vld [vmem:[%s2836_s8 + $0x48] sm:$0xff]  }
 0x2d5   : > { %2274 = vmatpush3.bf16.msra.mxu0 %v2361_v49  ;;  %2277 = vmatprep.mubr.msk.bf16.mxu0 %vm2397_vm1, %v2396_v14  ;;  %v1440_v47 = vrot.slane %v1431_v56, 2  ;;  %v1441_v61 = vrot.slane %v1432_v32, 2  ;;  %v1367_v62 = vrot.slane %v1358_v57, 1  ;;  %v1368_v63 = vrot.slane %v1359_v38, 1  ;;  %v2374_v24 = vld [vmem:[%s2836_s8 + $0x88] sm:$0xff]  }
 0x2d6   : > { %2275 = vmatprep.subr.bf16.mxu0 %v2396_v14  ;;  %v1237_v0 = vor.u32 %v1236_v58, %v1232_v53  ;;  %v1577_v1 = vpack.c.bf16 %v1575_v27, %v1575_v27  ;;  %v1585_v2 = vrot.slane %v1576_v60, 3  ;;  %v1506_v3 = vrot.slane %v1232_v53, 2 }
 0x2d7   : > { %v1442_v4 = vsel %vm740_vm5, %v1440_v47, %v1441_v61  ;;  %v1369_v6 = vsel %vm667_vm8, %v1367_v62, %v1368_v63  ;;  %v1507_v7 = vrot.slane %v1234_v54, 3  ;;  %v1509_v8 = vshrl.u32 %v1225_v48, 16 }
 0x2d8   : > { %v1242_v9 = vsel %vm525_vm7, %v1237_v0, %v1241_v59  ;;  %v1586_v10 = vrot.slane %v1577_v1, 3  ;;  %v1512_v11 = vrot.slane %v1239_v55, 3  ;;  %v1712_v12 = vpack.c.bf16 %v1216_v44, %v1211_v41 }
 0x2d9   : > { %2254 = vmatmul.mubr.msk.bf16.vlgmr.msra.gmra.mrb[20].mxu1 %vm410_vm0, %v1242_v9  ;;  %2276 = vmatpush3.bf16.msra.mxu0 %v2363_v34  ;;  %v1508_v15 = vor.u32 %v1507_v7, %v1506_v3  ;;  %v1511_v17 = vrot.slane %v1509_v8, 2  ;;  %v1646_v18 = vmul.f32 %v1211_v41, %v2518_v16  ;;  %v1647_v19 = vmul.f32 %v1216_v44, %v2523_v20 }
 0x2da   : > { %2266 = vmatpush3.bf16.msra.mxu1 %v2362_v35  ;;  %2289 = vmatprep.subr.bf16.mxu0 %v2396_v14  ;;  %v1587_v25 = vsel %vm494_vm2, %v1585_v2, %v1586_v10  ;;  %v1784_v26 = vmul.f32 %v1211_v41, %v2537_v29  ;;  %v1785_v20 = vmul.f32 %v1216_v44, %v2567_v43  ;;  %v2366_v43 = vld [vmem:[%s2836_s8 + $0x40] sm:$0xff]   ;;  %v1721_v37 = vshll.u32 %v1712_v12, 16  ;;  %v2371_v44 = vld [vmem:[%s2836_s8 + $0x78] sm:$0xff]  }
 0x2db   : > { %2267 = vmatprep.subr.bf16.mxu1 %v2396_v14  ;;  %2269 = vmatprep.mubr.msk.bf16.mxu1 %vm2397_vm1, %v2396_v14  ;;  %v1513_v28 = vor.u32 %v1512_v11, %v1511_v17  ;;  %v1648_v16 = vpack.c.bf16 %v1647_v19, %v1646_v18  ;;  %v1719_v45 = vshrl.u32 %v1712_v12, 16 }
 0x2dc   : > { %2278 = vmatmul.mubr.msk.bf16.vlgmr.msra.gmra.mrb[28].mxu0 %vm410_vm0, %v1442_v4  ;;  %v1786_v36 = vpack.c.bf16 %v1785_v20, %v1784_v26  ;;  %v1723_v41 = vrot.slane %v1721_v37, 1 }
 0x2dd   : > { %2290 = vmatpush3.bf16.msra.mxu0 %v2365_v13  ;;  %2293 = vmatprep.mubr.msk.bf16.mxu0 %vm2397_vm1, %v2396_v14  ;;  %v1514_v29 = vsel %vm799_vm9, %v1508_v15, %v1513_v28 }
 0x2de   : > { %2268 = vmatpush3.bf16.msra.mxu1 %v2364_v22  ;;  %2291 = vmatprep.subr.bf16.mxu0 %v2396_v14  ;;  %v1724_v48 = vor.u32 %v1723_v41, %v1719_v45 }
 0x2df   : > { %2281 = vmatprep.subr.bf16.mxu1 %v2396_v14 }
 0x2e0   : > { %v1725_v49 = vsel %vm525_vm7, %v1724_v48, %v2627_v42  ;;  %v1793_v42 = vrot.slane %v1786_v36, 1 }
 0x2e1   : > { %2270 = vmatmul.mubr.msk.bf16.vlgmr.msra.gmra.mrb[24].mxu1 %vm410_vm0, %v1369_v6  ;;  %2292 = vmatpush3.bf16.msra.mxu0 %v2367_v33 }
 0x2e2   : > { %2282 = vmatpush3.bf16.msra.mxu1 %v2366_v43  ;;  %2305 = vmatprep.subr.bf16.mxu0 %v2396_v14  ;;  %v1794_v30 = vsel %vm667_vm8, %v1793_v42, %v2659_v31  ;;  %v2117_v43 = vld [vmem:[%s2837_s9] ss:$0 sm:$0xff] }
 0x2e3   : > { %2283 = vmatprep.subr.bf16.mxu1 %v2396_v14  ;;  %2285 = vmatprep.mubr.msk.bf16.mxu1 %vm2397_vm1, %v2396_v14 }
 0x2e4   : > { %2294 = vmatmul.mubr.msk.bf16.vlgmr.msra.gmra.mrb[32].mxu0 %vm410_vm0, %v1587_v25 }
 0x2e5   : > { %2306 = vmatpush3.bf16.msra.mxu0 %v2369_v39  ;;  %2309 = vmatprep.mubr.msk.bf16.mxu0 %vm2397_vm1, %v2396_v14 }
 0x2e6   : > { %2284 = vmatpush3.bf16.msra.mxu1 %v2368_v40  ;;  %2307 = vmatprep.subr.bf16.mxu0 %v2396_v14 }
 0x2e7   : > { %2297 = vmatprep.subr.bf16.mxu1 %v2396_v14 }
 0x2e9   : > { %2286 = vmatmul.mubr.msk.bf16.vlgmr.msra.gmra.mrb[28].mxu1 %vm410_vm0, %v1514_v29  ;;  %2308 = vmatpush3.bf16.msra.mxu0 %v2371_v44 }
 0x2ea   : > { %2298 = vmatpush3.bf16.msra.mxu1 %v2370_v46  ;;  %2301 = vmatprep.mubr.msk.bf16.mxu1 %vm2397_vm1, %v2396_v14 }
 0x2eb   : > { %2299 = vmatprep.subr.bf16.mxu1 %v2396_v14 }
 0x2ec   : > { %2310 = vmatmul.mubr.msk.bf16.vlgmr.msra.gmra.mrb[36].mxu0 %vm410_vm0, %v1725_v49 }
 0x2ee   : > { %2300 = vmatpush3.bf16.msra.mxu1 %v2372_v5 }
 0x2ef   : > { %2313 = vmatprep.subr.bf16.mxu1 %v2396_v14 }
 0x2f1   : > { %2302 = vmatmul.mubr.msk.bf16.vlgmr.msra.gmra.mrb[32].mxu1 %vm410_vm0, %v1648_v16 }
 0x2f2   : > { %2314 = vmatpush3.bf16.msra.mxu1 %v2373_v50  ;;  %2317 = vmatprep.mubr.msk.bf16.mxu1 %vm2397_vm1, %v2396_v14 }
 0x2f3   : > { %2315 = vmatprep.subr.bf16.mxu1 %v2396_v14 }
 0x2f6   : > { %2316 = vmatpush3.bf16.msra.mxu1 %v2374_v24 }
 0x2f9   : > { %2318 = vmatmul.mubr.msk.bf16.vlgmr.msra.gmra.mrb[36].mxu1 %vm410_vm0, %v1794_v30 }
 0x3a7   : > { %v1348_v51 = vpop.f32.mrb[24].mxu0 }
 0x3a8   : > { %v2263_v52 = vpop.f32.mrb[25].mxu0 }
 0x3a9   : > { %v1351_v53 = vpop.f32.mrb[26].mxu0 }
 0x3aa   : > { %v2264_v54 = vpop.f32.mrb[27].mxu0 }
 0x3ac   : > { %v1292_v55 = vpop.f32.mrb[20].mxu1 }
 0x3ad   : > { %v1349_v56 = vadd.f32 %v1348_v51, %v1292_v55  ;;  %v2255_v32 = vpop.f32.mrb[21].mxu1 }
 0x3ae   : > { %v1295_v57 = vpop.f32.mrb[22].mxu1 }
 0x3af   : > { %v1352_v38 = vadd.f32 %v1351_v53, %v1295_v57  ;;  %v2256_v58 = vpop.f32.mrb[23].mxu1  ;;  %v1492_v59 = vpop.f32.mrb[28].mxu0 }
 0x3b0   : > { %v2279_v27 = vpop.f32.mrb[29].mxu0 }
 0x3b1   : > { %v1495_v14 = vpop.f32.mrb[30].mxu0 }
 0x3b2   : > { %v2280_v60 = vpop.f32.mrb[31].mxu0 }
 0x3b4   : > { %v1419_v34 = vpop.f32.mrb[24].mxu1 }
 0x3b5   : > { %v1426_v47 = vadd.f32 %v1419_v34, %v1349_v56  ;;  %v2271_v61 = vpop.f32.mrb[25].mxu1 }
 0x3b6   : > { %v1422_v31 = vpop.f32.mrb[26].mxu1 }
 0x3b7   : > { %v1427_v62 = vadd.f32 %v1422_v31, %v1352_v38  ;;  %v2272_v63 = vpop.f32.mrb[27].mxu1  ;;  %v1637_v0 = vpop.f32.mrb[32].mxu0  ;;  %v1499_v35 = vadd.f32 %v1492_v59, %v1426_v47 }
 0x3b8   : > { %v2295_v1 = vpop.f32.mrb[33].mxu0 }
 0x3b9   : > { %v1640_v2 = vpop.f32.mrb[34].mxu0  ;;  %v1500_v3 = vadd.f32 %v1495_v14, %v1427_v62 }
 0x3ba   : > { %v2296_v4 = vpop.f32.mrb[35].mxu0 }
 0x3bc   : > { %v1564_v6 = vpop.f32.mrb[28].mxu1 }
 0x3bd   : > { %v1571_v7 = vadd.f32 %v1564_v6, %v1499_v35  ;;  %v2287_v8 = vpop.f32.mrb[29].mxu1 }
 0x3be   : > { %v1567_v9 = vpop.f32.mrb[30].mxu1 }
 0x3bf   : > { %v1572_v10 = vadd.f32 %v1567_v9, %v1500_v3  ;;  %v2288_v11 = vpop.f32.mrb[31].mxu1  ;;  %v1775_v12 = vpop.f32.mrb[36].mxu0  ;;  %v1644_v13 = vadd.f32 %v1637_v0, %v1571_v7 }
 0x3c0   : > { %v2311_v15 = vpop.f32.mrb[37].mxu0 }
 0x3c1   : > { %v1778_v17 = vpop.f32.mrb[38].mxu0  ;;  %v1645_v18 = vadd.f32 %v1640_v2, %v1572_v10 }
 0x3c2   : > { %v2312_v19 = vpop.f32.mrb[39].mxu0 }
 0x3c4   : > { %v1703_v22 = vpop.f32.mrb[32].mxu1 }
 0x3c5   : > { %v1710_v25 = vadd.f32 %v1703_v22, %v1644_v13  ;;  %v2303_v26 = vpop.f32.mrb[33].mxu1 }
 0x3c6   : > { %v1706_v28 = vpop.f32.mrb[34].mxu1 }
 0x3c7   : > { %v1711_v16 = vadd.f32 %v1706_v28, %v1645_v18  ;;  %v2304_v20 = vpop.f32.mrb[35].mxu1  ;;  %v1782_v33 = vadd.f32 %v1775_v12, %v1710_v25 }
 0x3c9   : > { %v1783_v29 = vadd.f32 %v1778_v17, %v1711_v16 }
 0x3cc   : > { %v1844_v36 = vpop.f32.mrb[36].mxu1 }
 0x3cd   : > { %v1851_v37 = vadd.f32 %v1844_v36, %v1782_v33  ;;  %v2319_v39 = vpop.f32.mrb[37].mxu1 }
 0x3ce   : > { %v1847_v40 = vpop.f32.mrb[38].mxu1 }
 0x3cf   : > { %v1860_v41 = vadd.f32 %v2117_v43, %v1851_v37  ;;  %v1852_v44 = vadd.f32 %v1847_v40, %v1783_v29  ;;  %v2320_v45 = vpop.f32.mrb[39].mxu1 }
 0x3d1   : > { %v1862_v46 = vadd.f32 2.0, %v1860_v41  ;;  %v1861_v48 = vadd.f32 %v2117_v43, %v1852_v44 }
 0x3d3   : > { %v1866_v5 = vand.u32 2147483647, %v1862_v46  ;;  %v1863_v49 = vadd.f32 2.0, %v1861_v48  ;;  %v1864_v32 = vmin.f32 %v1862_v46, 0.0 }
 0x3d5   : > { %v1868_v50 = vsub.f32 0.0, %v1866_v5  ;;  %v1867_v24 = vand.u32 2147483647, %v1863_v49  ;;  %v1865_v59 = vmin.f32 %v1863_v49, 0.0 }
 0x3d7   : > { %v1870_v42 = vmul.f32 1.442695, %v1868_v50  ;;  %v1869_v30 = vsub.f32 0.0, %v1867_v24 }
 0x3d9   : > { %2375 = vpow2.f32 %v1870_v42  ;;  %v1872_v51 = vmul.f32 1.442695, %v1869_v30 }
 0x3db   : > { %2377 = vpow2.f32 %v1872_v51 }
 0x3e3   : > { %v2376_v52 = vpop.eup %2375 }
 0x3e4   : > { %v1874_v53 = vadd.f32 1.0, %v2376_v52 }
 0x3e5   : > { %v2378_v54 = vpop.eup %2377 }
 0x3e6   : > { %2379 = vlog2.f32 %v1874_v53  ;;  %v1875_v55 = vadd.f32 1.0, %v2378_v54 }
 0x3e8   : > { %2381 = vlog2.f32 %v1875_v55 }
 0x3f0   : > { %v2380_v56 = vpop.eup %2379 }
 0x3f1   : > { %v1877_v57 = vmul.f32 0.6931472, %v2380_v56 }
 0x3f2   : > { %v2382_v38 = vpop.eup %2381 }
 0x3f3   : > { %v1880_v58 = vsub.f32 %v1864_v32, %v1877_v57  ;;  %v1879_v27 = vmul.f32 0.6931472, %v2382_v38 }
 0x3f5   : > { %1904 = vrot.lane.b32.xlu0 %v1880_v58, %s2398_s24  ;;  %v1881_v14 = vsub.f32 %v1865_v59, %v1879_v27  ;;  %v1882_v60 = vmul.f32 1.442695, %v1880_v58 }
 0x3f7   : > { %1906 = vrot.lane.b32.xlu1 %v1881_v14, %s2398_s24  ;;  %2383 = vpow2.f32 %v1882_v60  ;;  %v1884_v34 = vmul.f32 1.442695, %v1881_v14 }
 0x3f9   : > { %2385 = vpow2.f32 %v1884_v34 }
 0x3fb   : > { %1888 = vrot.lane.b32.xlu1 %v1860_v41, %s2399_s25 }
 0x3ff   : > { %1890 = vrot.lane.b32.xlu1 %v1861_v48, %s2399_s25 }
 0x401   : > { %v2384_v1 = vpop.eup %2383 }
 0x403   : > { %v2386_v7 = vpop.eup %2385 }
 0x467   : > { %v1905_v47 = vpop.permute.xlu0 %1904 }
 0x468   : > { %v1910_v31 = vsel %vm544_vm6, %v1905_v47, 0.0 }
 0x469   : > { %v1907_v61 = vpop.permute.xlu1 %1906 }
 0x46a   : > { %v1911_v62 = vsel %vm544_vm6, %v1907_v61, 0.0 }
 0x46b   : > { %v1912_v63 = vadd.f32 %v1911_v62, %v1910_v31 }
 0x46d   : > { %1913 = vadd.xlane.f32.xlu0 %v1912_v63  ;;  %v1889_v0 = vpop.permute.xlu1 %1888 }
 0x46e   : > { %v1894_v35 = vadd.f32 %v1889_v0, %v2527_v23 }
 0x470   : > { %v1896_v2 = vmul.f32 %v2384_v1, %v1894_v35 }
 0x471   : > { %v1891_v3 = vpop.permute.xlu1 %1890 }
 0x472   : > { %v1898_v4 = vsel %vm544_vm6, %v2527_v23, %v1896_v2  ;;  %v1895_v6 = vadd.f32 %v1891_v3, %v2525_v21 }
 0x473   : > { %1900 = vst.msk [vmem:[%s392_s28] sm:$0xff] %vm410_vm0, %v1898_v4 }
 0x474   : > { %v1897_v8 = vmul.f32 %v2386_v7, %v1895_v6 }
 0x476   : > { %v1899_v9 = vsel %vm544_vm6, %v2525_v21, %v1897_v8 }
 0x477   : > { %1901 = vst.msk [vmem:[%s392_s28 + $0x8] sm:$0xff] %vm410_vm0, %v1899_v9 }
 0x4fa   : > { %v1914_v10 = vpop.xlane.xlu0 %1913 }
 0x4fb   : > { %v1915_v11 = vrot.slane %v1914_v10, 4 }
 0x4fd   : > { %v1916_v12 = vadd.f32 %v1915_v11, %v1914_v10 }
 0x4ff   : > { %v1917_v13 = vrot.slane %v1916_v12, 2 }
 0x501   : > { %v1918_v15 = vadd.f32 %v1917_v13, %v1916_v12 }
 0x503   : > { %v1919_v17 = vrot.slane %v1918_v15, 1 }
 0x505   : > { %v1920_v18 = vadd.f32 %v1919_v17, %v1918_v15 }
 0x507   : > { %2329 = vpush %v1920_v18 }
 0x538   : > { %s2330_s12 = spop %2329 }
 0x539   : > { %v1922_v23 = vstv %s2330_s12 }
 0x53a   : > { %1924 = vst.msk [vmem:[%s395_s30] sm:$0x1] %vm1923_vm10, %v1922_v23 }
 0x53b PF: > { %s22_s17 = sadd.s32 1, %s2393_s17  }
 0x53c   : > { %p19_p4 = scmp.ge.s32.totalorder %s22_s17, 4  }
 0x53e   :  { %21 = sbr.rel (!%p19_p4) target bundleno = 1 (0x1), region = 119 }

// kernel: normflownet_forward.6
= control target key start
LH: loop header
LB: loop body
LE: loop exit
PB: predicated region body
PF: predicated region fallthrough
CT: control target
= control target key end

     0   :  { %s4093_s17 = smov 0   ;;  %s5199_s0 = inlined_call_operand.vmem [shape: f32[2,64,16], index: 0, kind: input, shape index: {}]   ;;  %s5200_s1 = inlined_call_operand.vmem [shape: f32[3,64,1], index: 1, kind: input, shape index: {}]   ;;  %s5201_s2 = inlined_call_operand.vmem [shape: f32[16,16], index: 2, kind: input, shape index: {}]   ;;  %s5202_s3 = inlined_call_operand.vmem [shape: f32[1,16], index: 3, kind: input, shape index: {}]   ;;  %s5203_s4 = inlined_call_operand.vmem [shape: bf16[9,8,32], index: 4, kind: input, shape index: {}]   ;;  %s5204_s5 = inlined_call_operand.vmem [shape: f32[1,32], index: 5, kind: input, shape index: {}, may-alias: {5,7}]   ;;  %s5205_s6 = inlined_call_operand.vmem [shape: bf16[32,32], index: 6, kind: input, shape index: {}]   ;;  %s5206_s7 = inlined_call_operand.vmem [shape: f32[1,32], index: 7, kind: input, shape index: {}, may-alias: {5,7}]   ;;  %s5207_s8 = inlined_call_operand.vmem [shape: bf16[9,32,16], index: 8, kind: input, shape index: {}]   ;;  %s5208_s9 = inlined_call_operand.vmem [shape: f32[1,16], index: 9, kind: input, shape index: {}]   ;;  %s5209_s10 = inlined_call_operand.vmem [shape: f32[2,64,16], index: 10, kind: output, shape index: {0}]   ;;  %s5210_s11 = inlined_call_operand.vmem [shape: f32[2,1,1], index: 11, kind: output, shape index: {1}]  }
   0x1 LB: > { %s3286_s18 = sadd.s32 4294967295, %s4027_s17   ;;  %p3290_p0 = scmp.ge.s32.totalorder %s4027_s17, 1  ;;  %s4027_s17 = sphi %s4093_s17, %s22_s17  }
   0x2   : > { %p340_p1 = scmp.lt.s32.totalorder %s4027_s17, 3 }
   0x4   : > { %p341_p2 = pnand %p3290_p0, %p340_p1 }
   0x6   : > { %344 = sbr.rel (%p341_p2) target bundleno = 1557 (0x615), region = 60 }
   0xd   : > { %v405_v0 = vld [vmem:[%s5201_s2] sm:$0xff]  ;;  %v406_v1 = vld [vmem:[%s5201_s2 + $0x8] sm:$0xff]  ;;  %p383_p3 = scmp.lt.s32.totalorder %s3286_s18, 1  ;;  %v5212_v4 = vmov 0   ;;  %v581_v5 = vld [vmem:[%s5200_s1 + $0x10] sm:$0xff]  ;;  %vm414_vm0 = vcmask 130048  }
   0xe   : > { %v579_v2 = vld [vmem:[%s5200_s1] sm:$0xff]  ;;  %v3796_v3 = vpack.c.bf16 %v406_v1, %v405_v0  ;;  %3951 = vset.pattern.permute.xlu0 %v5212_v4  ;;  %3952 = vset.pattern.permute.xlu1 %v5212_v4  ;;  %v580_v6 = vld [vmem:[%s5200_s1 + $0x8] sm:$0xff]  ;;  %v582_v7 = vld [vmem:[%s5200_s1 + $0x18] sm:$0xff]  ;;  %vm697_vm1 = vcmask 1043456   ;;  %vm552_vm2 = vcmask 1040384   ;;  %v5211_v53 = vmov 0.0  }
   0xf   : > { %s5303_s18 = smov (!%p383_p3, %s3286_s18), 1  ;;  %589 = vperm.xlu0 %3951, %v579_v2   ;;  %599 = vperm.xlu1 %3952, %v581_v5   ;;  %v583_v11 = vld [vmem:[%s5200_s1 + $0x20] sm:$0xff]  ;;  %v584_v12 = vld [vmem:[%s5200_s1 + $0x28] sm:$0xff]  ;;  %v585_v15 = vld [vmem:[%s5200_s1 + $0x30] sm:$0xff]  ;;  %vm647_vm3 = vsmask.f32 7424 }
  0x10   : > { %3797 = vmatprep.subr.bf16.mxu0 %v3796_v3  ;;  %s3453_s12 = sshll.u32 %s5303_s18, 6  ;;  %v586_v16 = vld [vmem:[%s5200_s1 + $0x38] sm:$0xff]  ;;  %v3313_v19 = vld [vmem:[%s5200_s1 + $0x80] sm:$0xff]  ;;  %v3314_v20 = vld [vmem:[%s5200_s1 + $0x88] sm:$0xff]  ;;  %vm684_vm4 = vcmask 64512   ;;  %vm887_vm5 = vcmask 1041408   ;;  %s395_s19 = scalar_lea.vmem %s5210_s11, %s5303_s18 }
  0x11   : > { %3799 = vmatpush3.bf16.msra.mxu0 %v3796_v3  ;;  %s387_s15 = scalar_lea.vmem %s5199_s0, %s3453_s12  ;;  %v3315_v22 = vld [vmem:[%s5200_s1 + $0x90] sm:$0xff]  ;;  %v3316_v23 = vld [vmem:[%s5200_s1 + $0x98] sm:$0xff]  ;;  %v3317_v24 = vld [vmem:[%s5200_s1 + $0xa0] sm:$0xff]  ;;  %vm933_vm6 = vcmask 1046528   ;;  %vm1751_vm7 = vcmask 261120   ;;  %s4031_s28 = smov 120  }
  0x12   : > { %v397_v8 = vld [vmem:[%s387_s15] sm:$0xff]  ;;  %v398_v9 = vld [vmem:[%s387_s15 + $0x8] sm:$0xff]  ;;  %v399_v10 = vld [vmem:[%s387_s15 + $0x10] sm:$0xff]  ;;  %s4032_s29 = smov 8   ;;  %s5149_s14 = scalar_lea.vmem %s5209_s10, %s3453_s12  ;;  %vm3204_vm8 = vcmask 0  }
  0x13   : > { %594 = vperm.xlu0 %3951, %v580_v6   ;;  %604 = vperm.xlu1 %3952, %v582_v7   ;;  %v400_v13 = vld [vmem:[%s387_s15 + $0x18] sm:$0xff]  ;;  %v401_v14 = vld [vmem:[%s387_s15 + $0x20] sm:$0xff]  ;;  %v402_v17 = vld [vmem:[%s387_s15 + $0x28] sm:$0xff] }
  0x14   : > { %3574 = vmatprep.mubr.msk.f32.mxu0 %vm414_vm0, %v397_v8  ;;  %v403_v18 = vld [vmem:[%s387_s15 + $0x30] sm:$0xff]  ;;  %v404_v21 = vld [vmem:[%s387_s15 + $0x38] sm:$0xff]  ;;  %v3318_v25 = vld [vmem:[%s5200_s1 + $0xa8] sm:$0xff] }
  0x15   : > { %3575 = vmatmul.mubr.msk.f32.vlgmr.msra.gmra.mrb[0].mxu0 %vm414_vm0, %v398_v9  ;;  %v3319_v26 = vld [vmem:[%s5200_s1 + $0xb0] sm:$0xff]  ;;  %v3320_v27 = vld [vmem:[%s5200_s1 + $0xb8] sm:$0xff]  ;;  %v3304_v28 = vld [vmem:[%s5203_s4 + $0x4] sm:$0xf] }
  0x16   : > { %3577 = vmatprep.mubr.msk.f32.mxu0 %vm414_vm0, %v399_v10  ;;  %3928 = vmatprep.subr.msk.bf16.mxu1 %vm697_vm1, %v3304_v28  ;;  %v699_v29 = vsel %vm697_vm1, %v3304_v28, 0  ;;  %v4181_v30 = vld [vmem:[%s5203_s4] sm:$0xf] }
  0x17   : > { %609 = vperm.xlu0 %3951, %v583_v11   ;;  %614 = vperm.xlu1 %3952, %v584_v12   ;;  %v3295_v38 = vld [vmem:[%s5202_s3] ss:$0 sm:$0xff] }
  0x18   : > { %3587 = vmatpush3.bf16.msra.mxu1 %v699_v29 }
  0x19   : > { %3578 = vmatmul.mubr.msk.f32.gmra.mrb[2].mxu0 %vm414_vm0, %v400_v13  ;;  %3929 = vmatprep.subr.msk.bf16.mxu1 %vm697_vm1, %v4181_v30 }
  0x1a   : > { %3580 = vmatprep.mubr.msk.f32.mxu0 %vm414_vm0, %v401_v14 }
  0x1b   : > { %619 = vperm.xlu0 %3951, %v585_v15   ;;  %624 = vperm.xlu1 %3952, %v586_v16  }
  0x1d   : > { %3581 = vmatmul.mubr.msk.f32.gmra.mrb[4].mxu0 %vm414_vm0, %v402_v17 }
  0x1e   : > { %3583 = vmatprep.mubr.msk.f32.mxu0 %vm414_vm0, %v403_v18 }
  0x1f   : > { %857 = vperm.xlu0 %3951, %v3313_v19   ;;  %861 = vperm.xlu1 %3952, %v3314_v20  }
  0x21   : > { %3584 = vmatmul.mubr.msk.f32.gmra.mrb[6].mxu0 %vm414_vm0, %v404_v21 }
  0x23   : > { %865 = vperm.xlu0 %3951, %v3315_v22   ;;  %869 = vperm.xlu1 %3952, %v3316_v23  }
  0x27   : > { %873 = vperm.xlu0 %3951, %v3317_v24   ;;  %877 = vperm.xlu1 %3952, %v3318_v25  }
  0x2b   : > { %881 = vperm.xlu0 %3951, %v3319_v26   ;;  %885 = vperm.xlu1 %3952, %v3320_v27  }
  0x8e   : > { %v4185_v31 = vpop.permute.xlu0 %589  ;;  %v4187_v32 = vpop.permute.xlu1 %599 }
  0x92   : > { %v4189_v33 = vpop.permute.xlu0 %594  ;;  %v4191_v34 = vpop.permute.xlu1 %604 }
  0x96   : > { %v4193_v35 = vpop.permute.xlu0 %609  ;;  %v4195_v36 = vpop.permute.xlu1 %614 }
  0x9a   : > { %v4197_v37 = vpop.permute.xlu0 %619  ;;  %v4202_v39 = vpop.permute.xlu1 %624 }
  0x9e   : > { %v858_v46 = vpop.permute.xlu0 %857  ;;  %v4213_v50 = vpop.permute.xlu1 %861 }
  0xa2   : > { %v4232_v63 = vpop.permute.xlu0 %865  ;;  %v4237_v3 = vpop.permute.xlu1 %869 }
  0xa6   : > { %v874_v22 = vpop.permute.xlu0 %873  ;;  %v878_v24 = vpop.permute.xlu1 %877 }
  0xe8   : > { %v3576_v40 = vpop.f32.mrb[0].mxu0 }
  0xe9   : > { %v505_v41 = vpop.f32.mrb[1].mxu0  ;;  %v4204_v42 = vadd.f32 %v3576_v40, %v3295_v38  ;;  %v889_v40 = vrot.slane %v4213_v50, 6 }
  0xea   : > { %v4206_v43 = vadd.f32 %v3295_v38, %v505_v41 }
  0xeb   : > { %5247 = vst [vmem:[#allocation2_spill] sm:$0xff] %v4204_v42  ;;  %v554_v48 = vrot.slane %v4204_v42, 7 }
  0xec   : > { %5248 = vst [vmem:[#allocation3_spill] sm:$0xff] %v4206_v43  ;;  %v553_v44 = vrot.slane %v4206_v43, 7  ;;  %v3579_v45 = vpop.f32.mrb[2].mxu0 }
  0xed   : > { %v515_v47 = vpop.f32.mrb[3].mxu0  ;;  %v4217_v52 = vadd.f32 %v3579_v45, %v3295_v38  ;;  %v893_v45 = vrot.slane %v4237_v3, 6 }
  0xee   : > { %v4211_v49 = vsel %vm552_vm2, 0.0, %v553_v44  ;;  %v4215_v51 = vadd.f32 %v3295_v38, %v515_v47  ;;  %v4223_v59 = vsel %vm552_vm2, %v553_v44, %v554_v48  ;;  %v779_v47 = vsel %vm697_vm1, %v4181_v30, 0 }
  0xef   : > { %5250 = vst [vmem:[#allocation5_spill] sm:$0xff] %v4217_v52  ;;  %v640_v54 = vpack.c.bf16 %v4211_v49, %v5211_v53  ;;  %v558_v0 = vrot.slane %v4217_v52, 7 }
  0xf0   : > { %5249 = vst [vmem:[#allocation4_spill] sm:$0xff] %v4215_v51  ;;  %v556_v55 = vrot.slane %v4215_v51, 7  ;;  %v3582_v56 = vpop.f32.mrb[4].mxu0 }
  0xf1   : > { %v525_v57 = vpop.f32.mrb[5].mxu0  ;;  %v651_v58 = vshll.u32 %v640_v54, 16  ;;  %v4228_v61 = vadd.f32 %v3582_v56, %v3295_v38  ;;  %v649_v9 = vshrl.u32 %v640_v54, 16 }
  0xf2   : > { %v4226_v60 = vsel %vm552_vm2, %v554_v48, %v556_v55  ;;  %v4230_v62 = vadd.f32 %v3295_v38, %v525_v57  ;;  %v4249_v14 = vsel %vm552_vm2, %v556_v55, %v558_v0  ;;  %v891_v57 = vrot.slane %v4232_v63, 6 }
  0xf3   : > { %5251 = vst [vmem:[#allocation6_spill] sm:$0xff] %v4228_v61  ;;  %v641_v1 = vpack.c.bf16 %v4226_v60, %v4223_v59  ;;  %v653_v2 = vrot.slane %v651_v58, 1  ;;  %v562_v11 = vrot.slane %v4228_v61, 7 }
  0xf4   : > { %5252 = vst [vmem:[#allocation7_spill] sm:$0xff] %v4230_v62  ;;  %v560_v5 = vrot.slane %v4230_v62, 7  ;;  %v3585_v6 = vpop.f32.mrb[6].mxu0  ;;  %v4292_v3 = vsel %vm887_vm5, %v891_v57, %v893_v45 }
  0xf5   : > { %v4240_v7 = vadd.f32 %v3585_v6, %v3295_v38  ;;  %v535_v8 = vpop.f32.mrb[7].mxu0  ;;  %v656_v10 = vshll.u32 %v641_v1, 16  ;;  %v654_v16 = vor.u32 %v653_v2, %v649_v9  ;;  %v660_v21 = vshrl.u32 %v641_v1, 16  ;;  %v886_v1 = vpop.permute.xlu1 %885 }
  0xf6   : > { %v4244_v12 = vsel %vm552_vm2, %v558_v0, %v560_v5  ;;  %v4246_v13 = vadd.f32 %v3295_v38, %v535_v8  ;;  %v4257_v23 = vsel %vm552_vm2, %v560_v5, %v562_v11  ;;  %v4272_v38 = vrot.slane %v858_v46, 6  ;;  %v3321_v46 = vld [vmem:[%s5203_s4 + $0x8] sm:$0xf]  ;;  %v882_v0 = vpop.permute.xlu0 %881 }
  0xf7   : > { %5253 = vst [vmem:[#allocation8_spill] sm:$0xff] %v4240_v7  ;;  %v566_v15 = vrot.slane %v4240_v7, 7  ;;  %v658_v17 = vrot.slane %v656_v10, 1  ;;  %v642_v19 = vpack.c.bf16 %v4244_v12, %v4249_v14  ;;  %v895_v5 = vrot.slane %v874_v22, 6 }
  0xf8   : > { %5254 = vst [vmem:[#allocation9_spill] sm:$0xff] %v4246_v13  ;;  %v564_v18 = vrot.slane %v4246_v13, 7  ;;  %5255 = vst [vmem:[#allocation10_spill] sm:$0xff] %v4272_v38  ;;  %v4289_v30 = vsel %vm887_vm5, %v4272_v38, %v889_v40  ;;  %v897_v6 = vrot.slane %v878_v24, 6  ;;  %v4299_v8 = vmul.f32 0.0, %v4185_v31 }
  0xf9   : > { %v659_v20 = vsel %vm647_vm3, %v654_v16, %v658_v17  ;;  %v664_v27 = vshll.u32 %v642_v19, 16  ;;  %v662_v41 = vor.u32 %v660_v21, %v658_v17  ;;  %v668_v48 = vshrl.u32 %v642_v19, 16 }
  0xfa   : > { %v4260_v25 = vsel %vm552_vm2, %v562_v11, %v564_v18  ;;  %v4265_v26 = vsel %vm552_vm2, %v564_v18, %v566_v15  ;;  %3588 = vmatprep.mubr.msk.bf16.mxu1 %vm684_vm4, %v659_v20  ;;  %v628_v11 = vmul.f32 %v4189_v33, %v4211_v49  ;;  %v4308_v16 = vsel %vm887_vm5, %v889_v40, %v891_v57 }
  0xfb   : > { %v643_v28 = vpack.c.bf16 %v4260_v25, %v4257_v23  ;;  %v644_v29 = vpack.c.bf16 %v4265_v26, %v4265_v26  ;;  %v666_v44 = vrot.slane %v664_v27, 1  ;;  %v899_v17 = vrot.slane %v882_v0, 6 }
  0xfc   : > { %v4310_v18 = vrot.slane %v886_v1, 6  ;;  %v4313_v19 = vmul.f32 0.0, %v4272_v38  ;;  %v913_v20 = vmul.f32 %v4289_v30, %v4211_v49  ;;  %v915_v21 = vmul.f32 %v4292_v3, %v4226_v60 }
  0xfd   : > { %v672_v54 = vshll.u32 %v643_v28, 16  ;;  %v4279_v55 = vsel %vm647_vm3, %v662_v41, %v666_v44  ;;  %v680_v56 = vshll.u32 %v644_v29, 16  ;;  %v670_v50 = vor.u32 %v668_v48, %v666_v44 }
  0xfe   : > { %3589 = vmatmul.mubr.msk.bf16.vlgmr.msra.gmra.mrb[0].mxu1 %vm684_vm4, %v4279_v55  ;;  %v676_v2 = vshrl.u32 %v643_v28, 16  ;;  %v4320_v22 = vsel %vm887_vm5, %v893_v45, %v895_v5  ;;  %v4323_v24 = vsel %vm887_vm5, %v895_v5, %v897_v6  ;;  %v956_v27 = vsel %vm697_vm1, %v3321_v46, 0 }
  0xff   : > { %v674_v58 = vrot.slane %v672_v54, 1  ;;  %3597 = vmatpush3.bf16.msra.mxu1 %v779_v47  ;;  %v682_v10 = vrot.slane %v680_v56, 1  ;;  %5256 = vst [vmem:[#allocation11_spill] sm:$0xff] %v4320_v22  ;;  %5257 = vst [vmem:[#allocation12_spill] sm:$0xff] %v4323_v24  ;;  %v635_v29 = vpack.c.bf16 %v628_v11, %v4299_v8  ;;  %v630_v40 = vmul.f32 %v4191_v34, %v4226_v60 }
 0x100   : > { %3930 = vmatprep.subr.msk.bf16.mxu1 %vm697_vm1, %v3321_v46  ;;  %v914_v41 = vmul.f32 %v4308_v16, %v4223_v59  ;;  %v4334_v44 = vsel %vm887_vm5, %v897_v6, %v899_v17  ;;  %v4338_v45 = vsel %vm887_vm5, %v899_v17, %v4310_v18  ;;  %v629_v47 = vmul.f32 %v4187_v32, %v4223_v59 }
 0x101   : > { %v4295_v63 = vsel %vm647_vm3, %v670_v50, %v674_v58  ;;  %v4303_v9 = vor.u32 %v676_v2, %v674_v58  ;;  %5258 = vst [vmem:[#allocation13_spill] sm:$0xff] %v4334_v44  ;;  %5259 = vst [vmem:[#allocation14_spill] sm:$0xff] %v4338_v45  ;;  %v632_v48 = vmul.f32 %v4195_v36, %v4244_v12  ;;  %v4372_v11 = vsel %vm552_vm2, %v566_v15, 0.0 }
 0x102   : > { %3592 = vmatprep.mubr.msk.bf16.mxu1 %vm684_vm4, %v4295_v63  ;;  %v4347_v54 = vmul.f32 %v4320_v22, %v4249_v14  ;;  %v4351_v56 = vmul.f32 %v4323_v24, %v4244_v12  ;;  %v921_v46 = vpack.c.bf16 %v913_v20, %v4313_v19  ;;  %v922_v57 = vpack.c.bf16 %v915_v21, %v914_v41 }
 0x103   : > { %v683_v28 = vsel %vm647_vm3, %v4303_v9, %v682_v10  ;;  %v631_v50 = vmul.f32 %v4193_v35, %v4249_v14  ;;  %v634_v58 = vmul.f32 %v4202_v39, %v4260_v25  ;;  %v1264_v0 = vmul.f32 %v4272_v38, %v4211_v49 }
 0x104   : > { %v1265_v1 = vmul.f32 %v4289_v30, %v4223_v59  ;;  %v1269_v2 = vmul.f32 %v4323_v24, %v4257_v23  ;;  %v636_v5 = vpack.c.bf16 %v630_v40, %v629_v47  ;;  %v633_v6 = vmul.f32 %v4197_v37, %v4257_v23 }
 0x105   : > { %v1266_v10 = vmul.f32 %v4308_v16, %v4226_v60  ;;  %v637_v17 = vpack.c.bf16 %v632_v48, %v631_v50  ;;  %v1267_v20 = vmul.f32 %v4292_v3, %v4249_v14  ;;  %v923_v40 = vpack.c.bf16 %v4351_v56, %v4347_v54 }
 0x106   : > { %3593 = vmatmul.mubr.msk.bf16.gmra.mrb[4].mxu1 %vm684_vm4, %v683_v28  ;;  %v1273_v21 = vpack.c.bf16 %v1265_v1, %v1264_v0  ;;  %v934_v28 = vrot.slane %v921_v46, 1  ;;  %v1268_v41 = vmul.f32 %v4320_v22, %v4244_v12  ;;  %v638_v47 = vpack.c.bf16 %v634_v58, %v633_v6  ;;  %v3326_v46 = vld [vmem:[%s5203_s4 + $0xc] sm:$0xf] }
 0x107   : > { %3598 = vmatprep.mubr.msk.bf16.mxu1 %vm684_vm4, %v635_v29  ;;  %v4376_v29 = vrot.slane %v922_v57, 1  ;;  %v918_v53 = vmul.f32 %v4334_v44, %v4257_v23  ;;  %v919_v15 = vmul.f32 %v4338_v45, %v4260_v25  ;;  %v1274_v48 = vpack.c.bf16 %v1267_v20, %v1266_v10 }
 0x108   : > { %v1285_v57 = vrot.slane %v1273_v21, 1  ;;  %v1275_v50 = vpack.c.bf16 %v1269_v2, %v1268_v41  ;;  %v1270_v54 = vmul.f32 %v4334_v44, %v4260_v25  ;;  %v1271_v56 = vmul.f32 %v4338_v45, %v4265_v26 }
 0x109   : > { %v1286_v58 = vrot.slane %v1274_v48, 1  ;;  %v1272_v0 = vmul.f32 %v4310_v18, %v4372_v11  ;;  %v4398_v1 = vmul.f32 %v4185_v31, %v4223_v59  ;;  %v4402_v6 = vmul.f32 %v4189_v33, %v4226_v60 }
 0x10a   : > { %v1288_v2 = vrot.slane %v1275_v50, 1  ;;  %v1276_v10 = vpack.c.bf16 %v1271_v56, %v1270_v54  ;;  %v4411_v20 = vmul.f32 %v4191_v34, %v4244_v12  ;;  %v4430_v56 = vmul.f32 %v4195_v36, %v4260_v25 }
 0x10b   : > { %v4415_v21 = vsel %vm933_vm6, %v1285_v57, %v1286_v58  ;;  %v1277_v41 = vpack.c.bf16 %v1272_v0, %v1272_v0  ;;  %v936_v57 = vsel %vm933_vm6, %v934_v28, %v4376_v29  ;;  %v4436_v4 = vmul.f32 %v4197_v37, %v4265_v26 }
 0x10c   : > { %v4424_v48 = vsel %vm933_vm6, %v1286_v58, %v1288_v2  ;;  %v1290_v50 = vrot.slane %v1276_v10, 1  ;;  %v4440_v58 = vmul.f32 %v4202_v39, %v4372_v11  ;;  %v924_v10 = vpack.c.bf16 %v919_v15, %v918_v53 }
 0x10d   : > { %v1292_v0 = vrot.slane %v1277_v41, 1  ;;  %v4449_v7 = vpack.c.bf16 %v4372_v11, %v4265_v26  ;;  %v1583_v13 = vmul.f32 %v4272_v38, %v4223_v59  ;;  %v1584_v53 = vmul.f32 %v4289_v30, %v4226_v60 }
 0x10e   : > { %3599 = vmatmul.mubr.msk.bf16.vlgmr.msra.gmra.mrb[0].mxu1 %vm684_vm4, %v636_v5  ;;  %v4407_v5 = vmul.f32 %v4187_v32, %v4249_v14  ;;  %v1586_v54 = vmul.f32 %v4292_v3, %v4244_v12  ;;  %v1588_v41 = vmul.f32 %v4323_v24, %v4260_v25  ;;  %v1589_v61 = vmul.f32 %v4334_v44, %v4265_v26 }
 0x10f   : > { %3607 = vmatpush3.bf16.msra.mxu1 %v956_v27  ;;  %3602 = vmatprep.mubr.msk.bf16.mxu1 %vm684_vm4, %v637_v17  ;;  %v4421_v17 = vmul.f32 %v4193_v35, %v4257_v23  ;;  %v4443_v27 = vsel %vm933_vm6, %v1288_v2, %v1290_v50  ;;  %v4452_v28 = vsel %vm933_vm6, %v1290_v50, %v1292_v0  ;;  %v1489_v15 = vshll.u32 %v4449_v7, 16 }
 0x110   : > { %3931 = vmatprep.subr.msk.bf16.mxu1 %vm697_vm1, %v3326_v46  ;;  %v1585_v2 = vmul.f32 %v4308_v16, %v4249_v14  ;;  %v1587_v50 = vmul.f32 %v4320_v22, %v4257_v23  ;;  %v1592_v0 = vpack.c.bf16 %v1584_v53, %v1583_v13  ;;  %v1590_v62 = vmul.f32 %v4338_v45, %v4372_v11 }
 0x111   : > { %v4475_v52 = vrot.slane %v1489_v15, 1  ;;  %v937_v42 = vrot.slane %v923_v40, 1  ;;  %v920_v13 = vmul.f32 %v4310_v18, %v4265_v26  ;;  %v939_v24 = vrot.slane %v924_v10, 1 }
 0x112   : > { %v1593_v51 = vpack.c.bf16 %v1586_v54, %v1585_v2  ;;  %v1594_v43 = vpack.c.bf16 %v1588_v41, %v1587_v50  ;;  %v1595_v38 = vpack.c.bf16 %v1590_v62, %v1589_v61  ;;  %v1604_v53 = vrot.slane %v1592_v0, 1 }
 0x113   : > { %v1058_v40 = vsel %vm697_vm1, %v3326_v46, 0  ;;  %v1034_v10 = vmul.f32 %v4191_v34, %v4249_v14  ;;  %v1133_v41 = vpack.c.bf16 %v4223_v59, %v4211_v49  ;;  %v1035_v15 = vmul.f32 %v4193_v35, %v4244_v12 }
 0x114   : > { %v1605_v44 = vrot.slane %v1593_v51, 1  ;;  %v1607_v45 = vrot.slane %v1594_v43, 1  ;;  %v4484_v22 = vrot.slane %v1595_v38, 1  ;;  %v925_v51 = vpack.c.bf16 %v920_v13, %v920_v13  ;;  %v3331_v43 = vld [vmem:[%s5203_s4 + $0x10] sm:$0xf] }
 0x115   : > { %v940_v38 = vsel %vm933_vm6, %v937_v42, %v939_v24  ;;  %v1134_v2 = vpack.c.bf16 %v4249_v14, %v4226_v60  ;;  %v1189_v0 = vsel %vm697_vm1, %v3331_v43, 0  ;;  %v1143_v13 = vshll.u32 %v1133_v41, 16 }
 0x116   : > { %3603 = vmatmul.mubr.msk.bf16.gmra.mrb[4].mxu1 %vm684_vm4, %v638_v47  ;;  %v4482_v47 = vsel %vm647_vm3, %v4303_v9, %v4475_v52  ;;  %v4491_v61 = vsel %vm933_vm6, %v1605_v44, %v1607_v45  ;;  %v4495_v62 = vsel %vm933_vm6, %v1607_v45, %v4484_v22  ;;  %v938_v9 = vsel %vm933_vm6, %v4376_v29, %v937_v42 }
 0x117   : > { %3608 = vmatprep.mubr.msk.bf16.mxu1 %vm684_vm4, %v936_v57  ;;  %v4487_v57 = vsel %vm933_vm6, %v1604_v53, %v1605_v44  ;;  %v941_v44 = vrot.slane %v925_v51, 1  ;;  %v1031_v45 = vmul.f32 %v4185_v31, %v4211_v49  ;;  %v1032_v29 = vmul.f32 %v4189_v33, %v4223_v59 }
 0x118   : > { %v1033_v42 = vmul.f32 %v4187_v32, %v4226_v60  ;;  %v1148_v49 = vshll.u32 %v1134_v2, 16  ;;  %v1037_v59 = vmul.f32 %v4197_v37, %v4260_v25  ;;  %v1038_v60 = vmul.f32 %v4202_v39, %v4265_v26 }
 0x119   : > { %v942_v46 = vsel %vm933_vm6, %v939_v24, %v941_v44  ;;  %v1039_v54 = vpack.c.bf16 %v1032_v29, %v1031_v45  ;;  %v1036_v24 = vmul.f32 %v4195_v36, %v4257_v23  ;;  %v1145_v14 = vrot.slane %v1143_v13, 1 }
 0x11a   : > { %v1040_v50 = vpack.c.bf16 %v1034_v10, %v1033_v42  ;;  %v1141_v51 = vshrl.u32 %v1133_v41, 16  ;;  %v1042_v44 = vpack.c.bf16 %v1038_v60, %v1037_v59  ;;  %v1152_v10 = vshrl.u32 %v1134_v2, 16  ;;  %v3346_v59 = vld [vmem:[%s5203_s4 + $0x1c] sm:$0xf] }
 0x11b   : > { %v1041_v53 = vpack.c.bf16 %v1036_v24, %v1035_v15  ;;  %v1508_v60 = vsel %vm697_vm1, %v3346_v59, 0 }
 0x11c   : > { %v1146_v45 = vor.u32 %v1145_v14, %v1141_v51  ;;  %v5261_v14 = vpack.c.bf16 %v4411_v20, %v4407_v5  ;;  %v3953_v5 = vld [vmem:[%s5205_s6] sm:$0xff]   ;;  %v1493_v20 = vshrl.u32 %v4449_v7, 16  ;;  %v1591_v7 = vmul.f32 0.0, %v4310_v18 }
 0x11e   : > { %3609 = vmatmul.mubr.msk.bf16.vlgmr.msra.gmra.mrb[0].mxu1 %vm684_vm4, %v938_v9  ;;  %v1135_v9 = vpack.c.bf16 %v4257_v23, %v4244_v12  ;;  %v1137_v12 = vpack.c.bf16 %v4372_v11, %v4372_v11 }
 0x11f   : > { %3617 = vmatpush3.bf16.msra.mxu1 %v1058_v40  ;;  %3612 = vmatprep.mubr.msk.bf16.mxu1 %vm684_vm4, %v940_v38  ;;  %v3336_v40 = vld [vmem:[%s5203_s4 + $0x14] sm:$0xf]  ;;  %v1136_v38 = vpack.c.bf16 %v4265_v26, %v4260_v25 }
 0x120   : > { %3932 = vmatprep.subr.msk.bf16.mxu1 %vm697_vm1, %v3331_v43  ;;  %v1150_v43 = vrot.slane %v1148_v49, 1  ;;  %v1156_v29 = vshll.u32 %v1135_v9, 16  ;;  %v1160_v23 = vshrl.u32 %v1135_v9, 16  ;;  %v1307_v25 = vsel %vm697_vm1, %v3336_v40, 0 }
 0x121   : > { %v1168_v11 = vshrl.u32 %v1136_v38, 16 }
 0x122   : > { %v1158_v42 = vrot.slane %v1156_v29, 1  ;;  %v1154_v15 = vor.u32 %v1152_v10, %v1150_v43 }
 0x124   : > { %v1162_v26 = vor.u32 %v1160_v23, %v1158_v42  ;;  %v1159_v24 = vsel %vm647_vm3, %v1154_v15, %v1158_v42 }
 0x126   : > { %3613 = vmatmul.mubr.msk.bf16.gmra.mrb[4].mxu1 %vm684_vm4, %v942_v46  ;;  %v1151_v46 = vsel %vm647_vm3, %v1146_v45, %v1150_v43 }
 0x127   : > { %3618 = vmatprep.mubr.msk.bf16.mxu1 %vm684_vm4, %v1039_v54  ;;  %v1164_v54 = vshll.u32 %v1136_v38, 16 }
 0x129   : > { %v1166_v41 = vrot.slane %v1164_v54, 1 }
 0x12b   : > { %v1167_v2 = vsel %vm647_vm3, %v1162_v26, %v1166_v41  ;;  %v1170_v13 = vor.u32 %v1168_v11, %v1166_v41 }
 0x12e   : > { %3619 = vmatmul.mubr.msk.bf16.vlgmr.msra.gmra.mrb[0].mxu1 %vm684_vm4, %v1040_v50  ;;  %v1172_v50 = vshll.u32 %v1137_v12, 16 }
 0x12f   : > { %3627 = vmatpush3.bf16.msra.mxu1 %v1189_v0  ;;  %3622 = vmatprep.mubr.msk.bf16.mxu1 %vm684_vm4, %v1041_v53  ;;  %v3341_v0 = vld [vmem:[%s5203_s4 + $0x18] sm:$0xf] }
 0x130   : > { %3933 = vmatprep.subr.msk.bf16.mxu1 %vm697_vm1, %v3336_v40  ;;  %v1174_v53 = vrot.slane %v1172_v50, 1  ;;  %v1409_v49 = vsel %vm697_vm1, %v3341_v0, 0 }
 0x132   : > { %v1175_v40 = vsel %vm647_vm3, %v1170_v13, %v1174_v53 }
 0x136   : > { %3623 = vmatmul.mubr.msk.bf16.gmra.mrb[4].mxu1 %vm684_vm4, %v1042_v44 }
 0x137   : > { %3628 = vmatprep.mubr.msk.bf16.mxu1 %vm684_vm4, %v1151_v46 }
 0x13e   : > { %3629 = vmatmul.mubr.msk.bf16.vlgmr.msra.gmra.mrb[0].mxu1 %vm684_vm4, %v1159_v24 }
 0x13f   : > { %3637 = vmatpush3.bf16.msra.mxu1 %v1307_v25  ;;  %3632 = vmatprep.mubr.msk.bf16.mxu1 %vm684_vm4, %v1167_v2 }
 0x140   : > { %3934 = vmatprep.subr.msk.bf16.mxu1 %vm697_vm1, %v3341_v0 }
 0x146   : > { %3633 = vmatmul.mubr.msk.bf16.gmra.mrb[4].mxu1 %vm684_vm4, %v1175_v40  ;;  %v3955_v40 = vld [vmem:[%s5207_s8 + $0x10] sm:$0xff]  }
 0x147   : > { %3638 = vmatprep.mubr.msk.bf16.mxu1 %vm684_vm4, %v4415_v21  ;;  %v5260_v21 = vpack.c.bf16 %v4402_v6, %v4398_v1  ;;  %v5263_v1 = vpack.c.bf16 %v4440_v58, %v4436_v4  ;;  %v5264_v4 = vmov 0   ;;  %3688 = vmatprep.subr.bf16.mxu0 %v3955_v40 }
 0x148   : > { %3689 = vmatpush3.bf16.msra.mxu0 %v3955_v40 }
 0x14e   : > { %3639 = vmatmul.mubr.msk.bf16.vlgmr.msra.gmra.mrb[0].mxu1 %vm684_vm4, %v4424_v48  ;;  %v3351_v48 = vld [vmem:[%s5203_s4 + $0x20] sm:$0xf] }
 0x14f   : > { %3647 = vmatpush3.bf16.msra.mxu1 %v1409_v49  ;;  %3642 = vmatprep.mubr.msk.bf16.mxu1 %vm684_vm4, %v4443_v27  ;;  %v5262_v27 = vpack.c.bf16 %v4430_v56, %v4421_v17  ;;  %v1626_v6 = vsel %vm697_vm1, %v3351_v48, 0  ;;  %v4602_v17 = vrot.slane %v5264_v4, 1  ;;  %v3956_v49 = vld [vmem:[%s5207_s8 + $0x18] sm:$0xff]  }
 0x150   : > { %3935 = vmatprep.subr.msk.bf16.mxu1 %vm697_vm1, %v3346_v59  ;;  %3690 = vmatprep.subr.bf16.mxu0 %v3956_v49  ;;  %v4640_v59 = vld [vmem:[%s5207_s8] sm:$0xff]  }
 0x151   : > { %5265 = vst [vmem:[#allocation15_spill] sm:$0xff] %v4602_v17  ;;  %3691 = vmatpush3.bf16.msra.mxu0 %v3956_v49 }
 0x152   : > { %3700 = vmatprep.subr.bf16.mxu0 %v4640_v59 }
 0x156   : > { %3643 = vmatmul.mubr.msk.bf16.gmra.mrb[4].mxu1 %vm684_vm4, %v4452_v28  ;;  %v3954_v28 = vld [vmem:[%s5205_s6 + $0x8] sm:$0xff]  }
 0x157   : > { %3648 = vmatprep.mubr.msk.bf16.mxu1 %vm684_vm4, %v5260_v21  ;;  %v3357_v21 = vld [vmem:[%s5206_s7] ss:$0 sm:$0xff] }
 0x15e   : > { %3649 = vmatmul.mubr.msk.bf16.vlgmr.msra.gmra.mrb[0].mxu1 %vm684_vm4, %v5261_v14 }
 0x15f   : > { %3657 = vmatpush3.bf16.msra.mxu1 %v1508_v60  ;;  %3652 = vmatprep.mubr.msk.bf16.mxu1 %vm684_vm4, %v5262_v27 }
 0x160   : > { %3936 = vmatprep.subr.msk.bf16.mxu1 %vm697_vm1, %v3351_v48 }
 0x166   : > { %3653 = vmatmul.mubr.msk.bf16.gmra.mrb[4].mxu1 %vm684_vm4, %v5263_v1 }
 0x167   : > { %3658 = vmatprep.mubr.msk.bf16.mxu1 %vm684_vm4, %v4279_v55  ;;  %v1495_v55 = vor.u32 %v1493_v20, %v4475_v52 }
 0x169   : > { %v1500_v56 = vsel %vm647_vm3, %v1495_v55, %v4602_v17 }
 0x16e   : > { %3659 = vmatmul.mubr.msk.bf16.vlgmr.msra.gmra.mrb[0].mxu1 %vm684_vm4, %v4295_v63  ;;  %v1596_v63 = vpack.c.bf16 %v1591_v7, %v1591_v7 }
 0x16f   : > { %3667 = vmatpush3.bf16.msra.mxu1 %v1626_v6  ;;  %3662 = vmatprep.mubr.msk.bf16.mxu1 %vm684_vm4, %v4482_v47  ;;  %v3356_v47 = vld [vmem:[%s5204_s5] ss:$0 sm:$0xff] }
 0x170   : > { %3676 = vmatprep.subr.bf16.mxu1 %v3953_v5  ;;  %v4615_v58 = vrot.slane %v1596_v63, 1 }
 0x172   : > { %5266 = vst [vmem:[#allocation16_spill] sm:$0xff] %v4615_v58  ;;  %v1612_v52 = vsel %vm933_vm6, %v4484_v22, %v4615_v58 }
 0x176   : > { %3663 = vmatmul.mubr.msk.bf16.gmra.mrb[4].mxu1 %vm684_vm4, %v1500_v56 }
 0x177   : > { %3668 = vmatprep.mubr.msk.bf16.mxu1 %vm684_vm4, %v4487_v57 }
 0x17e   : > { %3669 = vmatmul.mubr.msk.bf16.vlgmr.msra.gmra.mrb[0].mxu1 %vm684_vm4, %v4491_v61 }
 0x17f   : > { %3672 = vmatprep.mubr.msk.bf16.mxu1 %vm684_vm4, %v4495_v62  ;;  %3677 = vmatpush3.bf16.msra.mxu1 %v3953_v5 }
 0x180   : > { %3678 = vmatprep.subr.bf16.mxu1 %v3954_v28 }
 0x183   : > { %3679 = vmatpush3.bf16.msra.mxu1 %v3954_v28 }
 0x186   : > { %3673 = vmatmul.mubr.msk.bf16.gmra.mrb[4].mxu1 %vm684_vm4, %v1612_v52 }
 0x251   : > { %v3670_v57 = vpop.f32.mrb[0].mxu1 }
 0x252   : > { %v1710_v61 = vadd.f32 %v3670_v57, %v3356_v47  ;;  %v1662_v62 = vpop.f32.mrb[1].mxu1 }
 0x253   : > { %v1708_v9 = vadd.f32 %v3356_v47, %v1662_v62  ;;  %v3671_v51 = vpop.f32.mrb[2].mxu1 }
 0x254   : > { %v1711_v43 = vadd.f32 %v3671_v51, %v3356_v47  ;;  %v1665_v38 = vpop.f32.mrb[3].mxu1  ;;  %v1718_v44 = vmax.f32 %v1710_v61, 0.0 }
 0x255   : > { %v1709_v22 = vadd.f32 %v3356_v47, %v1665_v38  ;;  %v1716_v29 = vmax.f32 %v1708_v9, 0.0 }
 0x256   : > { %v1719_v45 = vmax.f32 %v1711_v43, 0.0  ;;  %v5267_v43 = vmov 0.0  }
 0x257   : > { %v1717_v46 = vmax.f32 %v1709_v22, 0.0 }
 0x258   : > { %v1725_v54 = vpack.c.bf16 %v1719_v45, %v1718_v44 }
 0x259   : > { %v1724_v42 = vpack.c.bf16 %v1717_v46, %v1716_v29  ;;  %v3674_v10 = vpop.f32.mrb[4].mxu1 }
 0x25a   : > { %v1714_v12 = vadd.f32 %v3674_v10, %v3356_v47  ;;  %v1678_v23 = vpop.f32.mrb[5].mxu1 }
 0x25b   : > { %v1712_v41 = vadd.f32 %v3356_v47, %v1678_v23  ;;  %v3675_v15 = vpop.f32.mrb[6].mxu1  ;;  %3680 = vmatprep.mubr.msk.bf16.mxu1 %vm1751_vm7, %v1724_v42 }
 0x25c   : > { %v1715_v25 = vadd.f32 %v3675_v15, %v3356_v47  ;;  %v1681_v26 = vpop.f32.mrb[7].mxu1  ;;  %3681 = vmatmul.mubr.msk.bf16.vlgmr.msra.gmra.mrb[8].mxu1 %vm1751_vm7, %v1725_v54  ;;  %v1722_v50 = vmax.f32 %v1714_v12, 0.0 }
 0x25d   : > { %v1713_v24 = vadd.f32 %v3356_v47, %v1681_v26  ;;  %v1720_v2 = vmax.f32 %v1712_v41, 0.0 }
 0x25e   : > { %v1723_v0 = vmax.f32 %v1715_v25, 0.0 }
 0x25f   : > { %v1721_v11 = vmax.f32 %v1713_v24, 0.0 }
 0x260   : > { %v1727_v13 = vpack.c.bf16 %v1723_v0, %v1722_v50 }
 0x261   : > { %v1726_v53 = vpack.c.bf16 %v1721_v11, %v1720_v2 }
 0x263   : > { %3684 = vmatprep.mubr.msk.bf16.mxu1 %vm1751_vm7, %v1726_v53 }
 0x264   : > { %3685 = vmatmul.mubr.msk.bf16.gmra.mrb[12].mxu1 %vm1751_vm7, %v1727_v13 }
 0x32f   : > { %v3682_v60 = vpop.f32.mrb[8].mxu1 }
 0x330   : > { %v1807_v48 = vadd.f32 %v3682_v60, %v3357_v21  ;;  %v1798_v14 = vpop.f32.mrb[9].mxu1 }
 0x331   : > { %v1799_v27 = vadd.f32 %v3357_v21, %v1798_v14  ;;  %v3683_v1 = vpop.f32.mrb[10].mxu1 }
 0x332   : > { %v1831_v6 = vmax.f32 %v1807_v48, 0.0  ;;  %v1810_v5 = vadd.f32 %v3683_v1, %v3357_v21  ;;  %v1801_v20 = vpop.f32.mrb[11].mxu1 }
 0x333   : > { %v1829_v4 = vmax.f32 %v1799_v27, 0.0  ;;  %v1802_v55 = vadd.f32 %v3357_v21, %v1801_v20 }
 0x334   : > { %v1832_v56 = vmax.f32 %v1810_v5, 0.0  ;;  %v1848_v52 = vrot.slane %v1831_v6, 7 }
 0x335   : > { %v1845_v7 = vrot.slane %v1829_v4, 7  ;;  %v1830_v63 = vmax.f32 %v1802_v55, 0.0 }
 0x336   : > { %v1850_v28 = vrot.slane %v1832_v56, 7 }
 0x337   : > { %v4647_v47 = vsel %vm552_vm2, 0.0, %v1845_v7  ;;  %v1846_v57 = vrot.slane %v1830_v63, 7  ;;  %v3686_v61 = vpop.f32.mrb[12].mxu1 }
 0x338   : > { %v4650_v62 = vsel %vm552_vm2, %v1848_v52, %v1850_v28  ;;  %v1823_v9 = vadd.f32 %v3686_v61, %v3357_v21  ;;  %v1814_v51 = vpop.f32.mrb[13].mxu1  ;;  %v1886_v38 = vpack.c.bf16 %v4647_v47, %v5267_v43  ;;  %v4656_v22 = vmul.f32 %v4647_v47, %v4189_v33 }
 0x339   : > { %v4659_v44 = vsel %vm552_vm2, %v1845_v7, %v1846_v57  ;;  %v4662_v45 = vsel %vm552_vm2, %v1846_v57, %v1848_v52  ;;  %v1815_v29 = vadd.f32 %v3357_v21, %v1814_v51  ;;  %v3687_v46 = vpop.f32.mrb[14].mxu1  ;;  %v4668_v23 = vmul.f32 %v4650_v62, %v4193_v35 }
 0x33a   : > { %v1835_v54 = vmax.f32 %v1823_v9, 0.0  ;;  %v1826_v42 = vadd.f32 %v3687_v46, %v3357_v21  ;;  %v1817_v10 = vpop.f32.mrb[15].mxu1  ;;  %v1887_v12 = vpack.c.bf16 %v4662_v45, %v4659_v44  ;;  %v1897_v25 = vshrl.u32 %v1886_v38, 16 }
 0x33b   : > { %v1833_v41 = vmax.f32 %v1815_v29, 0.0  ;;  %v1818_v15 = vadd.f32 %v3357_v21, %v1817_v10  ;;  %v1899_v26 = vshll.u32 %v1886_v38, 16  ;;  %v1878_v2 = vpack.c.bf16 %v4656_v22, %v4299_v8 }
 0x33c   : > { %v1856_v24 = vrot.slane %v1835_v54, 7  ;;  %v1836_v50 = vmax.f32 %v1826_v42, 0.0  ;;  %v1904_v0 = vshll.u32 %v1887_v12, 16  ;;  %v1908_v40 = vshrl.u32 %v1887_v12, 16  ;;  %v3958_v12 = vld [vmem:[%s5207_s8 + $0x8] sm:$0xff]  }
 0x33d   : > { %v1852_v11 = vrot.slane %v1833_v41, 7  ;;  %v1834_v13 = vmax.f32 %v1818_v15, 0.0  ;;  %v1901_v53 = vrot.slane %v1899_v26, 1  ;;  %v4674_v48 = vmul.f32 %v4659_v44, %v4187_v32 }
 0x33e   : > { %v1858_v49 = vrot.slane %v1836_v50, 7  ;;  %v1906_v60 = vrot.slane %v1904_v0, 1  ;;  %v4678_v21 = vmul.f32 %v4662_v45, %v4191_v34  ;;  %v2110_v6 = vmul.f32 %v4647_v47, %v4289_v30 }
 0x33f   : > { %v4681_v14 = vsel %vm552_vm2, %v1850_v28, %v1852_v11  ;;  %v1854_v27 = vrot.slane %v1834_v13, 7  ;;  %v1902_v1 = vor.u32 %v1901_v53, %v1897_v25  ;;  %v2111_v55 = vmul.f32 %v4659_v44, %v4308_v16 }
 0x340   : > { %v4686_v5 = vsel %vm552_vm2, %v1856_v24, %v1858_v49  ;;  %v4689_v20 = vsel %vm552_vm2, %v1858_v49, 0.0  ;;  %v1888_v4 = vpack.c.bf16 %v4681_v14, %v4650_v62  ;;  %v1910_v52 = vor.u32 %v1908_v40, %v1906_v60  ;;  %v5269_v49 = vld [vmem:[#allocation11_spill] sm:$0xff] }
 0x341   : > { %v4697_v56 = vpack.c.bf16 %v4689_v20, %v4686_v5  ;;  %v4700_v7 = vsel %vm552_vm2, %v1852_v11, %v1854_v27  ;;  %v4703_v63 = vsel %vm552_vm2, %v1854_v27, %v1856_v24  ;;  %v1907_v28 = vsel %vm647_vm3, %v1902_v1, %v1906_v60  ;;  %v5271_v1 = vld [vmem:[#allocation12_spill] sm:$0xff] }
 0x342   : > { %v1912_v57 = vshll.u32 %v1888_v4, 16  ;;  %v1889_v61 = vpack.c.bf16 %v4703_v63, %v4700_v7  ;;  %v1916_v9 = vshrl.u32 %v1888_v4, 16  ;;  %3692 = vmatprep.mubr.msk.bf16.mxu0 %vm1751_vm7, %v1907_v28  ;;  %v1890_v51 = vpack.c.bf16 %v4686_v5, %v4686_v5  ;;  %v5272_v4 = vld [vmem:[#allocation13_spill] sm:$0xff]  ;;  %v5273_v28 = vld [vmem:[#allocation14_spill] sm:$0xff] }
 0x343   : > { %v4715_v38 = vmul.f32 %v4681_v14, %v4195_v36  ;;  %v4719_v29 = vmul.f32 %v4700_v7, %v4197_v37  ;;  %v4723_v10 = vmul.f32 %v4703_v63, %v4202_v39  ;;  %v2112_v25 = vmul.f32 %v4662_v45, %v4292_v3 }
 0x344   : > { %v1914_v46 = vrot.slane %v1912_v57, 1  ;;  %v1920_v54 = vshll.u32 %v1889_v61, 16  ;;  %v1924_v42 = vshrl.u32 %v1889_v61, 16  ;;  %v1928_v41 = vshll.u32 %v1890_v51, 16 }
 0x345   : > { %v2118_v26 = vpack.c.bf16 %v2110_v6, %v4313_v19  ;;  %v2119_v53 = vpack.c.bf16 %v2112_v25, %v2111_v55  ;;  %v2113_v60 = vmul.f32 %v4650_v62, %v5269_v49  ;;  %v2114_v6 = vmul.f32 %v4681_v14, %v5271_v1  ;;  %v4757_v55 = vld [vmem:[%s5207_s8 + $0x20] sm:$0xff]  }
 0x346   : > { %v4734_v24 = vsel %vm647_vm3, %v1910_v52, %v1914_v46  ;;  %v1918_v50 = vor.u32 %v1916_v9, %v1914_v46  ;;  %v1922_v0 = vrot.slane %v1920_v54, 1  ;;  %v1930_v13 = vrot.slane %v1928_v41, 1 }
 0x347   : > { %5268 = vst [vmem:[#allocation17_spill] sm:$0xff] %v4734_v24  ;;  %3693 = vmatmul.mubr.msk.bf16.vlgmr.msra.gmra.mrb[8].mxu0 %vm1751_vm7, %v4734_v24  ;;  %v2133_v40 = vrot.slane %v2118_v26, 1  ;;  %v2115_v52 = vmul.f32 %v4700_v7, %v5272_v4  ;;  %v2116_v57 = vmul.f32 %v4703_v63, %v5273_v28  ;;  %v2117_v61 = vmul.f32 %v4686_v5, %v4310_v18  ;;  %v5278_v24 = vld [vmem:[#allocation10_spill] sm:$0xff] }
 0x348   : > { %3701 = vmatpush3.bf16.msra.mxu0 %v4640_v59  ;;  %v4744_v19 = vsel %vm647_vm3, %v1918_v50, %v1922_v0  ;;  %v4746_v27 = vor.u32 %v1924_v42, %v1922_v0  ;;  %v2134_v59 = vrot.slane %v2119_v53, 1  ;;  %v4765_v9 = vmul.f32 %v4647_v47, %v4185_v31 }
 0x349   : > { %5270 = vst [vmem:[#allocation11_spill] sm:$0xff] %v4744_v19  ;;  %3696 = vmatprep.mubr.msk.bf16.mxu0 %vm1751_vm7, %v4744_v19  ;;  %3702 = vmatprep.subr.bf16.mxu0 %v3958_v12  ;;  %v2120_v46 = vpack.c.bf16 %v2114_v6, %v2113_v60  ;;  %v4771_v54 = vmul.f32 %v4659_v44, %v4189_v33 }
 0x34a   : > { %v1931_v51 = vsel %vm647_vm3, %v4746_v27, %v1930_v13  ;;  %v4775_v42 = vmul.f32 %v4662_v45, %v4187_v32  ;;  %v4778_v41 = vsel %vm933_vm6, %v2133_v40, %v2134_v59  ;;  %v2121_v25 = vpack.c.bf16 %v2116_v57, %v2115_v52 }
 0x34b   : > { %v2122_v26 = vpack.c.bf16 %v2117_v61, %v2117_v61  ;;  %v4782_v50 = vmul.f32 %v4650_v62, %v4191_v34  ;;  %v2136_v0 = vrot.slane %v2120_v46, 1  ;;  %v4788_v53 = vmul.f32 %v4681_v14, %v4193_v35 }
 0x34c   : > { %3703 = vmatpush3.bf16.msra.mxu0 %v3958_v12  ;;  %v4792_v60 = vmul.f32 %v4700_v7, %v4195_v36  ;;  %v2138_v40 = vrot.slane %v2121_v25, 1  ;;  %v4799_v12 = vmul.f32 %v4703_v63, %v4197_v37  ;;  %v4808_v46 = vmul.f32 %v4686_v5, %v4202_v39 }
 0x34d   : > { %5274 = vst [vmem:[#allocation12_spill] sm:$0xff] %v4788_v53  ;;  %3712 = vmatprep.subr.bf16.mxu0 %v4757_v55  ;;  %v2140_v6 = vrot.slane %v2122_v26, 1  ;;  %v4802_v57 = vsel %vm933_vm6, %v2134_v59, %v2136_v0  ;;  %v2353_v25 = vpack.c.bf16 %v4659_v44, %v4647_v47  ;;  %v2354_v59 = vpack.c.bf16 %v4650_v62, %v4662_v45 }
 0x34e   : > { %5275 = vst [vmem:[#allocation13_spill] sm:$0xff] %v4792_v60  ;;  %5276 = vst [vmem:[#allocation14_spill] sm:$0xff] %v4799_v12  ;;  %v4814_v26 = vsel %vm933_vm6, %v2136_v0, %v2138_v40  ;;  %v2355_v61 = vpack.c.bf16 %v4700_v7, %v4681_v14  ;;  %v2357_v19 = vpack.c.bf16 %v4689_v20, %v4689_v20 }
 0x34f   : > { %5277 = vst [vmem:[#allocation18_spill] sm:$0xff] %v4808_v46  ;;  %3697 = vmatmul.mubr.msk.bf16.gmra.mrb[12].mxu0 %vm1751_vm7, %v1931_v51  ;;  %v4817_v52 = vsel %vm933_vm6, %v2138_v40, %v2140_v6  ;;  %v2364_v13 = vshrl.u32 %v2353_v25, 16  ;;  %v2366_v0 = vshll.u32 %v2353_v25, 16  ;;  %v2356_v40 = vpack.c.bf16 %v4686_v5, %v4703_v63 }
 0x350   : > { %3704 = vmatprep.mubr.msk.bf16.mxu0 %vm1751_vm7, %v1878_v2  ;;  %v2371_v6 = vshll.u32 %v2354_v59, 16  ;;  %v2375_v11 = vshrl.u32 %v2354_v59, 16  ;;  %v2379_v15 = vshll.u32 %v2355_v61, 16  ;;  %v2383_v43 = vshrl.u32 %v2355_v61, 16  ;;  %v3960_v59 = vld [vmem:[%s5207_s8 + $0x28] sm:$0xff]  }
 0x351   : > { %v2368_v58 = vrot.slane %v2366_v0, 1  ;;  %v2387_v17 = vshll.u32 %v2356_v40, 16  ;;  %v2391_v8 = vshrl.u32 %v2356_v40, 16  ;;  %v2496_v51 = vmul.f32 %v4647_v47, %v5278_v24 }
 0x352   : > { %v2373_v22 = vrot.slane %v2371_v6, 1  ;;  %v2381_v2 = vrot.slane %v2379_v15, 1  ;;  %v2497_v25 = vmul.f32 %v4659_v44, %v4289_v30  ;;  %v2395_v53 = vshll.u32 %v2357_v19, 16 }
 0x353   : > { %v2369_v12 = vor.u32 %v2368_v58, %v2364_v13  ;;  %v2389_v46 = vrot.slane %v2387_v17, 1  ;;  %v2498_v61 = vmul.f32 %v4662_v45, %v4308_v16  ;;  %v2499_v15 = vmul.f32 %v4650_v62, %v4292_v3 }
 0x354   : > { %v2377_v0 = vor.u32 %v2375_v11, %v2373_v22  ;;  %v2385_v40 = vor.u32 %v2383_v43, %v2381_v2  ;;  %v2505_v6 = vpack.c.bf16 %v2497_v25, %v2496_v51  ;;  %v2397_v58 = vrot.slane %v2395_v53, 1 }
 0x355   : > { %v4845_v47 = vsel %vm647_vm3, %v2369_v12, %v2373_v22  ;;  %v2393_v60 = vor.u32 %v2391_v8, %v2389_v46  ;;  %v2500_v17 = vmul.f32 %v4681_v14, %v5269_v49  ;;  %v5279_v19 = vpack.c.bf16 %v4678_v21, %v4674_v48 }
 0x356   : > { %v4854_v11 = vsel %vm647_vm3, %v2377_v0, %v2381_v2  ;;  %v4857_v43 = vsel %vm647_vm3, %v2385_v40, %v2389_v46  ;;  %v2506_v13 = vpack.c.bf16 %v2499_v15, %v2498_v61  ;;  %v2520_v51 = vrot.slane %v2505_v6, 1 }
 0x357   : > { %3705 = vmatmul.mubr.msk.bf16.vlgmr.msra.gmra.mrb[8].mxu0 %vm1751_vm7, %v5279_v19  ;;  %v5280_v53 = vpack.c.bf16 %v4715_v38, %v4668_v23  ;;  %v4865_v12 = vsel %vm647_vm3, %v2393_v60, %v2397_v58  ;;  %v2501_v48 = vmul.f32 %v4700_v7, %v5271_v1  ;;  %v2502_v21 = vmul.f32 %v4703_v63, %v5272_v4 }
 0x358   : > { %3713 = vmatpush3.bf16.msra.mxu0 %v4757_v55  ;;  %v2747_v46 = vshll.u32 %v4697_v56, 16  ;;  %v3961_v55 = vld [vmem:[%s5207_s8 + $0x30] sm:$0xff]   ;;  %v2521_v8 = vrot.slane %v2506_v13, 1  ;;  %v2503_v23 = vmul.f32 %v4686_v5, %v5273_v28  ;;  %v2504_v38 = vmul.f32 %v4689_v20, %v4310_v18 }
 0x359   : > { %3708 = vmatprep.mubr.msk.bf16.mxu0 %vm1751_vm7, %v5280_v53  ;;  %3714 = vmatprep.subr.bf16.mxu0 %v3960_v59  ;;  %v4881_v60 = vmul.f32 %v4659_v44, %v4185_v31  ;;  %v2507_v22 = vpack.c.bf16 %v2501_v48, %v2500_v17  ;;  %v4885_v2 = vmul.f32 %v4662_v45, %v4189_v33 }
 0x35a   : > { %v4889_v25 = vmul.f32 %v4650_v62, %v4187_v32  ;;  %v4893_v61 = vmul.f32 %v4681_v14, %v4191_v34  ;;  %v4896_v0 = vsel %vm933_vm6, %v2520_v51, %v2521_v8  ;;  %v2508_v18 = vpack.c.bf16 %v2503_v23, %v2502_v21 }
 0x35b   : > { %v2509_v40 = vpack.c.bf16 %v2504_v38, %v2504_v38  ;;  %v4900_v31 = vmul.f32 %v4700_v7, %v4193_v35  ;;  %v2523_v33 = vrot.slane %v2507_v22, 1  ;;  %v2634_v15 = vpack.c.bf16 %v4885_v2, %v4881_v60  ;;  %v5290_v38 = vld [vmem:[#allocation17_spill] sm:$0xff]  ;;  %v3972_v60 = vld [vmem:[%s5207_s8 + $0x88] sm:$0xff]  }
 0x35c   : > { %3715 = vmatpush3.bf16.msra.mxu0 %v3960_v59  ;;  %v2635_v32 = vpack.c.bf16 %v4893_v61, %v4889_v25  ;;  %v4908_v34 = vmul.f32 %v4703_v63, %v4195_v36  ;;  %v2525_v6 = vrot.slane %v2508_v18, 1  ;;  %v4912_v17 = vmul.f32 %v4686_v5, %v4197_v37  ;;  %v5291_v22 = vld [vmem:[#allocation11_spill] sm:$0xff]  ;;  %v5293_v18 = vld [vmem:[#allocation16_spill] sm:$0xff] }
 0x35d   : > { %3724 = vmatprep.subr.bf16.mxu0 %v3961_v55  ;;  %v2527_v58 = vrot.slane %v2509_v40, 1  ;;  %v4916_v35 = vmul.f32 %v4689_v20, %v4202_v39  ;;  %v2853_v59 = vmul.f32 %v4689_v20, %v5273_v28  ;;  %v2524_v19 = vsel %vm933_vm6, %v2521_v8, %v2523_v33  ;;  %v5292_v61 = vld [vmem:[#allocation15_spill] sm:$0xff] }
 0x35e   : > { %v2636_v36 = vpack.c.bf16 %v4908_v34, %v4900_v31  ;;  %v4923_v13 = vrot.slane %v2747_v46, 1  ;;  %v5281_v51 = vpack.c.bf16 %v4723_v10, %v4719_v29  ;;  %v2526_v37 = vsel %vm933_vm6, %v2523_v33, %v2525_v6 }
 0x35f   : > { %v2528_v39 = vsel %vm933_vm6, %v2525_v6, %v2527_v58  ;;  %v2637_v53 = vpack.c.bf16 %v4916_v35, %v4912_v17  ;;  %v2846_v20 = vmul.f32 %v4659_v44, %v5278_v24  ;;  %v2847_v29 = vmul.f32 %v4662_v45, %v4289_v30  ;;  %v3962_v30 = vld [vmem:[%s5207_s8 + $0x38] sm:$0xff]  }
 0x360   : > { %3709 = vmatmul.mubr.msk.bf16.gmra.mrb[12].mxu0 %vm1751_vm7, %v5281_v51  ;;  %v4940_v28 = vsel %vm647_vm3, %v4746_v27, %v4923_v13  ;;  %v2848_v10 = vmul.f32 %v4650_v62, %v4308_v16  ;;  %v2849_v48 = vmul.f32 %v4681_v14, %v4292_v3  ;;  %v2850_v44 = vmul.f32 %v4700_v7, %v5269_v49 }
 0x361   : > { %3716 = vmatprep.mubr.msk.bf16.mxu0 %vm1751_vm7, %v4778_v41  ;;  %v2851_v24 = vmul.f32 %v4703_v63, %v5271_v1  ;;  %v2852_v41 = vmul.f32 %v4686_v5, %v5272_v4  ;;  %v2854_v27 = vpack.c.bf16 %v2847_v29, %v2846_v20  ;;  %v3963_v63 = vld [vmem:[%s5207_s8 + $0x40] sm:$0xff]   ;;  %v5282_v49 = vpack.c.bf16 %v4771_v54, %v4765_v9  ;;  %v3964_v1 = vld [vmem:[%s5207_s8 + $0x48] sm:$0xff]   ;;  %v3965_v9 = vld [vmem:[%s5207_s8 + $0x50] sm:$0xff]  }
 0x362   : > { %v2855_v21 = vpack.c.bf16 %v2849_v48, %v2848_v10  ;;  %v5283_v4 = vpack.c.bf16 %v4782_v50, %v4775_v42  ;;  %v5287_v54 = vld [vmem:[#allocation18_spill] sm:$0xff]  ;;  %v3966_v42 = vld [vmem:[%s5207_s8 + $0x58] sm:$0xff]   ;;  %v2751_v2 = vshrl.u32 %v4697_v56, 16 }
 0x363   : > { %v2856_v46 = vpack.c.bf16 %v2851_v24, %v2850_v44  ;;  %v2857_v8 = vpack.c.bf16 %v2853_v59, %v2852_v41  ;;  %v2867_v16 = vrot.slane %v2854_v27, 1  ;;  %v3967_v50 = vld [vmem:[%s5207_s8 + $0x60] sm:$0xff]  }
 0x364   : > { %v2868_v62 = vrot.slane %v2855_v21, 1  ;;  %v2753_v25 = vor.u32 %v2751_v2, %v4923_v13  ;;  %v3450_v56 = vld [vmem:[%s5208_s9] ss:$0 sm:$0xff] }
 0x365   : > { %v2870_v3 = vrot.slane %v2856_v46, 1  ;;  %v4957_v45 = vrot.slane %v2857_v8, 1 }
 0x366   : > { %v2869_v14 = vsel %vm933_vm6, %v2867_v16, %v2868_v62 }
 0x367   : > { %v2871_v5 = vsel %vm933_vm6, %v2868_v62, %v2870_v3  ;;  %v2873_v7 = vsel %vm933_vm6, %v2870_v3, %v4957_v45  ;;  %v2874_v40 = vsel %vm933_vm6, %v4957_v45, %v5293_v18 }
 0x368   : > { %3717 = vmatmul.mubr.msk.bf16.vlgmr.msra.gmra.mrb[8].mxu0 %vm1751_vm7, %v4802_v57  ;;  %v5284_v57 = vld [vmem:[#allocation13_spill] sm:$0xff] }
 0x369   : > { %3725 = vmatpush3.bf16.msra.mxu0 %v3961_v55  ;;  %3720 = vmatprep.mubr.msk.bf16.mxu0 %vm1751_vm7, %v4814_v26  ;;  %v5285_v26 = vld [vmem:[#allocation12_spill] sm:$0xff] }
 0x36a   : > { %3726 = vmatprep.subr.bf16.mxu0 %v3962_v30  ;;  %v5286_v55 = vpack.c.bf16 %v5284_v57, %v5285_v26 }
 0x36d   : > { %3727 = vmatpush3.bf16.msra.mxu0 %v3962_v30 }
 0x36e   : > { %3736 = vmatprep.subr.bf16.mxu0 %v3963_v63 }
 0x370   : > { %3721 = vmatmul.mubr.msk.bf16.gmra.mrb[12].mxu0 %vm1751_vm7, %v4817_v52  ;;  %v5288_v52 = vld [vmem:[#allocation14_spill] sm:$0xff] }
 0x371   : > { %3728 = vmatprep.mubr.msk.bf16.mxu0 %vm1751_vm7, %v5282_v49  ;;  %v5289_v23 = vpack.c.bf16 %v5287_v54, %v5288_v52 }
 0x378   : > { %3729 = vmatmul.mubr.msk.bf16.vlgmr.msra.gmra.mrb[8].mxu0 %vm1751_vm7, %v5283_v4 }
 0x379   : > { %3737 = vmatpush3.bf16.msra.mxu0 %v3963_v63  ;;  %3732 = vmatprep.mubr.msk.bf16.mxu0 %vm1751_vm7, %v5286_v55 }
 0x37a   : > { %3738 = vmatprep.subr.bf16.mxu0 %v3964_v1 }
 0x37d   : > { %3739 = vmatpush3.bf16.msra.mxu0 %v3964_v1 }
 0x37e   : > { %3748 = vmatprep.subr.bf16.mxu0 %v3965_v9 }
 0x380   : > { %3733 = vmatmul.mubr.msk.bf16.gmra.mrb[12].mxu0 %vm1751_vm7, %v5289_v23 }
 0x381   : > { %3740 = vmatprep.mubr.msk.bf16.mxu0 %vm1751_vm7, %v4845_v47  ;;  %v3968_v47 = vld [vmem:[%s5207_s8 + $0x68] sm:$0xff]  }
 0x388   : > { %3741 = vmatmul.mubr.msk.bf16.vlgmr.msra.gmra.mrb[8].mxu0 %vm1751_vm7, %v4854_v11  ;;  %v3969_v11 = vld [vmem:[%s5207_s8 + $0x70] sm:$0xff]  }
 0x389   : > { %3749 = vmatpush3.bf16.msra.mxu0 %v3965_v9  ;;  %3744 = vmatprep.mubr.msk.bf16.mxu0 %vm1751_vm7, %v4857_v43  ;;  %v3970_v43 = vld [vmem:[%s5207_s8 + $0x78] sm:$0xff]  }
 0x38a   : > { %3750 = vmatprep.subr.bf16.mxu0 %v3966_v42 }
 0x38d   : > { %3751 = vmatpush3.bf16.msra.mxu0 %v3966_v42 }
 0x38e   : > { %3760 = vmatprep.subr.bf16.mxu0 %v3967_v50 }
 0x390   : > { %3745 = vmatmul.mubr.msk.bf16.gmra.mrb[12].mxu0 %vm1751_vm7, %v4865_v12  ;;  %v3971_v12 = vld [vmem:[%s5207_s8 + $0x80] sm:$0xff]  }
 0x391   : > { %3752 = vmatprep.mubr.msk.bf16.mxu0 %vm1751_vm7, %v4896_v0  ;;  %v2754_v0 = vsel %vm647_vm3, %v2753_v25, %v5292_v61 }
 0x398   : > { %3753 = vmatmul.mubr.msk.bf16.vlgmr.msra.gmra.mrb[8].mxu0 %vm1751_vm7, %v2524_v19 }
 0x399   : > { %3761 = vmatpush3.bf16.msra.mxu0 %v3967_v50  ;;  %3756 = vmatprep.mubr.msk.bf16.mxu0 %vm1751_vm7, %v2526_v37 }
 0x39a   : > { %3762 = vmatprep.subr.bf16.mxu0 %v3968_v47 }
 0x39d   : > { %3763 = vmatpush3.bf16.msra.mxu0 %v3968_v47 }
 0x39e   : > { %3772 = vmatprep.subr.bf16.mxu0 %v3969_v11 }
 0x3a0   : > { %3757 = vmatmul.mubr.msk.bf16.gmra.mrb[12].mxu0 %vm1751_vm7, %v2528_v39 }
 0x3a1   : > { %3764 = vmatprep.mubr.msk.bf16.mxu0 %vm1751_vm7, %v2634_v15 }
 0x3a8   : > { %3765 = vmatmul.mubr.msk.bf16.vlgmr.msra.gmra.mrb[8].mxu0 %vm1751_vm7, %v2635_v32 }
 0x3a9   : > { %3773 = vmatpush3.bf16.msra.mxu0 %v3969_v11  ;;  %3768 = vmatprep.mubr.msk.bf16.mxu0 %vm1751_vm7, %v2636_v36 }
 0x3aa   : > { %3774 = vmatprep.subr.bf16.mxu0 %v3970_v43 }
 0x3ad   : > { %3775 = vmatpush3.bf16.msra.mxu0 %v3970_v43 }
 0x3ae   : > { %3784 = vmatprep.subr.bf16.mxu0 %v3971_v12 }
 0x3b0   : > { %3769 = vmatmul.mubr.msk.bf16.gmra.mrb[12].mxu0 %vm1751_vm7, %v2637_v53 }
 0x3b1   : > { %3776 = vmatprep.mubr.msk.bf16.mxu0 %vm1751_vm7, %v5290_v38 }
 0x3b8   : > { %3777 = vmatmul.mubr.msk.bf16.vlgmr.msra.gmra.mrb[8].mxu0 %vm1751_vm7, %v5291_v22 }
 0x3b9   : > { %3785 = vmatpush3.bf16.msra.mxu0 %v3971_v12  ;;  %3780 = vmatprep.mubr.msk.bf16.mxu0 %vm1751_vm7, %v4940_v28 }
 0x3ba   : > { %3786 = vmatprep.subr.bf16.mxu0 %v3972_v60 }
 0x3bd   : > { %3787 = vmatpush3.bf16.msra.mxu0 %v3972_v60 }
 0x3c0   : > { %3781 = vmatmul.mubr.msk.bf16.gmra.mrb[12].mxu0 %vm1751_vm7, %v2754_v0 }
 0x3c1   : > { %3788 = vmatprep.mubr.msk.bf16.mxu0 %vm1751_vm7, %v2869_v14 }
 0x3c8   : > { %3789 = vmatmul.mubr.msk.bf16.vlgmr.msra.gmra.mrb[8].mxu0 %vm1751_vm7, %v2871_v5 }
 0x3c9   : > { %3792 = vmatprep.mubr.msk.bf16.mxu0 %vm1751_vm7, %v2873_v7 }
 0x3d0   : > { %3793 = vmatmul.mubr.msk.bf16.gmra.mrb[12].mxu0 %vm1751_vm7, %v2874_v40 }
 0x49b   : > { %v3790_v31 = vpop.f32.mrb[8].mxu0 }
 0x49c   : > { %v5065_v33 = vadd.f32 %v3790_v31, %v3450_v56  ;;  %v2933_v15 = vpop.f32.mrb[9].mxu0 }
 0x49d   : > { %v5067_v32 = vadd.f32 %v3450_v56, %v2933_v15  ;;  %v3791_v34 = vpop.f32.mrb[10].mxu0 }
 0x49e   : > { %v5070_v6 = vadd.f32 2.0, %v5065_v33  ;;  %v5072_v58 = vadd.f32 %v3791_v34, %v3450_v56  ;;  %v2936_v17 = vpop.f32.mrb[11].mxu0 }
 0x49f   : > { %v5075_v35 = vadd.f32 2.0, %v5067_v32  ;;  %v5077_v59 = vadd.f32 %v3450_v56, %v2936_v17 }
 0x4a0   : > { %v3005_v19 = vand.u32 2147483647, %v5070_v6  ;;  %v5081_v36 = vadd.f32 2.0, %v5072_v58 }
 0x4a1   : > { %v3003_v13 = vand.u32 2147483647, %v5075_v35  ;;  %v5085_v51 = vadd.f32 2.0, %v5077_v59  ;;  %v2995_v17 = vmin.f32 %v5075_v35, 0.0 }
 0x4a2   : > { %v3013_v37 = vsub.f32 0.0, %v3005_v19  ;;  %v3006_v39 = vand.u32 2147483647, %v5081_v36 }
 0x4a3   : > { %v3011_v53 = vsub.f32 0.0, %v3003_v13  ;;  %v3004_v20 = vand.u32 2147483647, %v5085_v51  ;;  %v3794_v28 = vpop.f32.mrb[12].mxu0 }
 0x4a4   : > { %v3023_v29 = vmul.f32 1.442695, %v3013_v37  ;;  %v3014_v10 = vsub.f32 0.0, %v3006_v39  ;;  %v5089_v48 = vadd.f32 %v3794_v28, %v3450_v56  ;;  %v2949_v44 = vpop.f32.mrb[13].mxu0  ;;  %v2996_v37 = vmin.f32 %v5085_v51, 0.0 }
 0x4a5   : > { %v3019_v24 = vmul.f32 1.442695, %v3011_v53  ;;  %v3012_v41 = vsub.f32 0.0, %v3004_v20  ;;  %v5091_v27 = vadd.f32 %v3450_v56, %v2949_v44  ;;  %v3795_v21 = vpop.f32.mrb[14].mxu0  ;;  %v2997_v28 = vmin.f32 %v5070_v6, 0.0 }
 0x4a6   : > { %3973 = vpow2.f32 %v3023_v29  ;;  %v3025_v46 = vmul.f32 1.442695, %v3014_v10  ;;  %v5094_v8 = vadd.f32 2.0, %v5089_v48  ;;  %v5096_v30 = vadd.f32 %v3795_v21, %v3450_v56  ;;  %v2952_v16 = vpop.f32.mrb[15].mxu0 }
 0x4a7   : > { %3975 = vpow2.f32 %v3019_v24  ;;  %v3021_v62 = vmul.f32 1.442695, %v3012_v41  ;;  %v5099_v3 = vadd.f32 2.0, %v5091_v27  ;;  %v5101_v45 = vadd.f32 %v3450_v56, %v2952_v16 }
 0x4a8   : > { %3977 = vpow2.f32 %v3025_v46  ;;  %v3009_v14 = vand.u32 2147483647, %v5094_v8  ;;  %v5105_v5 = vadd.f32 2.0, %v5096_v30  ;;  %v2998_v24 = vmin.f32 %v5081_v36, 0.0 }
 0x4a9   : > { %3979 = vpow2.f32 %v3021_v62  ;;  %v3007_v7 = vand.u32 2147483647, %v5099_v3  ;;  %v5109_v63 = vadd.f32 2.0, %v5101_v45  ;;  %v2999_v46 = vmin.f32 %v5099_v3, 0.0 }
 0x4aa   : > { %v3017_v49 = vsub.f32 0.0, %v3009_v14  ;;  %v3010_v1 = vand.u32 2147483647, %v5105_v5 }
 0x4ab   : > { %v3015_v4 = vsub.f32 0.0, %v3007_v7  ;;  %v3008_v57 = vand.u32 2147483647, %v5109_v63  ;;  %v3000_v14 = vmin.f32 %v5109_v63, 0.0 }
 0x4ac   : > { %v3031_v26 = vmul.f32 1.442695, %v3017_v49  ;;  %v3018_v55 = vsub.f32 0.0, %v3010_v1  ;;  %v3001_v1 = vmin.f32 %v5094_v8, 0.0 }
 0x4ad   : > { %v3027_v9 = vmul.f32 1.442695, %v3015_v4  ;;  %v3016_v54 = vsub.f32 0.0, %v3008_v57  ;;  %v3002_v57 = vmin.f32 %v5105_v5, 0.0 }
 0x4ae   : > { %3981 = vpow2.f32 %v3031_v26  ;;  %v3033_v52 = vmul.f32 1.442695, %v3018_v55 }
 0x4af   : > { %3983 = vpow2.f32 %v3027_v9  ;;  %v3029_v23 = vmul.f32 1.442695, %v3016_v54 }
 0x4b0   : > { %v3974_v42 = vpop.eup %3973  ;;  %3985 = vpow2.f32 %v3033_v52 }
 0x4b1   : > { %v3976_v50 = vpop.eup %3975  ;;  %v3037_v47 = vadd.f32 1.0, %v3974_v42  ;;  %3987 = vpow2.f32 %v3029_v23 }
 0x4b2   : > { %v3978_v11 = vpop.eup %3977  ;;  %v3035_v43 = vadd.f32 1.0, %v3976_v50 }
 0x4b3   : > { %v3980_v12 = vpop.eup %3979  ;;  %v3038_v38 = vadd.f32 1.0, %v3978_v11  ;;  %3989 = vlog2.f32 %v3037_v47 }
 0x4b4   : > { %v3036_v60 = vadd.f32 1.0, %v3980_v12  ;;  %3991 = vlog2.f32 %v3035_v43 }
 0x4b5   : > { %3993 = vlog2.f32 %v3038_v38 }
 0x4b6   : > { %3995 = vlog2.f32 %v3036_v60 }
 0x4b8   : > { %v3982_v22 = vpop.eup %3981 }
 0x4b9   : > { %v3984_v2 = vpop.eup %3983  ;;  %v3041_v25 = vadd.f32 1.0, %v3982_v22 }
 0x4ba   : > { %v3986_v61 = vpop.eup %3985  ;;  %v3039_v0 = vadd.f32 1.0, %v3984_v2 }
 0x4bb   : > { %v3988_v18 = vpop.eup %3987  ;;  %v3042_v40 = vadd.f32 1.0, %v3986_v61  ;;  %3997 = vlog2.f32 %v3041_v25 }
 0x4bc   : > { %v3040_v56 = vadd.f32 1.0, %v3988_v18  ;;  %3999 = vlog2.f32 %v3039_v0  ;;  %v5294_v0 = vld [vmem:[#allocation3_spill] sm:$0xff] }
 0x4bd   : > { %v3990_v31 = vpop.eup %3989  ;;  %4001 = vlog2.f32 %v3042_v40 }
 0x4be   : > { %v3992_v15 = vpop.eup %3991  ;;  %4003 = vlog2.f32 %v3040_v56  ;;  %v3048_v20 = vmul.f32 0.6931472, %v3990_v31 }
 0x4bf   : > { %v3994_v34 = vpop.eup %3993  ;;  %v3044_v19 = vmul.f32 0.6931472, %v3992_v15 }
 0x4c0   : > { %v3996_v13 = vpop.eup %3995  ;;  %v3050_v10 = vmul.f32 0.6931472, %v3994_v34  ;;  %v3061_v41 = vsub.f32 %v2997_v28, %v3048_v20  ;;  %v5296_v28 = vld [vmem:[#allocation4_spill] sm:$0xff] }
 0x4c1   : > { %v3059_v39 = vsub.f32 %v2995_v17, %v3044_v19  ;;  %v3046_v53 = vmul.f32 0.6931472, %v3996_v13  ;;  %v5295_v17 = vld [vmem:[#allocation2_spill] sm:$0xff] }
 0x4c2   : > { %v3062_v51 = vsub.f32 %v2998_v24, %v3050_v10  ;;  %v3071_v12 = vmul.f32 1.442695, %v3061_v41 }
 0x4c3   : > { %3155 = vrot.lane.b32.xlu0 %v3059_v39, %s4031_s28  ;;  %v3060_v29 = vsub.f32 %v2996_v37, %v3046_v53  ;;  %v3067_v9 = vmul.f32 1.442695, %v3059_v39 }
 0x4c4   : > { %v3073_v25 = vmul.f32 1.442695, %v3062_v51 }
 0x4c5   : > { %v3998_v44 = vpop.eup %3997  ;;  %3157 = vrot.lane.b32.xlu1 %v3060_v29, %s4031_s28  ;;  %4005 = vpow2.f32 %v3067_v9 }
 0x4c6   : > { %v4000_v21 = vpop.eup %3999  ;;  %v3056_v49 = vmul.f32 0.6931472, %v3998_v44 }
 0x4c7   : > { %v4002_v35 = vpop.eup %4001  ;;  %3159 = vrot.lane.b32.xlu0 %v3061_v41, %s4031_s28  ;;  %v3052_v16 = vmul.f32 0.6931472, %v4000_v21 }
 0x4c8   : > { %v4004_v62 = vpop.eup %4003  ;;  %v3058_v4 = vmul.f32 0.6931472, %v4002_v35  ;;  %v5121_v26 = vsub.f32 %v3001_v1, %v3056_v49  ;;  %v5297_v35 = vld [vmem:[#allocation5_spill] sm:$0xff] }
 0x4c9   : > { %3161 = vrot.lane.b32.xlu1 %v3062_v51, %s4031_s28  ;;  %v3063_v6 = vsub.f32 %v2999_v46, %v3052_v16  ;;  %v3054_v7 = vmul.f32 0.6931472, %v4004_v62 }
 0x4ca   : > { %v5124_v3 = vsub.f32 %v3002_v57, %v3058_v4  ;;  %v3079_v24 = vmul.f32 1.442695, %v5121_v26 }
 0x4cb   : > { %3163 = vrot.lane.b32.xlu0 %v3063_v6, %s4031_s28  ;;  %v3064_v36 = vsub.f32 %v3000_v14, %v3054_v7  ;;  %v3075_v31 = vmul.f32 1.442695, %v3063_v6  ;;  %v5298_v7 = vld [vmem:[#allocation7_spill] sm:$0xff] }
 0x4cc   : > { %v3081_v62 = vmul.f32 1.442695, %v5124_v3 }
 0x4cd   : > { %3165 = vrot.lane.b32.xlu1 %v3064_v36, %s4031_s28  ;;  %v3077_v39 = vmul.f32 1.442695, %v3064_v36 }
 0x4cf   : > { %3167 = vrot.lane.b32.xlu0 %v5121_v26, %s4031_s28  ;;  %v4006_v40 = vpop.eup %4005  ;;  %v5299_v26 = vld [vmem:[#allocation6_spill] sm:$0xff] }
 0x4d1   : > { %3169 = vrot.lane.b32.xlu1 %v5124_v3, %s4031_s28 }
 0x4d5   : > { %3091 = vrot.lane.b32.xlu1 %v5067_v32, %s4032_s29 }
 0x4d9   : > { %3093 = vrot.lane.b32.xlu1 %v5077_v59, %s4032_s29 }
 0x4dd   : > { %3095 = vrot.lane.b32.xlu1 %v5065_v33, %s4032_s29 }
 0x4e1   : > { %3097 = vrot.lane.b32.xlu1 %v5072_v58, %s4032_s29 }
 0x4e5   : > { %3099 = vrot.lane.b32.xlu1 %v5091_v27, %s4032_s29 }
 0x4e9   : > { %3101 = vrot.lane.b32.xlu1 %v5101_v45, %s4032_s29 }
 0x4ed   : > { %3103 = vrot.lane.b32.xlu1 %v5089_v48, %s4032_s29 }
 0x4f1   : > { %3105 = vrot.lane.b32.xlu1 %v5096_v30, %s4032_s29  ;;  %v3069_v30 = vmul.f32 1.442695, %v3060_v29 }
 0x4f3   : > { %4007 = vpow2.f32 %v3069_v30 }
 0x4f4   : > { %4009 = vpow2.f32 %v3071_v12 }
 0x4f5   : > { %4011 = vpow2.f32 %v3073_v25 }
 0x4f6   : > { %4013 = vpow2.f32 %v3075_v31 }
 0x4f7   : > { %4015 = vpow2.f32 %v3077_v39 }
 0x4f8   : > { %4017 = vpow2.f32 %v3079_v24 }
 0x4f9   : > { %4019 = vpow2.f32 %v3081_v62 }
 0x4fd   : > { %v4008_v13 = vpop.eup %4007 }
 0x4fe   : > { %v4010_v10 = vpop.eup %4009 }
 0x4ff   : > { %v4012_v51 = vpop.eup %4011 }
 0x500   : > { %v4014_v1 = vpop.eup %4013 }
 0x501   : > { %v4016_v3 = vpop.eup %4015 }
 0x535   : > { %v3156_v8 = vpop.permute.xlu0 %3155 }
 0x536   : > { %v3179_v63 = vsel %vm684_vm4, %v3156_v8, 0.0 }
 0x537   : > { %v3158_v5 = vpop.permute.xlu1 %3157 }
 0x538   : > { %v3180_v32 = vsel %vm684_vm4, %v3158_v5, 0.0 }
 0x539   : > { %v3181_v55 = vadd.f32 %v3180_v32, %v3179_v63  ;;  %v3160_v59 = vpop.permute.xlu0 %3159 }
 0x53a   : > { %v3182_v33 = vsel %vm684_vm4, %v3160_v59, 0.0 }
 0x53b   : > { %v3183_v58 = vadd.f32 %v3182_v33, %v3181_v55  ;;  %v3162_v54 = vpop.permute.xlu1 %3161  ;;  %v5300_v55 = vld [vmem:[#allocation9_spill] sm:$0xff]  ;;  %v4018_v33 = vpop.eup %4017 }
 0x53c   : > { %v3184_v27 = vsel %vm684_vm4, %v3162_v54, 0.0 }
 0x53d   : > { %v3185_v45 = vadd.f32 %v3184_v27, %v3183_v58  ;;  %v3164_v52 = vpop.permute.xlu0 %3163  ;;  %v5301_v27 = vld [vmem:[#allocation8_spill] sm:$0xff] }
 0x53e   : > { %v3186_v48 = vsel %vm684_vm4, %v3164_v52, 0.0  ;;  %v4020_v52 = vpop.eup %4019 }
 0x53f   : > { %v3187_v23 = vadd.f32 %v3186_v48, %v3185_v45  ;;  %v3166_v42 = vpop.permute.xlu1 %3165 }
 0x540   : > { %v3188_v50 = vsel %vm684_vm4, %v3166_v42, 0.0 }
 0x541   : > { %v3189_v47 = vadd.f32 %v3188_v50, %v3187_v23  ;;  %v3168_v11 = vpop.permute.xlu0 %3167 }
 0x542   : > { %v3190_v43 = vsel %vm684_vm4, %v3168_v11, 0.0 }
 0x543   : > { %v3191_v38 = vadd.f32 %v3190_v43, %v3189_v47  ;;  %v3170_v60 = vpop.permute.xlu1 %3169 }
 0x544   : > { %v3192_v22 = vsel %vm684_vm4, %v3170_v60, 0.0 }
 0x545   : > { %v3193_v2 = vadd.f32 %v3192_v22, %v3191_v38 }
 0x547   : > { %3194 = vadd.xlane.f32.xlu0 %v3193_v2  ;;  %v3092_v61 = vpop.permute.xlu1 %3091 }
 0x548   : > { %v3115_v18 = vadd.f32 %v3092_v61, %v5294_v0 }
 0x54a   : > { %v3123_v56 = vmul.f32 %v4006_v40, %v3115_v18 }
 0x54b   : > { %v3094_v15 = vpop.permute.xlu1 %3093 }
 0x54c   : > { %v3131_v34 = vsel %vm684_vm4, %v5294_v0, %v3123_v56  ;;  %v3116_v19 = vadd.f32 %v3094_v15, %v5295_v17 }
 0x54d   : > { %3139 = vst.msk [vmem:[%s5149_s14] sm:$0xff] %vm414_vm0, %v3131_v34 }
 0x54e   : > { %v3124_v37 = vmul.f32 %v4008_v13, %v3116_v19 }
 0x54f   : > { %v3096_v53 = vpop.permute.xlu1 %3095 }
 0x550   : > { %v3132_v20 = vsel %vm684_vm4, %v5295_v17, %v3124_v37  ;;  %v3117_v29 = vadd.f32 %v3096_v53, %v5296_v28 }
 0x551   : > { %3140 = vst.msk [vmem:[%s5149_s14 + $0x8] sm:$0xff] %vm414_vm0, %v3132_v20 }
 0x552   : > { %v3125_v44 = vmul.f32 %v4010_v10, %v3117_v29 }
 0x553   : > { %v3098_v41 = vpop.permute.xlu1 %3097 }
 0x554   : > { %v3133_v21 = vsel %vm684_vm4, %v5296_v28, %v3125_v44  ;;  %v3118_v46 = vadd.f32 %v3098_v41, %v5297_v35 }
 0x555   : > { %3141 = vst.msk [vmem:[%s5149_s14 + $0x10] sm:$0xff] %vm414_vm0, %v3133_v21 }
 0x556   : > { %v3126_v16 = vmul.f32 %v4012_v51, %v3118_v46 }
 0x557   : > { %v3100_v14 = vpop.permute.xlu1 %3099 }
 0x558   : > { %v3134_v6 = vsel %vm684_vm4, %v5297_v35, %v3126_v16  ;;  %v3119_v49 = vadd.f32 %v3100_v14, %v5298_v7 }
 0x559   : > { %3142 = vst.msk [vmem:[%s5149_s14 + $0x18] sm:$0xff] %vm414_vm0, %v3134_v6 }
 0x55a   : > { %v3127_v36 = vmul.f32 %v4014_v1, %v3119_v49 }
 0x55b   : > { %v3102_v4 = vpop.permute.xlu1 %3101 }
 0x55c   : > { %v3135_v57 = vsel %vm684_vm4, %v5298_v7, %v3127_v36  ;;  %v3120_v8 = vadd.f32 %v3102_v4, %v5299_v26 }
 0x55d   : > { %3143 = vst.msk [vmem:[%s5149_s14 + $0x20] sm:$0xff] %vm414_vm0, %v3135_v57 }
 0x55e   : > { %v3128_v5 = vmul.f32 %v4016_v3, %v3120_v8 }
 0x55f   : > { %v3104_v63 = vpop.permute.xlu1 %3103 }
 0x560   : > { %v3136_v32 = vsel %vm684_vm4, %v5299_v26, %v3128_v5  ;;  %v3121_v59 = vadd.f32 %v3104_v63, %v5300_v55 }
 0x561   : > { %3144 = vst.msk [vmem:[%s5149_s14 + $0x28] sm:$0xff] %vm414_vm0, %v3136_v32 }
 0x562   : > { %v3129_v9 = vmul.f32 %v4018_v33, %v3121_v59 }
 0x563   : > { %v3106_v58 = vpop.permute.xlu1 %3105 }
 0x564   : > { %v3137_v54 = vsel %vm684_vm4, %v5300_v55, %v3129_v9  ;;  %v3122_v45 = vadd.f32 %v3106_v58, %v5301_v27 }
 0x565   : > { %3145 = vst.msk [vmem:[%s5149_s14 + $0x30] sm:$0xff] %vm414_vm0, %v3137_v54 }
 0x566   : > { %v3130_v48 = vmul.f32 %v4020_v52, %v3122_v45 }
 0x568   : > { %v3138_v30 = vsel %vm684_vm4, %v5301_v27, %v3130_v48 }
 0x569   : > { %3146 = vst.msk [vmem:[%s5149_s14 + $0x38] sm:$0xff] %vm414_vm0, %v3138_v30 }
 0x5d4   : > { %v3195_v23 = vpop.xlane.xlu0 %3194 }
 0x5d5   : > { %v3196_v42 = vrot.slane %v3195_v23, 4 }
 0x5d7   : > { %v3197_v50 = vadd.f32 %v3196_v42, %v3195_v23 }
 0x5d9   : > { %v3198_v47 = vrot.slane %v3197_v50, 2 }
 0x5db   : > { %v3199_v11 = vadd.f32 %v3198_v47, %v3197_v50 }
 0x5dd   : > { %v3200_v43 = vrot.slane %v3199_v11, 1 }
 0x5df   : > { %v3201_v12 = vadd.f32 %v3200_v43, %v3199_v11 }
 0x5e1   : > { %3937 = vpush %v3201_v12 }
 0x612   : > { %s3938_s15 = spop %3937 }
 0x613   : > { %v3203_v38 = vstv %s3938_s15 }
 0x614   : > { %3205 = vst.msk [vmem:[%s395_s19] sm:$0x1] %vm3204_vm8, %v3203_v38 }
 0x615 PF: > { %s22_s17 = sadd.s32 1, %s4027_s17  }
 0x616   : > { %p19_p4 = scmp.ge.s32.totalorder %s22_s17, 4  }
 0x618   :  { %21 = sbr.rel (!%p19_p4) target bundleno = 1 (0x1), region = 119 }

// kernel: normflownet_forward.11
= control target key start
LH: loop header
LB: loop body
LE: loop exit
PB: predicated region body
PF: predicated region fallthrough
CT: control target
= control target key end

     0   :  { %s222_s6 = smov 0   ;;  %s239_s0 = inlined_call_operand.vmem [shape: f32[2,16,32], index: 0, kind: input, shape index: {}]   ;;  %s240_s1 = inlined_call_operand.vmem [shape: f32[2,1,1], index: 1, kind: output, shape index: {}]  }
   0x1 LB: > { %s184_s7 = sadd.s32 4294967295, %s210_s6   ;;  %p188_p0 = scmp.ge.s32.totalorder %s210_s6, 1  ;;  %s210_s6 = sphi %s222_s6, %s11_s6  }
   0x2   : > { %p87_p1 = scmp.lt.s32.totalorder %s210_s6, 3 }
   0x4   : > { %p88_p2 = pnand %p188_p0, %p87_p1 }
   0x5   : > { %p105_p3 = scmp.lt.s32.totalorder (!%p88_p2), %s184_s7, 1  ;;  %vm121_vm0 = vcmask (!%p88_p2), 261120   ;;  %vm135_vm1 = vcmask (!%p88_p2), 0  }
   0x6   : > { %91 = sbr.rel (%p88_p2) target bundleno = 232 (0xe8), region = 24 }
   0xd   : > { %s242_s7 = smov (!%p105_p3, %s184_s7), 1 }
   0xe   : > { %s193_s8 = sshll.u32 %s242_s7, 4  ;;  %s112_s14 = scalar_lea.vmem %s240_s1, %s242_s7 }
   0xf   : > { %s109_s11 = scalar_lea.vmem %s239_s0, %s193_s8 }
  0x10   : > { %v113_v0 = vld [vmem:[%s109_s11] sm:$0xff]  ;;  %v114_v1 = vld [vmem:[%s109_s11 + $0x8] sm:$0xff] }
  0x11   : > { %v115_v2 = vmul.f32 %v113_v0, %v113_v0  ;;  %v116_v3 = vmul.f32 %v114_v1, %v114_v1 }
  0x13   : > { %v117_v4 = vadd.f32 1.837877, %v115_v2  ;;  %v118_v5 = vadd.f32 1.837877, %v116_v3 }
  0x15   : > { %v119_v6 = vmul.f32 -0.5, %v117_v4  ;;  %v120_v7 = vmul.f32 -0.5, %v118_v5 }
  0x17   : > { %v122_v8 = vsel %vm121_vm0, %v119_v6, 0.0  ;;  %v123_v9 = vsel %vm121_vm0, %v120_v7, 0.0 }
  0x18   : > { %v124_v10 = vadd.f32 %v123_v9, %v122_v8 }
  0x1a   : > { %125 = vadd.xlane.f32.xlu0 %v124_v10 }
  0xa7   : > { %v126_v11 = vpop.xlane.xlu0 %125 }
  0xa8   : > { %v127_v12 = vrot.slane %v126_v11, 4 }
  0xaa   : > { %v128_v13 = vadd.f32 %v127_v12, %v126_v11 }
  0xac   : > { %v129_v14 = vrot.slane %v128_v13, 2 }
  0xae   : > { %v130_v15 = vadd.f32 %v129_v14, %v128_v13 }
  0xb0   : > { %v131_v16 = vrot.slane %v130_v15, 1 }
  0xb2   : > { %v132_v17 = vadd.f32 %v131_v16, %v130_v15 }
  0xb4   : > { %194 = vpush %v132_v17 }
  0xe5   : > { %s195_s15 = spop %194 }
  0xe6   : > { %v134_v18 = vstv %s195_s15 }
  0xe7   : > { %136 = vst.msk [vmem:[%s112_s14] sm:$0x1] %vm135_vm1, %v134_v18 }
  0xe8 PF: > { %s11_s6 = sadd.s32 1, %s210_s6  }
  0xe9   : > { %p8_p4 = scmp.ge.s32.totalorder %s11_s6, 4  }
  0xeb   :  { %10 = sbr.rel (!%p8_p4) target bundleno = 1 (0x1), region = 54 }

// kernel: normflownet_forward.8
= control target key start
LH: loop header
LB: loop body
LE: loop exit
PB: predicated region body
PF: predicated region fallthrough
CT: control target
= control target key end

     0   :  { %s1936_s15 = smov 0   ;;  %s2421_s0 = inlined_call_operand.vmem [shape: f32[2,64,16], index: 0, kind: input, shape index: {}]   ;;  %s2422_s1 = inlined_call_operand.vmem [shape: f32[3,64,1], index: 1, kind: input, shape index: {}]   ;;  %s2423_s2 = inlined_call_operand.vmem [shape: bf16[9,8,16], index: 2, kind: input, shape index: {}]   ;;  %s2424_s3 = inlined_call_operand.vmem [shape: f32[1,16], index: 3, kind: input, shape index: {}]   ;;  %s2425_s4 = inlined_call_operand.vmem [shape: f32[2,1,1], index: 4, kind: output, shape index: {}]  }
   0x1 LB: > { %s1593_s16 = sadd.s32 4294967295, %s1905_s15   ;;  %p1597_p0 = scmp.ge.s32.totalorder %s1905_s15, 1  ;;  %s1905_s15 = sphi %s1936_s15, %s14_s15  }
   0x2   : > { %p162_p1 = scmp.lt.s32.totalorder %s1905_s15, 3 }
   0x4   : > { %p163_p2 = pnand %p1597_p0, %p162_p1 }
   0x5   : > { %v1611_v0 = vld [vmem:[%s2422_s1 + $0x90] sm:$0xff] (!%p163_p2)  ;;  %v1609_v1 = vld [vmem:[%s2422_s1 + $0x80] sm:$0xff] (!%p163_p2)  ;;  %p186_p3 = scmp.lt.s32.totalorder (!%p163_p2), %s1593_s16, 1  ;;  %v1907_v2 = vmov (!%p163_p2), 0   ;;  %v1612_v3 = vld [vmem:[%s2422_s1 + $0x98] sm:$0xff] (!%p163_p2)  ;;  %vm356_vm0 = vcmask (!%p163_p2), 1043456  }
   0x6   : > { %166 = sbr.rel (%p163_p2) target bundleno = 885 (0x375), region = 36  ;;  %1882 = vset.pattern.permute.xlu1 (!%p163_p2), %v1907_v2  ;;  %1881 = vset.pattern.permute.xlu0 (!%p163_p2), %v1907_v2  ;;  %v1610_v4 = vld [vmem:[%s2422_s1 + $0x88] sm:$0xff] (!%p163_p2)  ;;  %v1613_v6 = vld [vmem:[%s2422_s1 + $0xa0] sm:$0xff] (!%p163_p2)  ;;  %v1975_v7 = vld [vmem:[%s2423_s2 + $0x10] sm:$0xf] (!%p163_p2)  ;;  %vm211_vm1 = vcmask (!%p163_p2), 1040384  }
   0x7   : > { %524 = vperm.xlu1 (!%p163_p2), %1882, %v1611_v0   ;;  %516 = vperm.xlu0 (!%p163_p2), %1881, %v1609_v1   ;;  %v1614_v5 = vld [vmem:[%s2422_s1 + $0xa8] sm:$0xff] (!%p163_p2)  ;;  %v1600_v8 = vld [vmem:[%s2423_s2 + $0x4] sm:$0xf] (!%p163_p2)  ;;  %v1988_v11 = vsel (!%p163_p2), %vm356_vm0, %v1975_v7, 0  ;;  %vm306_vm2 = vsmask.f32 (!%p163_p2), 7424 }
   0x8   : > { %1861 = vmatprep.subr.msk.bf16.mxu0 (!%p163_p2), %vm356_vm0, %v1975_v7  ;;  %1857 = vmatprep.subr.msk.bf16.mxu1 (!%p163_p2), %vm356_vm0, %v1600_v8  ;;  %v358_v21 = vsel (!%p163_p2), %vm356_vm0, %v1600_v8, 0  ;;  %v1616_v25 = vld [vmem:[%s2422_s1 + $0xb8] sm:$0xff] (!%p163_p2)  ;;  %v1615_v31 = vld [vmem:[%s2422_s1 + $0xb0] sm:$0xff] (!%p163_p2)  ;;  %vm343_vm3 = vcmask (!%p163_p2), 64512   ;;  %v298_v33 = vld [vmem:[%s2423_s2] sm:$0xf] (!%p163_p2) }
   0x9   : > { %1742 = vmatpush3.bf16.msra.mxu0 (!%p163_p2), %v1988_v11  ;;  %1702 = vmatpush3.bf16.msra.mxu1 (!%p163_p2), %v358_v21  ;;  %v1632_v34 = vld [vmem:[%s2423_s2 + $0x14] sm:$0xf] (!%p163_p2)  ;;  %v1908_v35 = vmov (!%p163_p2), 0.0   ;;  %v239_v51 = vld [vmem:[%s2422_s1 + $0x8] sm:$0xff] (!%p163_p2)  ;;  %v238_v52 = vld [vmem:[%s2422_s1] sm:$0xff] (!%p163_p2)  ;;  %vm546_vm4 = vcmask (!%p163_p2), 1041408  }
   0xa   : > { %1858 = vmatprep.subr.msk.bf16.mxu1 (!%p163_p2), %vm356_vm0, %v298_v33  ;;  %1863 = vmatprep.subr.msk.bf16.mxu0 (!%p163_p2), %vm356_vm0, %v1632_v34  ;;  %v240_v8 = vld [vmem:[%s2422_s1 + $0x10] sm:$0xff] (!%p163_p2)  ;;  %vm592_vm5 = vcmask (!%p163_p2), 1046528   ;;  %s1910_s26 = smov (!%p163_p2), 120   ;;  %vm1544_vm6 = vcmask (!%p163_p2), 0  }
   0xb   : > { %528 = vperm.xlu1 (!%p163_p2), %1882, %v1612_v3   ;;  %520 = vperm.xlu0 (!%p163_p2), %1881, %v1610_v4  }
   0xd   : > { %s2427_s16 = smov (!%p186_p3, %s1593_s16), 1 }
   0xe   : > { %s1655_s25 = sshll.u32 %s2427_s16, 6  ;;  %s193_s29 = scalar_lea.vmem %s2425_s4, %s2427_s16 }
   0xf   : > { %s1970_s6 = scalar_lea.vmem %s2421_s0, %s1655_s25  ;;  %536 = vperm.xlu1 %1882, %v1614_v5   ;;  %532 = vperm.xlu0 %1881, %v1613_v6   ;;  %v966_v5 = vsel %vm356_vm0, %v1632_v34, 0  ;;  %v241_v6 = vld [vmem:[%s2422_s1 + $0x18] sm:$0xff]  ;;  %s1909_s25 = smov 8  }
  0x10   : > { %v1981_v9 = vld [vmem:[%s1970_s6] sm:$0xff]  ;;  %v1984_v10 = vld [vmem:[%s1970_s6 + $0x8] sm:$0xff]  ;;  %v1991_v12 = vld [vmem:[%s1970_s6 + $0x10] sm:$0xff] }
  0x11   : > { %v212_v13 = vrot.slane %v1981_v9, 7  ;;  %v213_v14 = vrot.slane %v1984_v10, 7  ;;  %v1999_v15 = vld [vmem:[%s1970_s6 + $0x18] sm:$0xff]  ;;  %v2002_v16 = vld [vmem:[%s1970_s6 + $0x20] sm:$0xff]  ;;  %v215_v17 = vrot.slane %v1991_v12, 7  ;;  %v2006_v18 = vld [vmem:[%s1970_s6 + $0x28] sm:$0xff] }
  0x12   : > { %v217_v19 = vrot.slane %v1999_v15, 7  ;;  %v219_v20 = vrot.slane %v2002_v16, 7  ;;  %v221_v29 = vrot.slane %v2006_v18, 7  ;;  %v2034_v30 = vld [vmem:[%s1970_s6 + $0x30] sm:$0xff]  ;;  %v2063_v46 = vld [vmem:[%s1970_s6 + $0x38] sm:$0xff] }
  0x13   : > { %v2013_v22 = vsel %vm211_vm1, %v212_v13, %v213_v14  ;;  %v2016_v23 = vsel %vm211_vm1, 0.0, %v212_v13  ;;  %v2019_v24 = vsel %vm211_vm1, %v213_v14, %v215_v17  ;;  %v223_v45 = vrot.slane %v2034_v30, 7  ;;  %544 = vperm.xlu1 %1882, %v1616_v25   ;;  %540 = vperm.xlu0 %1881, %v1615_v31  }
  0x14   : > { %v2025_v26 = vsel %vm211_vm1, %v215_v17, %v217_v19  ;;  %v2028_v27 = vsel %vm211_vm1, %v217_v19, %v219_v20  ;;  %v792_v28 = vpack.c.bf16 %v2013_v22, %v2016_v23  ;;  %v299_v36 = vpack.c.bf16 %v2016_v23, %v1908_v35  ;;  %v243_v35 = vld [vmem:[%s2422_s1 + $0x28] sm:$0xff] }
  0x15   : > { %v793_v32 = vpack.c.bf16 %v2025_v26, %v2019_v24  ;;  %v300_v37 = vpack.c.bf16 %v2019_v24, %v2013_v22  ;;  %v2051_v40 = vsel %vm211_vm1, %v219_v20, %v221_v29  ;;  %v301_v41 = vpack.c.bf16 %v2028_v27, %v2025_v26 }
  0x16   : > { %v800_v38 = vshrl.u32 %v792_v28, 16  ;;  %v802_v39 = vshll.u32 %v792_v28, 16  ;;  %v2059_v44 = vpack.c.bf16 %v2051_v40, %v2028_v27  ;;  %v308_v48 = vshrl.u32 %v299_v36, 16 }
  0x17   : > { %v807_v42 = vshll.u32 %v793_v32, 16  ;;  %v811_v43 = vshrl.u32 %v793_v32, 16  ;;  %v310_v49 = vshll.u32 %v299_v36, 16  ;;  %v315_v50 = vshll.u32 %v300_v37, 16  ;;  %253 = vperm.xlu1 %1882, %v239_v51   ;;  %248 = vperm.xlu0 %1881, %v238_v52   ;;  %v242_v36 = vld [vmem:[%s2422_s1 + $0x20] sm:$0xff] }
  0x18   : > { %v804_v47 = vrot.slane %v802_v39, 1  ;;  %v815_v54 = vshll.u32 %v2059_v44, 16  ;;  %v319_v55 = vshrl.u32 %v300_v37, 16  ;;  %v323_v56 = vshll.u32 %v301_v41, 16 }
  0x19   : > { %v809_v53 = vrot.slane %v807_v42, 1  ;;  %v312_v58 = vrot.slane %v310_v49, 1  ;;  %v317_v59 = vrot.slane %v315_v50, 1  ;;  %v225_v60 = vrot.slane %v2063_v46, 7  ;;  %v2117_v42 = vld [vmem:[%s2423_s2 + $0x18] sm:$0xf] }
  0x1a   : > { %v805_v57 = vor.u32 %v804_v47, %v800_v38  ;;  %v817_v62 = vrot.slane %v815_v54, 1  ;;  %v2074_v63 = vsel %vm211_vm1, %v221_v29, %v223_v45  ;;  %v325_v0 = vrot.slane %v323_v56, 1 }
  0x1b   : > { %v813_v61 = vor.u32 %v811_v43, %v809_v53  ;;  %v313_v3 = vor.u32 %v312_v58, %v308_v48  ;;  %v321_v4 = vor.u32 %v319_v55, %v317_v59  ;;  %v2087_v14 = vsel %vm211_vm1, %v223_v45, %v225_v60  ;;  %263 = vperm.xlu1 %1882, %v241_v6   ;;  %v245_v43 = vld [vmem:[%s2422_s1 + $0x38] sm:$0xff]  ;;  %v244_v45 = vld [vmem:[%s2422_s1 + $0x30] sm:$0xff]  ;;  %v2133_v48 = vld [vmem:[%s2423_s2 + $0x8] sm:$0xf] }
  0x1c   : > { %v810_v1 = vsel %vm306_vm2, %v805_v57, %v809_v53  ;;  %v2090_v17 = vsel %vm211_vm1, %v225_v60, 0.0  ;;  %v302_v21 = vpack.c.bf16 %v2074_v63, %v2051_v40  ;;  %v327_v25 = vshrl.u32 %v301_v41, 16  ;;  %258 = vperm.xlu0 %1881, %v240_v8  }
  0x1d   : > { %1743 = vmatprep.mubr.msk.bf16.mxu0 %vm343_vm3, %v810_v1  ;;  %v818_v13 = vsel %vm306_vm2, %v813_v61, %v817_v62  ;;  %v318_v19 = vsel %vm306_vm2, %v313_v3, %v317_v59  ;;  %v2095_v20 = vsel %vm306_vm2, %v321_v4, %v325_v0  ;;  %v438_v28 = vsel %vm356_vm0, %v298_v33, 0 }
  0x1e   : > { %1744 = vmatmul.mubr.msk.bf16.vlgmr.msra.gmra.mrb[0].mxu0 %vm343_vm3, %v818_v13  ;;  %1703 = vmatprep.mubr.msk.bf16.mxu1 %vm343_vm3, %v318_v19  ;;  %v303_v29 = vpack.c.bf16 %v2087_v14, %v2087_v14  ;;  %v329_v31 = vor.u32 %v327_v25, %v325_v0  ;;  %v331_v32 = vshll.u32 %v302_v21, 16  ;;  %v335_v34 = vshrl.u32 %v302_v21, 16 }
  0x1f   : > { %1752 = vmatpush3.bf16.msra.mxu0 %v966_v5  ;;  %1704 = vmatmul.mubr.msk.bf16.vlgmr.msra.gmra.mrb[0].mxu1 %vm343_vm3, %v2095_v20  ;;  %v1143_v49 = vpack.c.bf16 %v2090_v17, %v2087_v14  ;;  %v1158_v52 = vrot.slane %v1907_v2, 1  ;;  %v819_v57 = vshrl.u32 %v2059_v44, 16 }
  0x20   : > { %v339_v33 = vshll.u32 %v303_v29, 16  ;;  %1712 = vmatpush3.bf16.msra.mxu1 %v438_v28  ;;  %v333_v37 = vrot.slane %v331_v32, 1  ;;  %273 = vperm.xlu1 %1882, %v243_v35  }
  0x21   : > { %268 = vperm.xlu0 %1881, %v242_v36   ;;  %1864 = vmatprep.subr.msk.bf16.mxu0 %vm356_vm0, %v2117_v42  ;;  %v1148_v50 = vshll.u32 %v1143_v49, 16  ;;  %v1152_v51 = vshrl.u32 %v1143_v49, 16  ;;  %v2148_v58 = vor.u32 %v819_v57, %v817_v62 }
  0x22   : > { %v341_v38 = vrot.slane %v339_v33, 1  ;;  %v2112_v39 = vsel %vm306_vm2, %v329_v31, %v333_v37  ;;  %v337_v41 = vor.u32 %v335_v34, %v333_v37  ;;  %1859 = vmatprep.subr.msk.bf16.mxu1 %vm356_vm0, %v2133_v48 }
  0x23   : > { %1707 = vmatprep.mubr.msk.bf16.mxu1 %vm343_vm3, %v2112_v39  ;;  %v1150_v53 = vrot.slane %v1148_v50, 1 }
  0x24   : > { %v342_v47 = vsel %vm306_vm2, %v337_v41, %v341_v38  ;;  %283 = vperm.xlu1 %1882, %v245_v43  }
  0x25   : > { %278 = vperm.xlu0 %1881, %v244_v45   ;;  %v2142_v54 = vsel %vm306_vm2, %v337_v41, %v1150_v53  ;;  %v1154_v55 = vor.u32 %v1152_v51, %v1150_v53 }
  0x27   : > { %1708 = vmatmul.mubr.msk.bf16.gmra.mrb[4].mxu1 %vm343_vm3, %v342_v47  ;;  %v2145_v56 = vsel %vm306_vm2, %v1154_v55, %v1158_v52 }
  0x86   : > { %v525_v59 = vpop.permute.xlu1 %524  ;;  %v517_v60 = vpop.permute.xlu0 %516 }
  0x87   : > { %v550_v1 = vrot.slane %v525_v59, 6  ;;  %v2150_v3 = vrot.slane %v517_v60, 6 }
  0x89   : > { %v923_v19 = vmul.f32 %v2150_v3, %v2016_v23 }
  0x8a   : > { %v529_v61 = vpop.permute.xlu1 %528  ;;  %v521_v0 = vpop.permute.xlu0 %520 }
  0x8b   : > { %v552_v2 = vrot.slane %v529_v61, 6  ;;  %v548_v4 = vrot.slane %v521_v0, 6  ;;  %v1068_v61 = vsel %vm356_vm0, %v2117_v42, 0 }
  0x8d   : > { %v2153_v5 = vsel %vm546_vm4, %v550_v1, %v552_v2  ;;  %v2157_v6 = vsel %vm546_vm4, %v2150_v3, %v548_v4  ;;  %v2160_v44 = vsel %vm546_vm4, %v548_v4, %v550_v1 }
  0x8e   : > { %v926_v62 = vmul.f32 %v2153_v5, %v2025_v26  ;;  %v537_v8 = vpop.permute.xlu1 %536  ;;  %v533_v13 = vpop.permute.xlu0 %532  ;;  %v924_v21 = vmul.f32 %v2157_v6, %v2013_v22  ;;  %v925_v25 = vmul.f32 %v2160_v44, %v2019_v24  ;;  %v572_v57 = vmul.f32 %v2157_v6, %v2016_v23 }
  0x8f   : > { %v556_v28 = vrot.slane %v537_v8, 6  ;;  %v554_v29 = vrot.slane %v533_v13, 6  ;;  %v571_v13 = vmul.f32 0.0, %v2150_v3 }
  0x90   : > { %v932_v31 = vpack.c.bf16 %v924_v21, %v923_v19  ;;  %v933_v32 = vpack.c.bf16 %v926_v62, %v925_v25  ;;  %v1642_v21 = vld [vmem:[%s2423_s2 + $0x1c] sm:$0xf]  ;;  %v574_v25 = vmul.f32 %v2153_v5, %v2019_v24 }
  0x91   : > { %v2171_v34 = vsel %vm546_vm4, %v552_v2, %v554_v29  ;;  %v2174_v35 = vsel %vm546_vm4, %v554_v29, %v556_v28 }
  0x92   : > { %v545_v36 = vpop.permute.xlu1 %544  ;;  %v541_v33 = vpop.permute.xlu0 %540  ;;  %v927_v37 = vmul.f32 %v2171_v34, %v2028_v27  ;;  %v928_v38 = vmul.f32 %v2174_v35, %v2051_v40  ;;  %v944_v47 = vrot.slane %v932_v31, 1  ;;  %v945_v49 = vrot.slane %v933_v32, 1 }
  0x93   : > { %v2180_v41 = vrot.slane %v545_v36, 6  ;;  %v558_v43 = vrot.slane %v541_v33, 6  ;;  %v580_v32 = vpack.c.bf16 %v572_v57, %v571_v13 }
  0x94   : > { %v934_v45 = vpack.c.bf16 %v928_v38, %v927_v37  ;;  %v946_v60 = vsel %vm592_vm5, %v944_v47, %v945_v49 }
  0x95   : > { %v2187_v53 = vsel %vm546_vm4, %v556_v28, %v558_v43  ;;  %v2191_v55 = vsel %vm546_vm4, %v558_v43, %v2180_v41  ;;  %v931_v59 = vmul.f32 %v2180_v41, %v2090_v17  ;;  %1753 = vmatprep.mubr.msk.bf16.mxu0 %vm343_vm3, %v946_v60  ;;  %v573_v28 = vmul.f32 %v2160_v44, %v2013_v22  ;;  %v1622_v60 = vld [vmem:[%s2423_s2 + $0xc] sm:$0xf] }
  0x96   : > { %v2182_v50 = vpop.permute.xlu1 %253  ;;  %v2184_v51 = vpop.permute.xlu0 %248  ;;  %v947_v52 = vrot.slane %v934_v45, 1  ;;  %v929_v0 = vmul.f32 %v2187_v53, %v2074_v63  ;;  %v930_v1 = vmul.f32 %v2191_v55, %v2087_v14  ;;  %v615_v43 = vsel %vm356_vm0, %v2133_v48, 0 }
  0x97   : > { %v287_v2 = vmul.f32 %v2182_v50, %v2016_v23  ;;  %v286_v4 = vmul.f32 0.0, %v2184_v51  ;;  %v936_v45 = vpack.c.bf16 %v931_v59, %v931_v59  ;;  %v1042_v47 = vmul.f32 %v2182_v50, %v2019_v24 }
  0x98   : > { %v948_v42 = vsel %vm592_vm5, %v945_v49, %v947_v52  ;;  %v935_v33 = vpack.c.bf16 %v930_v1, %v929_v0  ;;  %v1041_v49 = vmul.f32 %v2184_v51, %v2013_v22  ;;  %v581_v59 = vpack.c.bf16 %v574_v25, %v573_v28 }
  0x99   : > { %v294_v29 = vpack.c.bf16 %v287_v2, %v286_v4  ;;  %1754 = vmatmul.mubr.msk.bf16.vlgmr.msra.gmra.mrb[0].mxu0 %vm343_vm3, %v948_v42  ;;  %v951_v0 = vrot.slane %v936_v45, 1  ;;  %v575_v1 = vmul.f32 %v2171_v34, %v2025_v26 }
  0x9a   : > { %v2208_v62 = vpop.permute.xlu1 %263  ;;  %1762 = vmatpush3.bf16.msra.mxu0 %v1068_v61  ;;  %v949_v61 = vrot.slane %v935_v33, 1  ;;  %v594_v33 = vrot.slane %v581_v59, 1 }
  0x9b   : > { %v2210_v8 = vpop.permute.xlu0 %258  ;;  %v289_v19 = vmul.f32 %v2208_v62, %v2019_v24  ;;  %1713 = vmatprep.mubr.msk.bf16.mxu1 %vm343_vm3, %v294_v29  ;;  %1865 = vmatprep.subr.msk.bf16.mxu0 %vm356_vm0, %v1642_v21  ;;  %v576_v29 = vmul.f32 %v2174_v35, %v2028_v27 }
  0x9c   : > { %v288_v31 = vmul.f32 %v2210_v8, %v2013_v22  ;;  %v950_v2 = vsel %vm592_vm5, %v947_v52, %v949_v61  ;;  %v952_v25 = vsel %vm592_vm5, %v949_v61, %v951_v0  ;;  %v577_v52 = vmul.f32 %v2187_v53, %v2051_v40 }
  0x9d   : > { %1757 = vmatprep.mubr.msk.bf16.mxu0 %vm343_vm3, %v950_v2  ;;  %v1043_v45 = vmul.f32 %v2210_v8, %v2025_v26  ;;  %v1167_v2 = vsel %vm356_vm0, %v1642_v21, 0 }
  0x9e   : > { %v295_v36 = vpack.c.bf16 %v289_v19, %v288_v31  ;;  %v593_v19 = vrot.slane %v580_v32, 1  ;;  %v1049_v31 = vpack.c.bf16 %v1042_v47, %v1041_v49  ;;  %v582_v49 = vpack.c.bf16 %v576_v29, %v575_v1 }
  0x9f   : > { %v2227_v37 = vpop.permute.xlu1 %273  ;;  %v579_v1 = vmul.f32 %v2180_v41, %v2087_v14 }
  0xa0   : > { %v2229_v38 = vpop.permute.xlu0 %268  ;;  %v291_v57 = vmul.f32 %v2227_v37, %v2028_v27  ;;  %1714 = vmatmul.mubr.msk.bf16.vlgmr.msra.gmra.mrb[0].mxu1 %vm343_vm3, %v295_v36  ;;  %v578_v36 = vmul.f32 %v2191_v55, %v2074_v63 }
  0xa1   : > { %v290_v48 = vmul.f32 %v2229_v38, %v2025_v26  ;;  %1722 = vmatpush3.bf16.msra.mxu1 %v615_v43  ;;  %1758 = vmatmul.mubr.msk.bf16.gmra.mrb[4].mxu0 %vm343_vm3, %v952_v25  ;;  %v1044_v43 = vmul.f32 %v2208_v62, %v2028_v27  ;;  %v1045_v61 = vmul.f32 %v2229_v38, %v2051_v40 }
  0xa2   : > { %1860 = vmatprep.subr.msk.bf16.mxu1 %vm356_vm0, %v1622_v60  ;;  %1763 = vmatprep.mubr.msk.bf16.mxu0 %vm343_vm3, %v1049_v31  ;;  %v583_v59 = vpack.c.bf16 %v578_v36, %v577_v52  ;;  %v1647_v31 = vld [vmem:[%s2423_s2 + $0x20] sm:$0xf]  ;;  %v584_v36 = vpack.c.bf16 %v579_v1, %v579_v1 }
  0xa3   : > { %v296_v4 = vpack.c.bf16 %v291_v57, %v290_v48  ;;  %v2249_v13 = vpop.permute.xlu1 %283  ;;  %v1046_v57 = vmul.f32 %v2227_v37, %v2074_v63  ;;  %v595_v48 = vsel %vm592_vm5, %v593_v19, %v594_v33  ;;  %v1050_v0 = vpack.c.bf16 %v1044_v43, %v1043_v45 }
  0xa4   : > { %v2251_v42 = vpop.permute.xlu0 %278  ;;  %v293_v28 = vmul.f32 %v2249_v13, %v2074_v63  ;;  %v598_v25 = vrot.slane %v583_v59, 1  ;;  %v1048_v19 = vmul.f32 %v2249_v13, %v2090_v17  ;;  %v691_v45 = vmul.f32 %v2182_v50, %v2013_v22 }
  0xa5   : > { %v292_v32 = vmul.f32 %v2251_v42, %v2051_v40  ;;  %1717 = vmatprep.mubr.msk.bf16.mxu1 %vm343_vm3, %v296_v4  ;;  %v596_v4 = vrot.slane %v582_v49, 1  ;;  %v1051_v29 = vpack.c.bf16 %v1046_v57, %v1045_v61  ;;  %v1047_v21 = vmul.f32 %v2251_v42, %v2087_v14 }
  0xa6   : > { %v1245_v57 = vmul.f32 %v2153_v5, %v2028_v27  ;;  %v1244_v50 = vmul.f32 %v2160_v44, %v2025_v26  ;;  %v692_v5 = vmul.f32 %v2210_v8, %v2019_v24  ;;  %v695_v44 = vmul.f32 %v2227_v37, %v2051_v40 }
  0xa7   : > { %v297_v47 = vpack.c.bf16 %v293_v28, %v292_v32  ;;  %v717_v28 = vsel %vm356_vm0, %v1622_v60, 0  ;;  %v597_v52 = vsel %vm592_vm5, %v594_v33, %v596_v4  ;;  %v599_v32 = vsel %vm592_vm5, %v596_v4, %v598_v25 }
  0xa8   : > { %v1052_v43 = vpack.c.bf16 %v1048_v19, %v1047_v21  ;;  %v690_v60 = vmul.f32 %v2184_v51, %v2016_v23  ;;  %v1285_v23 = vsel %vm356_vm0, %v1647_v31, 0  ;;  %v693_v51 = vmul.f32 %v2208_v62, %v2025_v26 }
  0xa9   : > { %1718 = vmatmul.mubr.msk.bf16.gmra.mrb[4].mxu1 %vm343_vm3, %v297_v47  ;;  %1764 = vmatmul.mubr.msk.bf16.vlgmr.msra.gmra.mrb[0].mxu0 %vm343_vm3, %v1050_v0  ;;  %v600_v47 = vrot.slane %v584_v36, 1  ;;  %v694_v61 = vmul.f32 %v2229_v38, %v2028_v27  ;;  %v1247_v62 = vmul.f32 %v2174_v35, %v2074_v63  ;;  %v1248_v27 = vmul.f32 %v2187_v53, %v2087_v14 }
  0xaa   : > { %1723 = vmatprep.mubr.msk.bf16.mxu1 %vm343_vm3, %v595_v48  ;;  %1767 = vmatprep.mubr.msk.bf16.mxu0 %vm343_vm3, %v1051_v29  ;;  %v698_v33 = vpack.c.bf16 %v691_v45, %v690_v60  ;;  %v699_v26 = vpack.c.bf16 %v693_v51, %v692_v5 }
  0xab   : > { %1772 = vmatpush3.bf16.msra.mxu0 %v1167_v2  ;;  %v601_v49 = vsel %vm592_vm5, %v598_v25, %v600_v47  ;;  %v700_v8 = vpack.c.bf16 %v695_v44, %v694_v61 }
  0xac   : > { %1866 = vmatprep.subr.msk.bf16.mxu0 %vm356_vm0, %v1647_v31 }
  0xb1   : > { %1724 = vmatmul.mubr.msk.bf16.vlgmr.msra.gmra.mrb[0].mxu1 %vm343_vm3, %v597_v52  ;;  %1768 = vmatmul.mubr.msk.bf16.gmra.mrb[4].mxu0 %vm343_vm3, %v1052_v43 }
  0xb2   : > { %1732 = vmatpush3.bf16.msra.mxu1 %v717_v28  ;;  %1727 = vmatprep.mubr.msk.bf16.mxu1 %vm343_vm3, %v599_v32  ;;  %v1652_v32 = vld [vmem:[%s2424_s3] ss:$0 sm:$0xff] }
  0xb3   : > { %1862 = vmatprep.subr.msk.bf16.mxu1 %vm356_vm0, %v1975_v7  ;;  %1773 = vmatprep.mubr.msk.bf16.mxu0 %vm343_vm3, %v2095_v20  ;;  %v1243_v7 = vmul.f32 %v2157_v6, %v2019_v24  ;;  %v1242_v20 = vmul.f32 %v2150_v3, %v2013_v22  ;;  %v795_v6 = vpack.c.bf16 %v2087_v14, %v2074_v63 }
  0xb4   : > { %v1252_v22 = vpack.c.bf16 %v1245_v57, %v1244_v50  ;;  %v1246_v3 = vmul.f32 %v2171_v34, %v2051_v40  ;;  %v697_v40 = vmul.f32 %v2249_v13, %v2087_v14 }
  0xb5   : > { %v1251_v48 = vpack.c.bf16 %v1243_v7, %v1242_v20  ;;  %v823_v24 = vshll.u32 %v795_v6, 16  ;;  %v827_v0 = vshrl.u32 %v795_v6, 16 }
  0xb6   : > { %v1264_v38 = vrot.slane %v1252_v22, 1  ;;  %v1253_v35 = vpack.c.bf16 %v1247_v62, %v1246_v3 }
  0xb7   : > { %v1263_v37 = vrot.slane %v1251_v48, 1  ;;  %v825_v34 = vrot.slane %v823_v24, 1 }
  0xb8   : > { %v1266_v13 = vrot.slane %v1253_v35, 1 }
  0xb9   : > { %1728 = vmatmul.mubr.msk.bf16.gmra.mrb[4].mxu1 %vm343_vm3, %v601_v49  ;;  %1774 = vmatmul.mubr.msk.bf16.vlgmr.msra.gmra.mrb[0].mxu0 %vm343_vm3, %v2112_v39  ;;  %v1249_v39 = vmul.f32 %v2191_v55, %v2090_v17  ;;  %v1265_v53 = vsel %vm592_vm5, %v1263_v37, %v1264_v38  ;;  %v826_v14 = vsel %vm306_vm2, %v2148_v58, %v825_v34 }
  0xba   : > { %1733 = vmatprep.mubr.msk.bf16.mxu1 %vm343_vm3, %v698_v33  ;;  %1782 = vmatpush3.bf16.msra.mxu0 %v1285_v23  ;;  %v1267_v2 = vsel %vm592_vm5, %v1264_v38, %v1266_v13  ;;  %v829_v58 = vor.u32 %v827_v0, %v825_v34 }
  0xbb   : > { %1777 = vmatprep.mubr.msk.bf16.mxu0 %vm343_vm3, %v2142_v54  ;;  %v696_v54 = vmul.f32 %v2251_v42, %v2074_v63  ;;  %v1254_v55 = vpack.c.bf16 %v1249_v39, %v1248_v27  ;;  %v1250_v63 = vmul.f32 0.0, %v2180_v41 }
  0xbd   : > { %v701_v59 = vpack.c.bf16 %v697_v40, %v696_v54  ;;  %v1268_v42 = vrot.slane %v1254_v55, 1  ;;  %v1255_v4 = vpack.c.bf16 %v1250_v63, %v1250_v63 }
  0xbf   : > { %v1270_v29 = vrot.slane %v1255_v4, 1 }
  0xc1   : > { %1734 = vmatmul.mubr.msk.bf16.vlgmr.msra.gmra.mrb[0].mxu1 %vm343_vm3, %v699_v26  ;;  %1778 = vmatmul.mubr.msk.bf16.gmra.mrb[4].mxu0 %vm343_vm3, %v2145_v56  ;;  %v1271_v31 = vsel %vm592_vm5, %v1268_v42, %v1270_v29 }
  0xc2   : > { %1792 = vmatpush3.bf16.msra.mxu1 %v1988_v11  ;;  %1737 = vmatprep.mubr.msk.bf16.mxu1 %vm343_vm3, %v700_v8  ;;  %v796_v11 = vpack.c.bf16 %v2090_v17, %v2090_v17  ;;  %v1269_v17 = vsel %vm592_vm5, %v1266_v13, %v1268_v42 }
  0xc3   : > { %1783 = vmatprep.mubr.msk.bf16.mxu0 %vm343_vm3, %v1265_v53 }
  0xc4   : > { %v831_v56 = vshll.u32 %v796_v11, 16 }
  0xc6   : > { %v833_v1 = vrot.slane %v831_v56, 1 }
  0xc8   : > { %v834_v41 = vsel %vm306_vm2, %v829_v58, %v833_v1 }
  0xc9   : > { %1738 = vmatmul.mubr.msk.bf16.gmra.mrb[4].mxu1 %vm343_vm3, %v701_v59  ;;  %1784 = vmatmul.mubr.msk.bf16.vlgmr.msra.gmra.mrb[0].mxu0 %vm343_vm3, %v1267_v2 }
  0xca   : > { %1747 = vmatprep.mubr.msk.bf16.mxu1 %vm343_vm3, %v826_v14  ;;  %1787 = vmatprep.mubr.msk.bf16.mxu0 %vm343_vm3, %v1269_v17 }
  0xd1   : > { %1788 = vmatmul.mubr.msk.bf16.gmra.mrb[4].mxu0 %vm343_vm3, %v1271_v31 }
  0xd5   : > { %1748 = vmatmul.mubr.msk.bf16.vlgmr.msra.gmra.mrb[4].mxu1 %vm343_vm3, %v834_v41 }
 0x194   : > { %v1735_v25 = vpop.f32.mrb[0].mxu1 }
 0x195   : > { %v753_v19 = vpop.f32.mrb[1].mxu1 }
 0x196   : > { %v1736_v21 = vpop.f32.mrb[2].mxu1 }
 0x197   : > { %v756_v28 = vpop.f32.mrb[3].mxu1 }
 0x19c   : > { %v1785_v52 = vpop.f32.mrb[0].mxu0 }
 0x19d   : > { %v1793_v36 = vadd.f32 %v1785_v52, %v1735_v25  ;;  %v1321_v43 = vpop.f32.mrb[1].mxu0 }
 0x19e   : > { %v1794_v45 = vadd.f32 %v1321_v43, %v753_v19  ;;  %v1786_v60 = vpop.f32.mrb[2].mxu0 }
 0x19f   : > { %v1795_v47 = vadd.f32 %v1786_v60, %v1736_v21  ;;  %v1324_v33 = vpop.f32.mrb[3].mxu0  ;;  %v1369_v50 = vadd.f32 %v1793_v36, %v1652_v32 }
 0x1a0   : > { %v1367_v49 = vadd.f32 %v1794_v45, %v1652_v32  ;;  %v1796_v57 = vadd.f32 %v1324_v33, %v756_v28 }
 0x1a1   : > { %v2370_v44 = vadd.f32 %v1795_v47, %v1652_v32  ;;  %v1441_v54 = vmul.f32 -2.0, %v1369_v50  ;;  %v1417_v1 = vmul.f32 2.0, %v1369_v50 }
 0x1a2   : > { %v1368_v7 = vadd.f32 %v1796_v57, %v1652_v32  ;;  %1383 = vrot.lane.b32.xlu0 %v1367_v49, %s1909_s25  ;;  %v1439_v38 = vmul.f32 -2.0, %v1367_v49  ;;  %v1415_v4 = vmul.f32 2.0, %v1367_v49 }
 0x1a3   : > { %v1442_v35 = vmul.f32 -2.0, %v2370_v44  ;;  %v1451_v55 = vmul.f32 1.442695, %v1441_v54  ;;  %v1425_v45 = vadd.f32 1.837877, %v1417_v1 }
 0x1a4   : > { %v1789_v23 = vpop.f32.mrb[4].mxu0  ;;  %1385 = vrot.lane.b32.xlu1 %v1368_v7, %s1909_s25  ;;  %v1440_v40 = vmul.f32 -2.0, %v1368_v7  ;;  %v1447_v34 = vmul.f32 1.442695, %v1439_v38  ;;  %v1416_v21 = vmul.f32 2.0, %v1368_v7  ;;  %v1418_v7 = vmul.f32 2.0, %v2370_v44 }
 0x1a5   : > { %v1337_v51 = vpop.f32.mrb[5].mxu0  ;;  %v1453_v59 = vmul.f32 1.442695, %v1442_v35 }
 0x1a6   : > { %v1790_v61 = vpop.f32.mrb[6].mxu0  ;;  %1387 = vrot.lane.b32.xlu0 %v1369_v50, %s1909_s25  ;;  %v1449_v53 = vmul.f32 1.442695, %v1440_v40  ;;  %1883 = vpow2.f32 %v1447_v34  ;;  %v1424_v50 = vadd.f32 1.837877, %v1416_v21 }
 0x1a7   : > { %v1340_v26 = vpop.f32.mrb[7].mxu0  ;;  %v1426_v38 = vadd.f32 1.837877, %v1418_v7 }
 0x1a8   : > { %v1749_v20 = vpop.f32.mrb[4].mxu1  ;;  %1389 = vrot.lane.b32.xlu1 %v2370_v44, %s1909_s25  ;;  %1885 = vpow2.f32 %v1449_v53 }
 0x1a9   : > { %v1797_v5 = vadd.f32 %v1789_v23, %v1749_v20  ;;  %v900_v6 = vpop.f32.mrb[5].mxu1  ;;  %1887 = vpow2.f32 %v1451_v55 }
 0x1aa   : > { %v1798_v48 = vadd.f32 %v1337_v51, %v900_v6  ;;  %v1750_v22 = vpop.f32.mrb[6].mxu1  ;;  %1889 = vpow2.f32 %v1453_v59 }
 0x1ab   : > { %v1799_v24 = vadd.f32 %v1790_v61, %v1750_v22  ;;  %v903_v3 = vpop.f32.mrb[7].mxu1  ;;  %v2375_v39 = vadd.f32 %v1797_v5, %v1652_v32 }
 0x1ac   : > { %v1371_v62 = vadd.f32 %v1798_v48, %v1652_v32  ;;  %v1800_v8 = vadd.f32 %v1340_v26, %v903_v3 }
 0x1ad   : > { %v2378_v37 = vadd.f32 %v1799_v24, %v1652_v32  ;;  %v1445_v13 = vmul.f32 -2.0, %v2375_v39 }
 0x1ae   : > { %v2373_v27 = vadd.f32 %v1800_v8, %v1652_v32  ;;  %1391 = vrot.lane.b32.xlu0 %v1371_v62, %s1909_s25  ;;  %v1443_v11 = vmul.f32 -2.0, %v1371_v62  ;;  %v1423_v32 = vadd.f32 1.837877, %v1415_v4  ;;  %v1419_v23 = vmul.f32 2.0, %v1371_v62 }
 0x1af   : > { %v1446_v42 = vmul.f32 -2.0, %v2378_v37  ;;  %v1459_v17 = vmul.f32 1.442695, %v1445_v13 }
 0x1b0   : > { %1393 = vrot.lane.b32.xlu1 %v2373_v27, %s1909_s25  ;;  %v1444_v14 = vmul.f32 -2.0, %v2373_v27  ;;  %v1455_v63 = vmul.f32 1.442695, %v1443_v11  ;;  %v1884_v31 = vpop.eup %1883  ;;  %v1420_v22 = vmul.f32 2.0, %v2373_v27  ;;  %v1427_v40 = vadd.f32 1.837877, %v1419_v23 }
 0x1b1   : > { %v1461_v25 = vmul.f32 1.442695, %v1446_v42 }
 0x1b2   : > { %1395 = vrot.lane.b32.xlu0 %v2375_v39, %s1909_s25  ;;  %v1457_v0 = vmul.f32 1.442695, %v1444_v14  ;;  %1891 = vpow2.f32 %v1455_v63  ;;  %v1886_v43 = vpop.eup %1885  ;;  %v1428_v59 = vadd.f32 1.837877, %v1420_v22 }
 0x1b4   : > { %1397 = vrot.lane.b32.xlu1 %v2378_v37, %s1909_s25  ;;  %1893 = vpow2.f32 %v1457_v0 }
 0x1b5   : > { %1895 = vpow2.f32 %v1459_v17 }
 0x1b6   : > { %1897 = vpow2.f32 %v1461_v25 }
 0x214   : > { %v1384_v56 = vpop.permute.xlu0 %1383 }
 0x215   : > { %v1407_v2 = vsub.f32 %v1981_v9, %v1384_v56 }
 0x216   : > { %v1386_v58 = vpop.permute.xlu1 %1385 }
 0x217   : > { %v1431_v29 = vmul.f32 %v1407_v2, %v1407_v2  ;;  %v1408_v41 = vsub.f32 %v1984_v10, %v1386_v58  ;;  %v1888_v10 = vpop.eup %1887 }
 0x218   : > { %v1388_v19 = vpop.permute.xlu0 %1387  ;;  %v1890_v6 = vpop.eup %1889 }
 0x219   : > { %v1463_v28 = vmul.f32 %v1884_v31, %v1431_v29  ;;  %v1432_v52 = vmul.f32 %v1408_v41, %v1408_v41  ;;  %v1409_v36 = vsub.f32 %v1991_v12, %v1388_v19  ;;  %v1892_v44 = vpop.eup %1891 }
 0x21a   : > { %v1390_v9 = vpop.permute.xlu1 %1389  ;;  %v1894_v53 = vpop.eup %1893 }
 0x21b   : > { %v1464_v60 = vmul.f32 %v1886_v43, %v1432_v52  ;;  %v1433_v47 = vmul.f32 %v1409_v36, %v1409_v36  ;;  %v1410_v33 = vsub.f32 %v1999_v15, %v1390_v9  ;;  %v1471_v49 = vadd.f32 %v1463_v28, %v1423_v32  ;;  %v1896_v42 = vpop.eup %1895 }
 0x21c   : > { %v1898_v58 = vpop.eup %1897 }
 0x21d   : > { %v1465_v20 = vmul.f32 %v1888_v10, %v1433_v47  ;;  %v1434_v51 = vmul.f32 %v1410_v33, %v1410_v33  ;;  %v1479_v5 = vmul.f32 -0.5, %v1471_v49  ;;  %v1472_v48 = vadd.f32 %v1464_v60, %v1424_v50 }
 0x21f   : > { %v1466_v26 = vmul.f32 %v1890_v6, %v1434_v51  ;;  %1495 = vrot.lane.b32.xlu0 %v1479_v5, %s1910_s26  ;;  %v1473_v3 = vadd.f32 %v1465_v20, %v1425_v45  ;;  %v1480_v62 = vmul.f32 -0.5, %v1472_v48 }
 0x220   : > { %v1392_v57 = vpop.permute.xlu0 %1391 }
 0x221   : > { %v1411_v12 = vsub.f32 %v2002_v16, %v1392_v57  ;;  %v1421_v16 = vmul.f32 2.0, %v2375_v39  ;;  %v1481_v27 = vmul.f32 -0.5, %v1473_v3  ;;  %1497 = vrot.lane.b32.xlu1 %v1480_v62, %s1910_s26  ;;  %v1474_v11 = vadd.f32 %v1466_v26, %v1426_v38 }
 0x222   : > { %v1394_v61 = vpop.permute.xlu1 %1393 }
 0x223   : > { %v1435_v15 = vmul.f32 %v1411_v12, %v1411_v12  ;;  %v1412_v24 = vsub.f32 %v2006_v18, %v1394_v61  ;;  %v1422_v18 = vmul.f32 2.0, %v2378_v37  ;;  %1499 = vrot.lane.b32.xlu0 %v1481_v27, %s1910_s26  ;;  %v1482_v0 = vmul.f32 -0.5, %v1474_v11 }
 0x224   : > { %v1396_v8 = vpop.permute.xlu0 %1395  ;;  %v1429_v56 = vadd.f32 1.837877, %v1421_v16 }
 0x225   : > { %v1467_v54 = vmul.f32 %v1892_v44, %v1435_v15  ;;  %v1436_v34 = vmul.f32 %v1412_v24, %v1412_v24  ;;  %v1413_v35 = vsub.f32 %v2034_v30, %v1396_v8  ;;  %1501 = vrot.lane.b32.xlu1 %v1482_v0, %s1910_s26  ;;  %v1430_v41 = vadd.f32 1.837877, %v1422_v18 }
 0x226   : > { %v1398_v55 = vpop.permute.xlu1 %1397 }
 0x227   : > { %v1468_v14 = vmul.f32 %v1894_v53, %v1436_v34  ;;  %v1437_v13 = vmul.f32 %v1413_v35, %v1413_v35  ;;  %v1414_v63 = vsub.f32 %v2063_v46, %v1398_v55  ;;  %v1475_v39 = vadd.f32 %v1467_v54, %v1427_v40 }
 0x229   : > { %v1469_v30 = vmul.f32 %v1896_v42, %v1437_v13  ;;  %v1438_v2 = vmul.f32 %v1414_v63, %v1414_v63  ;;  %v1483_v4 = vmul.f32 -0.5, %v1475_v39  ;;  %v1476_v17 = vadd.f32 %v1468_v14, %v1428_v59 }
 0x22b   : > { %v1470_v1 = vmul.f32 %v1898_v58, %v1438_v2  ;;  %1503 = vrot.lane.b32.xlu0 %v1483_v4, %s1910_s26  ;;  %v1484_v37 = vmul.f32 -0.5, %v1476_v17  ;;  %v1477_v29 = vadd.f32 %v1469_v30, %v1429_v56 }
 0x22d   : > { %v1485_v31 = vmul.f32 -0.5, %v1477_v29  ;;  %v1478_v25 = vadd.f32 %v1470_v1, %v1430_v41  ;;  %1505 = vrot.lane.b32.xlu1 %v1484_v37, %s1910_s26 }
 0x22f   : > { %1507 = vrot.lane.b32.xlu0 %v1485_v31, %s1910_s26  ;;  %v1486_v46 = vmul.f32 -0.5, %v1478_v25 }
 0x231   : > { %1509 = vrot.lane.b32.xlu1 %v1486_v46, %s1910_s26 }
 0x291   : > { %v1496_v19 = vpop.permute.xlu0 %1495 }
 0x292   : > { %v1519_v28 = vsel %vm343_vm3, %v1496_v19, 0.0 }
 0x293   : > { %v1498_v21 = vpop.permute.xlu1 %1497 }
 0x294   : > { %v1520_v52 = vsel %vm343_vm3, %v1498_v21, 0.0 }
 0x295   : > { %v1500_v36 = vpop.permute.xlu0 %1499  ;;  %v1521_v32 = vadd.f32 %v1520_v52, %v1519_v28 }
 0x296   : > { %v1522_v43 = vsel %vm343_vm3, %v1500_v36, 0.0 }
 0x297   : > { %v1523_v9 = vadd.f32 %v1522_v43, %v1521_v32  ;;  %v1502_v45 = vpop.permute.xlu1 %1501 }
 0x298   : > { %v1524_v60 = vsel %vm343_vm3, %v1502_v45, 0.0 }
 0x299   : > { %v1525_v33 = vadd.f32 %v1524_v60, %v1523_v9 }
 0x29d   : > { %v1504_v47 = vpop.permute.xlu0 %1503 }
 0x29e   : > { %v1526_v49 = vsel %vm343_vm3, %v1504_v47, 0.0 }
 0x29f   : > { %v1527_v10 = vadd.f32 %v1526_v49, %v1525_v33  ;;  %v1506_v57 = vpop.permute.xlu1 %1505 }
 0x2a0   : > { %v1528_v50 = vsel %vm343_vm3, %v1506_v57, 0.0 }
 0x2a1   : > { %v1508_v7 = vpop.permute.xlu0 %1507  ;;  %v1529_v23 = vadd.f32 %v1528_v50, %v1527_v10 }
 0x2a2   : > { %v1530_v20 = vsel %vm343_vm3, %v1508_v7, 0.0 }
 0x2a3   : > { %v1531_v51 = vadd.f32 %v1530_v20, %v1529_v23  ;;  %v1510_v12 = vpop.permute.xlu1 %1509 }
 0x2a4   : > { %v1532_v5 = vsel %vm343_vm3, %v1510_v12, 0.0 }
 0x2a5   : > { %v1533_v6 = vadd.f32 %v1532_v5, %v1531_v51 }
 0x2a7   : > { %1534 = vadd.xlane.f32.xlu0 %v1533_v6 }
 0x334   : > { %v1535_v61 = vpop.xlane.xlu0 %1534 }
 0x335   : > { %v1536_v48 = vrot.slane %v1535_v61, 4 }
 0x337   : > { %v1537_v22 = vadd.f32 %v1536_v48, %v1535_v61 }
 0x339   : > { %v1538_v26 = vrot.slane %v1537_v22, 2 }
 0x33b   : > { %v1539_v15 = vadd.f32 %v1538_v26, %v1537_v22 }
 0x33d   : > { %v1540_v24 = vrot.slane %v1539_v15, 1 }
 0x33f   : > { %v1541_v3 = vadd.f32 %v1540_v24, %v1539_v15 }
 0x341   : > { %1867 = vpush %v1541_v3 }
 0x372   : > { %s1868_s30 = spop %1867 }
 0x373   : > { %v1543_v44 = vstv %s1868_s30 }
 0x374   : > { %1545 = vst.msk [vmem:[%s193_s29] sm:$0x1] %vm1544_vm6, %v1543_v44 }
 0x375 PF: > { %s14_s15 = sadd.s32 1, %s1905_s15  }
 0x376   : > { %p11_p4 = scmp.ge.s32.totalorder %s14_s15, 4  }
 0x378   :  { %13 = sbr.rel (!%p11_p4) target bundleno = 1 (0x1), region = 75 }

</bundles_post_ra>
